<compile_context>
chip_gen: v7x
topology: tpu7x:2x2x1
jax: 0.10.0
libtpu: 0.0.40
codegen_flags: <defaults>
</compile_context>

<pallas_src>
import functools

import jax
import jax.numpy as jnp
from jax.experimental import pallas as pl
from jax.experimental.pallas import tpu as pltpu

SCALAR_KEY_DIM = 16
SCALAR_VALUE_DIM = 16
POINT_KEY_DIM = 4
POINT_VALUE_DIM = 4
EPS = 1e-8
VMEM_LIMIT = 48 * 1024 * 1024      # cross-generation safe (v7x has 64 MiB / core)


def _round_up(x, m):
    return (x + m - 1) // m * m


def _row(v):
    return v.reshape(1, -1)


def _bf16(w):
    return w.astype(jnp.bfloat16)


def _fullspec(shape):
    return pl.BlockSpec(shape, lambda i, _nd=len(shape): (0,) * _nd)


# --------------------------------------------------------------------------
# Generic tiled linear / layernorm kernels
# --------------------------------------------------------------------------
def _linear_kernel(x_ref, w_ref, b_ref, o_ref, *, relu_in):
    x = x_ref[...]
    if relu_in:
        x = jnp.maximum(x, 0.0)
    o_ref[...] = (jnp.dot(x.astype(jnp.bfloat16), w_ref[...],
                          preferred_element_type=jnp.float32) + b_ref[...])


def linear_pallas(x, w, b, relu_in=False, tm=256):
    """y = (relu?)(x) @ w + b ; M tiled over the grid, weights stay resident."""
    M, K = x.shape
    N = w.shape[1]
    TM = min(tm, _round_up(M, 8))
    Mp = _round_up(M, TM)
    if Mp != M:
        x = jnp.pad(x, ((0, Mp - M), (0, 0)))
    out = pl.pallas_call(
        functools.partial(_linear_kernel, relu_in=relu_in),
        grid=(Mp // TM,),
        in_specs=[pl.BlockSpec((TM, K), lambda i: (i, 0)),
                  pl.BlockSpec((K, N), lambda i: (0, 0)),
                  pl.BlockSpec((1, N), lambda i: (0, 0))],
        out_specs=pl.BlockSpec((TM, N), lambda i: (i, 0)),
        out_shape=jax.ShapeDtypeStruct((Mp, N), jnp.float32),
        compiler_params=pltpu.CompilerParams(
            dimension_semantics=("parallel",), vmem_limit_bytes=VMEM_LIMIT),
    )(x, _bf16(w), _row(b).astype(jnp.float32))
    return out if Mp == M else out[:M]


def _layernorm_kernel(x_ref, g_ref, b_ref, o_ref, *, eps):
    x = x_ref[...]
    mean = jnp.mean(x, axis=-1, keepdims=True)
    cen = x - mean
    var = jnp.mean(cen * cen, axis=-1, keepdims=True)
    o_ref[...] = cen * jax.lax.rsqrt(var + eps) * g_ref[...] + b_ref[...]


def layernorm_pallas(x, g, b, eps=1e-5, tm=512):
    M, D = x.shape
    TM = min(tm, _round_up(M, 8))
    Mp = _round_up(M, TM)
    if Mp != M:
        x = jnp.pad(x, ((0, Mp - M), (0, 0)))
    out = pl.pallas_call(
        functools.partial(_layernorm_kernel, eps=eps),
        grid=(Mp // TM,),
        in_specs=[pl.BlockSpec((TM, D), lambda i: (i, 0)),
                  pl.BlockSpec((1, D), lambda i: (0, 0)),
                  pl.BlockSpec((1, D), lambda i: (0, 0))],
        out_specs=pl.BlockSpec((TM, D), lambda i: (i, 0)),
        out_shape=jax.ShapeDtypeStruct((Mp, D), jnp.float32),
        compiler_params=pltpu.CompilerParams(
            dimension_semantics=("parallel",), vmem_limit_bytes=VMEM_LIMIT),
    )(x, _row(g), _row(b))
    return out if Mp == M else out[:M]


# --------------------------------------------------------------------------
# Fused IPABlock tail: attn_norm -> Linear/ReLU/Linear/ReLU/Linear -> ff_norm
# --------------------------------------------------------------------------
def _ipa_post_kernel(x_ref, ag_ref, ab_ref, w1_ref, b1_ref, w2_ref, b2_ref,
                     w3_ref, b3_ref, fg_ref, fb_ref, o_ref, *, eps):
    def ln(v, g, bb):
        mu = jnp.mean(v, axis=-1, keepdims=True)
        c = v - mu
        var = jnp.mean(c * c, axis=-1, keepdims=True)
        return c * jax.lax.rsqrt(var + eps) * g + bb

    x = ln(x_ref[...], ag_ref[...], ab_ref[...])
    y = jnp.dot(x.astype(jnp.bfloat16), w1_ref[...],
                preferred_element_type=jnp.float32) + b1_ref[...]
    y = jnp.dot(jnp.maximum(y, 0.0).astype(jnp.bfloat16), w2_ref[...],
                preferred_element_type=jnp.float32) + b2_ref[...]
    y = jnp.dot(jnp.maximum(y, 0.0).astype(jnp.bfloat16), w3_ref[...],
                preferred_element_type=jnp.float32) + b3_ref[...]
    o_ref[...] = ln(x + y, fg_ref[...], fb_ref[...])


def ipa_post_pallas(x, p, eps=1e-5, tm=256):
    M, ds = x.shape
    dh = p['ff1_w'].shape[1]
    TM = min(tm, _round_up(M, 8))
    Mp = _round_up(M, TM)
    if Mp != M:
        x = jnp.pad(x, ((0, Mp - M), (0, 0)))
    out = pl.pallas_call(
        functools.partial(_ipa_post_kernel, eps=eps),
        grid=(Mp // TM,),
        in_specs=[pl.BlockSpec((TM, ds), lambda i: (i, 0)),
                  _fullspec((1, ds)), _fullspec((1, ds)),
                  _fullspec((ds, dh)), _fullspec((1, dh)),
                  _fullspec((dh, dh)), _fullspec((1, dh)),
                  _fullspec((dh, ds)), _fullspec((1, ds)),
                  _fullspec((1, ds)), _fullspec((1, ds))],
        out_specs=pl.BlockSpec((TM, ds), lambda i: (i, 0)),
        out_shape=jax.ShapeDtypeStruct((Mp, ds), jnp.float32),
        compiler_params=pltpu.CompilerParams(
            dimension_semantics=("parallel",), vmem_limit_bytes=VMEM_LIMIT),
    )(x, _row(p['attn_norm_g']), _row(p['attn_norm_b']),
      _bf16(p['ff1_w']), _row(p['ff1_b']),
      _bf16(p['ff2_w']), _row(p['ff2_b']),
      _bf16(p['ff3_w']), _row(p['ff3_b']),
      _row(p['ff_norm_g']), _row(p['ff_norm_b']))
    return out if Mp == M else out[:M]


# --------------------------------------------------------------------------
# Fused AngleNet: projections + resnet blocks + to_groups in one kernel
# --------------------------------------------------------------------------
def _angle_kernel(s_ref, si_ref, wp_ref, bp_ref, wpi_ref, bpi_ref,
                  w1_ref, b1_ref, w2_ref, b2_ref, wg_ref, bg_ref, o_ref,
                  *, nblocks):
    relu = lambda v: jnp.maximum(v, 0.0)
    bf = lambda v: v.astype(jnp.bfloat16)
    act = jnp.dot(bf(relu(s_ref[...])), wp_ref[...],
                  preferred_element_type=jnp.float32) + bp_ref[...]
    act = act + jnp.dot(bf(relu(si_ref[...])), wpi_ref[...],
                        preferred_element_type=jnp.float32) + bpi_ref[...]
    for i in range(nblocks):
        y = jnp.dot(bf(relu(act)), w1_ref[i],
                    preferred_element_type=jnp.float32) + b1_ref[i]
        y = jnp.dot(bf(relu(y)), w2_ref[i],
                    preferred_element_type=jnp.float32) + b2_ref[i]
        act = act + y
    o_ref[...] = jnp.dot(bf(relu(act)), wg_ref[...],
                         preferred_element_type=jnp.float32) + bg_ref[...]


def angle_net_pallas(p, single, single_init, tm=512):
    b, n, ds = single.shape
    M = b * n
    C = p['proj_w'].shape[1]
    nb = p['blocks_w1'].shape[0]
    s = single.reshape(M, ds)
    si = single_init.reshape(M, ds)
    TM = min(tm, _round_up(M, 8))
    Mp = _round_up(M, TM)
    if Mp != M:
        s = jnp.pad(s, ((0, Mp - M), (0, 0)))
        si = jnp.pad(si, ((0, Mp - M), (0, 0)))
    out = pl.pallas_call(
        functools.partial(_angle_kernel, nblocks=nb),
        grid=(Mp // TM,),
        in_specs=[pl.BlockSpec((TM, ds), lambda i: (i, 0)),
                  pl.BlockSpec((TM, ds), lambda i: (i, 0)),
                  _fullspec((ds, C)), _fullspec((1, C)),
                  _fullspec((ds, C)), _fullspec((1, C)),
                  _fullspec((nb, C, C)), _fullspec((nb, 1, C)),
                  _fullspec((nb, C, C)), _fullspec((nb, 1, C)),
                  _fullspec((C, 14)), _fullspec((1, 14))],
        out_specs=pl.BlockSpec((TM, 14), lambda i: (i, 0)),
        out_shape=jax.ShapeDtypeStruct((Mp, 14), jnp.float32),
        compiler_params=pltpu.CompilerParams(
            dimension_semantics=("parallel",), vmem_limit_bytes=VMEM_LIMIT),
    )(s, si,
      _bf16(p['proj_w']), _row(p['proj_b']),
      _bf16(p['proj_init_w']), _row(p['proj_init_b']),
      _bf16(p['blocks_w1']), p['blocks_b1'].reshape(nb, 1, C),
      _bf16(p['blocks_w2']), p['blocks_b2'].reshape(nb, 1, C),
      _bf16(p['to_groups_w']), _row(p['to_groups_b']))
    out = out if Mp == M else out[:M]
    return out.reshape(b, n, 7, 2)


# --------------------------------------------------------------------------
# Invariant-point-attention core kernel (one (batch, head) per grid point)
# --------------------------------------------------------------------------
def _ipa_attn_kernel(qs_ref, ks_ref, vs_ref, qp_ref, kp_ref, vp_ref,
                     bias_ref, mrow_ref, mcol_ref, osv_ref, attn_ref):
    q_s = qs_ref[0, 0]                        # (n, dk) scalar_scale folded into wq
    k_s = ks_ref[0, 0]
    v_s = vs_ref[0, 0].astype(jnp.bfloat16)   # (n, dv)
    q_p = qp_ref[0, 0]                        # (n, 3*pk) global frame, point weight applied
    k_p = kp_ref[0, 0]
    v_p = vp_ref[0, 0].astype(jnp.bfloat16)   # (n, 3*pv)
    bias = bias_ref[0, 0]                     # (n, n) pairwise bias (pre-scaled)
    mrow = mrow_ref[0]                        # (1, n)
    mcol = mcol_ref[0]                        # (n, 1)

    # merged scalar+point logits: one MXU pass with K = dk + 3*pk
    #   q_cat . k_cat^T = q_s.k_s + 2 * q_p.k_p
    sqrt2 = jnp.float32(1.4142135623730951)
    q_cat = jnp.concatenate([q_s, sqrt2 * q_p], axis=-1).astype(jnp.bfloat16)
    k_cat = jnp.concatenate([k_s, sqrt2 * k_p], axis=-1).astype(jnp.bfloat16)
    logits = jax.lax.dot_general(q_cat, k_cat, (((1,), (1,)), ((), ())),
                                 preferred_element_type=jnp.float32)
    qsq = jnp.sum(q_p * q_p, axis=-1, keepdims=True)   # (n, 1)
    ksq = jnp.sum(k_p * k_p, axis=-1, keepdims=True)   # (n, 1)
    logits = logits + bias - qsq - jnp.transpose(ksq)

    mask2d = mcol * mrow                                # in-kernel outer-product mask
    logits = jnp.where(mask2d > 0.0, logits, -1e9)

    mmax = jnp.max(logits, axis=-1, keepdims=True)
    p = jnp.exp(logits - mmax)
    attn = p * pl.reciprocal(jnp.sum(p, axis=-1, keepdims=True), approx=False)
    attn_b = attn.astype(jnp.bfloat16)

    out_s = jnp.dot(attn_b, v_s, preferred_element_type=jnp.float32)   # (n, dv)
    out_p = jnp.dot(attn_b, v_p, preferred_element_type=jnp.float32)   # (n, 3*pv)
    osv_ref[0, 0] = jnp.concatenate([out_s, out_p], axis=-1)
    attn_ref[0, 0] = attn_b


def ipa_attention_pallas(q_s, k_s, v_s, q_p, k_p, v_p, bias, mask_row, mask_col):
    b, h, n, dk = q_s.shape
    dv = v_s.shape[-1]
    dqp = q_p.shape[-1]
    dpt = v_p.shape[-1]
    bm = lambda bi, hi: (bi, hi, 0, 0)
    bmask = lambda bi, hi: (bi, 0, 0)
    osv, attn = pl.pallas_call(
        _ipa_attn_kernel,
        grid=(b, h),
        in_specs=[
            pl.BlockSpec((1, 1, n, dk), bm),
            pl.BlockSpec((1, 1, n, dk), bm),
            pl.BlockSpec((1, 1, n, dv), bm),
            pl.BlockSpec((1, 1, n, dqp), bm),
            pl.BlockSpec((1, 1, n, dqp), bm),
            pl.BlockSpec((1, 1, n, dpt), bm),
            pl.BlockSpec((1, 1, n, n), bm),
            pl.BlockSpec((1, 1, n), bmask),
            pl.BlockSpec((1, n, 1), bmask),
        ],
        out_specs=(pl.BlockSpec((1, 1, n, dv + dpt), bm),
                   pl.BlockSpec((1, 1, n, n), bm)),
        out_shape=(jax.ShapeDtypeStruct((b, h, n, dv + dpt), jnp.float32),
                   jax.ShapeDtypeStruct((b, h, n, n), jnp.bfloat16)),
        compiler_params=pltpu.CompilerParams(
            dimension_semantics=("parallel", "parallel"),
            vmem_limit_bytes=VMEM_LIMIT),
    )(q_s, k_s, v_s, q_p, k_p, v_p, bias, mask_row, mask_col)
    return osv, attn


# --------------------------------------------------------------------------
# Quaternion / rigid helpers (plain JAX glue)
# --------------------------------------------------------------------------
def quaternion_to_matrix(q):
    r, i, j, k = q[..., 0], q[..., 1], q[..., 2], q[..., 3]
    two_s = 2.0 / jnp.sum(q * q, axis=-1)
    m = jnp.stack([
        1 - two_s * (j * j + k * k), two_s * (i * j - k * r), two_s * (i * k + j * r),
        two_s * (i * j + k * r), 1 - two_s * (i * i + k * k), two_s * (j * k - i * r),
        two_s * (i * k - j * r), two_s * (j * k + i * r), 1 - two_s * (i * i + j * j),
    ], axis=-1)
    return m.reshape(q.shape[:-1] + (3, 3))


def quaternion_multiply(a, b):
    aw, ax, ay, az = (a[..., i] for i in range(4))
    bw, bx, by, bz = (b[..., i] for i in range(4))
    return jnp.stack([
        aw * bw - ax * bx - ay * by - az * bz,
        aw * bx + ax * bw + ay * bz - az * by,
        aw * by - ax * bz + ay * bw + az * bx,
        aw * bz + ax * by - ay * bx + az * bw,
    ], axis=-1)


def l2_norm(x, eps=1e-12):
    return x / jnp.maximum(jnp.linalg.norm(x, axis=-1, keepdims=True), eps)


# --------------------------------------------------------------------------
# Module forward
# --------------------------------------------------------------------------
def _prep_ipa(p, heads):
    """Derived (loop-invariant) IPA parameters with scales folded in."""
    dk, pk = SCALAR_KEY_DIM, POINT_KEY_DIM
    num_logits = 3
    scalar_scale = (num_logits * dk) ** -0.5
    point_scale = ((num_logits * pk) * (9.0 / 2.0)) ** -0.5
    pairwise_scale = num_logits ** -0.5
    w_qkv = jnp.concatenate(
        [p['wq_s'] * scalar_scale, p['wk_s'], p['wv_s'],
         p['wq_p'], p['wk_p'], p['wv_p']], axis=1)
    pfac = jnp.sqrt(0.5 * point_scale * jax.nn.softplus(p['point_weights']))
    return dict(
        w_qkv=w_qkv,
        b_qkv=jnp.zeros((w_qkv.shape[1],), jnp.float32),
        pfac=pfac.astype(jnp.float32),
        w_pb=p['w_pb'] * pairwise_scale,
        b_pb=p['b_pb'] * pairwise_scale,
        w_out=p['w_out'], b_out=p['b_out'])


def invariant_point_attention(prep, single, pair_b16, bias_bhnn,
                              mask_row, mask_col, rotations, translations, heads):
    b, n, ds = single.shape
    dp = pair_b16.shape[-1]
    h = heads
    dk, dv, pk, pv = SCALAR_KEY_DIM, SCALAR_VALUE_DIM, POINT_KEY_DIM, POINT_VALUE_DIM

    # fused q/k/v scalar+point projections: single lane-dense matmul, split in JAX.
    qkv = linear_pallas(single.reshape(b * n, ds), prep['w_qkv'], prep['b_qkv'])
    s0 = h * dk
    s1 = s0 + h * dk
    s2 = s1 + h * dv
    s3 = s2 + h * pk * 3
    s4 = s3 + h * pk * 3
    s5 = s4 + h * pv * 3
    q_s = qkv[:, :s0].reshape(b, n, h, dk).transpose(0, 2, 1, 3)
    k_s = qkv[:, s0:s1].reshape(b, n, h, dk).transpose(0, 2, 1, 3)
    v_s = qkv[:, s1:s2].reshape(b, n, h, dv).transpose(0, 2, 1, 3)
    q_p = qkv[:, s2:s3].reshape(b, n, h, pk, 3)
    k_p = qkv[:, s3:s4].reshape(b, n, h, pk, 3)
    v_p = qkv[:, s4:s5].reshape(b, n, h, pv, 3)

    # local -> global frame (row-vector convention): x_g = x_l @ R + t
    def to_global(pts):
        g = jnp.einsum('bnhdc,bncr->bnhdr', pts, rotations)
        return g + translations[:, :, None, None, :]

    q_pg, k_pg, v_pg = map(to_global, (q_p, k_p, v_p))
    pf = prep['pfac'][None, None, :, None, None]
    flat = lambda pts, d: pts.transpose(0, 2, 1, 3, 4).reshape(b, h, n, d * 3)
    q_pf = flat(q_pg * pf, pk)
    k_pf = flat(k_pg * pf, pk)
    v_pf = flat(v_pg, pv)

    out_sv, attn = ipa_attention_pallas(q_s, k_s, v_s, q_pf, k_pf, v_pf,
                                        bias_bhnn, mask_row, mask_col)
    dpt = pv * 3
    out_s = out_sv[..., :dv]                 # (b, h, n, dv)
    out_p = out_sv[..., dv:dv + dpt]         # (b, h, n, 3*pv)
    # pairwise-repr aggregation on the MXU (batched matmul over (b, i)),
    # replacing the v1 VALU broadcast-reduce.
    out_pr = jnp.einsum('bhij,bijd->bihd', attn, pair_b16,
                        preferred_element_type=jnp.float32)   # (b, n, h, dp)

    # points back to local frame: x_l = (x_g - t) @ R^T
    pts_g = out_p.reshape(b, h, n, pv, 3).transpose(0, 2, 1, 3, 4)
    pts_l = jnp.einsum('bnhdc,bncr->bnhdr',
                       pts_g - translations[:, :, None, None, :],
                       rotations.transpose(0, 1, 3, 2))
    pts_norm = jnp.sqrt(jnp.sum(pts_l * pts_l, axis=-1) + EPS)

    cat = jnp.concatenate([
        out_s.transpose(0, 2, 1, 3).reshape(b, n, h * dv),
        pts_l.reshape(b, n, h * pv * 3),
        pts_norm.reshape(b, n, h * pv),
        out_pr.reshape(b, n, h * dp),
    ], axis=-1)
    out = linear_pallas(cat.reshape(b * n, -1), prep['w_out'], prep['b_out'])
    return out.reshape(b, n, ds)


def structure_module_forward(params, representations, batch, depth, heads,
                             position_scale=1.0):
    single = representations['single']
    pair = representations['pair']
    mask = batch['mask'].astype(jnp.float32)
    b, n = batch['seq'].shape
    ds = single.shape[-1]
    dp = pair.shape[-1]

    single = layernorm_pallas(single.reshape(b * n, ds),
                              params['single_norm_g'],
                              params['single_norm_b']).reshape(b, n, ds)
    pair = layernorm_pallas(pair.reshape(b * n * n, dp),
                            params['pair_norm_g'],
                            params['pair_norm_b']).reshape(b, n, n, dp)
    single_init = single
    single = linear_pallas(single.reshape(b * n, ds),
                           params['single_dim_w'],
                           params['single_dim_b']).reshape(b, n, ds)

    ipa_blk = params['ipa_block']
    prep = _prep_ipa(ipa_blk['ipa'], heads)

    # loop-invariant pairwise quantities (hoisted out of the depth loop)
    bias_flat = linear_pallas(pair.reshape(b * n * n, dp), prep['w_pb'], prep['b_pb'])
    bias_bhnn = bias_flat.reshape(b, n, n, heads).transpose(0, 3, 1, 2)
    pair_b16 = pair.astype(jnp.bfloat16)
    mask_row = mask.reshape(b, 1, n)
    mask_col = mask.reshape(b, n, 1)

    quaternions = jnp.tile(jnp.array([1.0, 0.0, 0.0, 0.0], jnp.float32), (b, n, 1))
    translations = jnp.zeros((b, n, 3), jnp.float32)
    rotations = jax.lax.stop_gradient(quaternion_to_matrix(quaternions))

    outputs = []
    for i in range(depth):
        is_last = i == depth - 1
        attn_out = invariant_point_attention(prep, single, pair_b16, bias_bhnn,
                                             mask_row, mask_col,
                                             rotations, translations, heads)
        x = single + attn_out
        # fused attn_norm + 3-layer Transition + ff_norm (dropout p=0 in eval)
        single = ipa_post_pallas(x.reshape(b * n, ds), ipa_blk).reshape(b, n, ds)

        affine = linear_pallas(single.reshape(b * n, ds),
                               params['affine_w'], params['affine_b']).reshape(b, n, 6)
        q_upd, t_upd = affine[..., :3], affine[..., 3:]
        q_upd = jnp.concatenate([jnp.ones((b, n, 1), jnp.float32), q_upd], axis=-1)
        q_upd = l2_norm(q_upd)
        quaternions = quaternion_multiply(quaternions, q_upd)
        translations = jnp.einsum('bnc,bnrc->bnr', t_upd, rotations) + translations
        rotations = quaternion_to_matrix(quaternions)
        if not is_last:
            rotations = jax.lax.stop_gradient(rotations)
        if is_last:  # eval mode: outputs emitted only on the last iteration
            angles = angle_net_pallas(params['to_angles'], single, single_init)
            # TODO(synk): rigids_from_angles / rigids_to_positions need the AlphaFold
            # residue-constant rigid-group tables (not available in-script); skipped.
            outputs.append(dict(
                frames=(rotations, translations * position_scale),
                act=single,
                atoms=dict(angles=angles),
            ))
    return outputs


# --------------------------------------------------------------------------
# Deterministic parameter initialization
# --------------------------------------------------------------------------
def init_params(key, ds, dp, heads, angle_channel=128, num_angle_blocks=2):
    dk, dv, pk, pv = SCALAR_KEY_DIM, SCALAR_VALUE_DIM, POINT_KEY_DIM, POINT_VALUE_DIM
    keys = iter(jax.random.split(key, 128))

    def lin(din, dout, bias=True, scale=0.05):
        w = jax.random.normal(next(keys), (din, dout), jnp.float32) * scale
        bb = (jax.random.normal(next(keys), (dout,), jnp.float32) * scale
              if bias else jnp.zeros((dout,), jnp.float32))
        return w, bb

    ipa = {}
    ipa['wq_s'], _ = lin(ds, heads * dk, bias=False)
    ipa['wk_s'], _ = lin(ds, heads * dk, bias=False)
    ipa['wv_s'], _ = lin(ds, heads * dv, bias=False)
    ipa['wq_p'], _ = lin(ds, heads * pk * 3, bias=False)
    ipa['wk_p'], _ = lin(ds, heads * pk * 3, bias=False)
    ipa['wv_p'], _ = lin(ds, heads * pv * 3, bias=False)
    ipa['point_weights'] = jnp.full((heads,), float(jnp.log(jnp.exp(1.0) - 1.0)),
                                    jnp.float32)
    ipa['w_pb'], ipa['b_pb'] = lin(dp, heads)
    ipa['w_out'], ipa['b_out'] = lin(heads * (dv + dp + pv * 4), ds)

    ipa_blk = dict(ipa=ipa,
                   attn_norm_g=jnp.ones((ds,), jnp.float32),
                   attn_norm_b=jnp.zeros((ds,), jnp.float32),
                   ff_norm_g=jnp.ones((ds,), jnp.float32),
                   ff_norm_b=jnp.zeros((ds,), jnp.float32))
    ipa_blk['ff1_w'], ipa_blk['ff1_b'] = lin(ds, ds)
    ipa_blk['ff2_w'], ipa_blk['ff2_b'] = lin(ds, ds)
    ipa_blk['ff3_w'], ipa_blk['ff3_b'] = lin(ds, ds)

    bw1, bb1, bw2, bb2 = [], [], [], []
    for _ in range(num_angle_blocks):
        w1, b1 = lin(angle_channel, angle_channel)
        w2, b2 = lin(angle_channel, angle_channel)
        bw1.append(w1); bb1.append(b1); bw2.append(w2); bb2.append(b2)
    to_angles = dict(
        blocks_w1=jnp.stack(bw1), blocks_b1=jnp.stack(bb1),
        blocks_w2=jnp.stack(bw2), blocks_b2=jnp.stack(bb2))
    to_angles['proj_w'], to_angles['proj_b'] = lin(ds, angle_channel)
    to_angles['proj_init_w'], to_angles['proj_init_b'] = lin(ds, angle_channel)
    to_angles['to_groups_w'], to_angles['to_groups_b'] = lin(angle_channel, 14)

    params = dict(
        single_norm_g=jnp.ones((ds,), jnp.float32),
        single_norm_b=jnp.zeros((ds,), jnp.float32),
        pair_norm_g=jnp.ones((dp,), jnp.float32),
        pair_norm_b=jnp.zeros((dp,), jnp.float32),
        ipa_block=ipa_blk,
        to_angles=to_angles,
    )
    params['single_dim_w'], params['single_dim_b'] = lin(ds, ds)
    params['affine_w'], params['affine_b'] = lin(ds, 6)
    return params


# --------------------------------------------------------------------------
if __name__ == "__main__":
    B, N = 2, 8
    DS, DP = 32, 16           # dim_single, dim_pairwise
    HEADS, DEPTH = 2, 2       # structure_module_heads, structure_module_depth

    key = jax.random.PRNGKey(0)
    k1, k2, k3, kp = jax.random.split(key, 4)
    single = jax.random.normal(k1, (B, N, DS), jnp.float32)
    pair = jax.random.normal(k2, (B, N, N, DP), jnp.float32)
    seq = jax.random.randint(k3, (B, N), 0, 20)
    mask = jnp.ones((B, N), dtype=bool)

    params = init_params(kp, DS, DP, HEADS)

    @jax.jit
    def run(params, single, pair, seq, mask):
        return structure_module_forward(
            params,
            dict(single=single, pair=pair),
            dict(seq=seq, mask=mask),
            depth=DEPTH, heads=HEADS, position_scale=1.0)

    outs = run(params, single, pair, seq, mask)
    jax.block_until_ready(outs)
    assert len(outs) == 1
    assert outs[0]['frames'][0].shape == (B, N, 3, 3)
    assert outs[0]['frames'][1].shape == (B, N, 3)
    assert outs[0]['act'].shape == (B, N, DS)
    assert outs[0]['atoms']['angles'].shape == (B, N, 7, 2)
    print("KERNEL_OK")
</pallas_src>

<mosaic_0001>
module attributes {stable_mosaic.version = 11 : i64} {
  func.func @_linear_kernel(%arg0: i32, %arg1: memref<16x32xf32, #tpu.memory_space<vmem>>, %arg2: memref<32x32xbf16, #tpu.memory_space<vmem>>, %arg3: memref<1x32xf32, #tpu.memory_space<vmem>>, %arg4: memref<16x32xf32, #tpu.memory_space<vmem>>) attributes {dimension_semantics = [#tpu.dimension_semantics<parallel>], iteration_bounds = array<i64: 1>, scalar_prefetch = 0 : i64, scratch_operands = 0 : i64, tpu.core_type = #tpu.core_type<tc>, window_params = [{transform_indices = @transform_0, window_bounds = array<i64: 16, 32>}, {pipeline_mode = #tpu.pipeline_mode<synchronous>, transform_indices = @transform_1, window_bounds = array<i64: 32, 32>}, {pipeline_mode = #tpu.pipeline_mode<synchronous>, transform_indices = @transform_2, window_bounds = array<i64: 1, 32>}, {transform_indices = @transform_3, window_bounds = array<i64: 16, 32>}]} {
    %c0 = arith.constant 0 : index
    %c0_0 = arith.constant 0 : index
    %0 = vector.load %arg1[%c0, %c0_0] : memref<16x32xf32, #tpu.memory_space<vmem>>, vector<16x32xf32>
    %1 = arith.truncf %0 : vector<16x32xf32> to vector<16x32xbf16>
    %c0_1 = arith.constant 0 : index
    %c0_2 = arith.constant 0 : index
    %2 = vector.load %arg2[%c0_1, %c0_2] : memref<32x32xbf16, #tpu.memory_space<vmem>>, vector<32x32xbf16>
    %cst = arith.constant dense<0.000000e+00> : vector<16x32xf32>
    %3 = tpu.matmul %1, %2, %cst {dimension_numbers = #tpu.dot_dimension_numbers<[1], [0], [0], [1], [0, 0, 1, 1], [], []>} : vector<16x32xbf16>, vector<32x32xbf16>, vector<16x32xf32> -> vector<16x32xf32>
    %c0_3 = arith.constant 0 : index
    %c0_4 = arith.constant 0 : index
    %4 = vector.load %arg3[%c0_3, %c0_4] : memref<1x32xf32, #tpu.memory_space<vmem>>, vector<1x32xf32>
    %5 = vector.broadcast %4 : vector<1x32xf32> to vector<16x32xf32>
    %6 = arith.addf %3, %5 : vector<16x32xf32>
    %c0_5 = arith.constant 0 : index
    %c0_6 = arith.constant 0 : index
    %7 = vector.load %arg4[%c0_5, %c0_6] : memref<16x32xf32, #tpu.memory_space<vmem>>, vector<16x32xf32>
    tpu.vector_store %arg4[%c0_5, %c0_6], %6 {strides = array<i32>} : memref<16x32xf32, #tpu.memory_space<vmem>>, vector<16x32xf32>,
    return
  }
  func.func @transform_0(%arg0: i32) -> (i32, i32) {
    %c0_i32 = arith.constant 0 : i32
    %c0_i32_0 = arith.constant 0 : i32
    return %arg0, %c0_i32 : i32, i32
  }
  func.func @transform_1(%arg0: i32) -> (i32, i32) {
    %c0_i32 = arith.constant 0 : i32
    %c0_i32_0 = arith.constant 0 : i32
    %c0_i32_1 = arith.constant 0 : i32
    return %c0_i32, %c0_i32_0 : i32, i32
  }
  func.func @transform_2(%arg0: i32) -> (i32, i32) {
    %c0_i32 = arith.constant 0 : i32
    %c0_i32_0 = arith.constant 0 : i32
    %c0_i32_1 = arith.constant 0 : i32
    return %c0_i32, %c0_i32_0 : i32, i32
  }
  func.func @transform_3(%arg0: i32) -> (i32, i32) {
    %c0_i32 = arith.constant 0 : i32
    %c0_i32_0 = arith.constant 0 : i32
    return %arg0, %c0_i32 : i32, i32
  }
}

module attributes {stable_mosaic.version = 11 : i64} {
  func.func @_layernorm_kernel(%arg0: i32, %arg1: memref<16x32xf32, #tpu.memory_space<vmem>>, %arg2: memref<1x32xf32, #tpu.memory_space<vmem>>, %arg3: memref<1x32xf32, #tpu.memory_space<vmem>>, %arg4: memref<16x32xf32, #tpu.memory_space<vmem>>) attributes {dimension_semantics = [#tpu.dimension_semantics<parallel>], iteration_bounds = array<i64: 1>, scalar_prefetch = 0 : i64, scratch_operands = 0 : i64, tpu.core_type = #tpu.core_type<tc>, window_params = [{transform_indices = @transform_0, window_bounds = array<i64: 16, 32>}, {pipeline_mode = #tpu.pipeline_mode<synchronous>, transform_indices = @transform_1, window_bounds = array<i64: 1, 32>}, {pipeline_mode = #tpu.pipeline_mode<synchronous>, transform_indices = @transform_2, window_bounds = array<i64: 1, 32>}, {transform_indices = @transform_3, window_bounds = array<i64: 16, 32>}]} {
    %c0 = arith.constant 0 : index
    %c0_0 = arith.constant 0 : index
    %0 = vector.load %arg1[%c0, %c0_0] : memref<16x32xf32, #tpu.memory_space<vmem>>, vector<16x32xf32>
    %cst = arith.constant dense<0.000000e+00> : vector<16xf32>
    %1 = vector.multi_reduction <add>, %0, %cst [1] : vector<16x32xf32> to vector<16xf32>
    %2 = vector.shape_cast %1 : vector<16xf32> to vector<16x1xf32>
    %cst_1 = arith.constant 3.200000e+01 : f32
    %3 = vector.broadcast %cst_1 : f32 to vector<16x1xf32>
    %4 = arith.divf %2, %3 : vector<16x1xf32>
    %5 = vector.broadcast %4 : vector<16x1xf32> to vector<16x32xf32>
    %6 = arith.subf %0, %5 : vector<16x32xf32>
    %7 = arith.mulf %6, %6 : vector<16x32xf32>
    %cst_2 = arith.constant dense<0.000000e+00> : vector<16xf32>
    %8 = vector.multi_reduction <add>, %7, %cst_2 [1] : vector<16x32xf32> to vector<16xf32>
    %9 = vector.shape_cast %8 : vector<16xf32> to vector<16x1xf32>
    %cst_3 = arith.constant 3.200000e+01 : f32
    %10 = vector.broadcast %cst_3 : f32 to vector<16x1xf32>
    %11 = arith.divf %9, %10 : vector<16x1xf32>
    %cst_4 = arith.constant 9.99999974E-6 : f32
    %12 = vector.broadcast %cst_4 : f32 to vector<16x1xf32>
    %13 = arith.addf %11, %12 : vector<16x1xf32>
    %14 = math.rsqrt %13 : vector<16x1xf32>
    %15 = vector.broadcast %14 : vector<16x1xf32> to vector<16x32xf32>
    %16 = arith.mulf %6, %15 : vector<16x32xf32>
    %c0_5 = arith.constant 0 : index
    %c0_6 = arith.constant 0 : index
    %17 = vector.load %arg2[%c0_5, %c0_6] : memref<1x32xf32, #tpu.memory_space<vmem>>, vector<1x32xf32>
    %18 = vector.broadcast %17 : vector<1x32xf32> to vector<16x32xf32>
    %19 = arith.mulf %16, %18 : vector<16x32xf32>
    %c0_7 = arith.constant 0 : index
    %c0_8 = arith.constant 0 : index
    %20 = vector.load %arg3[%c0_7, %c0_8] : memref<1x32xf32, #tpu.memory_space<vmem>>, vector<1x32xf32>
    %21 = vector.broadcast %20 : vector<1x32xf32> to vector<16x32xf32>
    %22 = arith.addf %19, %21 : vector<16x32xf32>
    %c0_9 = arith.constant 0 : index
    %c0_10 = arith.constant 0 : index
    %23 = vector.load %arg4[%c0_9, %c0_10] : memref<16x32xf32, #tpu.memory_space<vmem>>, vector<16x32xf32>
    tpu.vector_store %arg4[%c0_9, %c0_10], %22 {strides = array<i32>} : memref<16x32xf32, #tpu.memory_space<vmem>>, vector<16x32xf32>,
    return
  }
  func.func @transform_0(%arg0: i32) -> (i32, i32) {
    %c0_i32 = arith.constant 0 : i32
    %c0_i32_0 = arith.constant 0 : i32
    return %arg0, %c0_i32 : i32, i32
  }
  func.func @transform_1(%arg0: i32) -> (i32, i32) {
    %c0_i32 = arith.constant 0 : i32
    %c0_i32_0 = arith.constant 0 : i32
    %c0_i32_1 = arith.constant 0 : i32
    return %c0_i32, %c0_i32_0 : i32, i32
  }
  func.func @transform_2(%arg0: i32) -> (i32, i32) {
    %c0_i32 = arith.constant 0 : i32
    %c0_i32_0 = arith.constant 0 : i32
    %c0_i32_1 = arith.constant 0 : i32
    return %c0_i32, %c0_i32_0 : i32, i32
  }
  func.func @transform_3(%arg0: i32) -> (i32, i32) {
    %c0_i32 = arith.constant 0 : i32
    %c0_i32_0 = arith.constant 0 : i32
    return %arg0, %c0_i32 : i32, i32
  }
}

module attributes {stable_mosaic.version = 11 : i64} {
  func.func @_linear_kernel(%arg0: i32, %arg1: memref<16x32xf32, #tpu.memory_space<vmem>>, %arg2: memref<32x168xbf16, #tpu.memory_space<vmem>>, %arg3: memref<1x168xf32, #tpu.memory_space<vmem>>, %arg4: memref<16x168xf32, #tpu.memory_space<vmem>>) attributes {dimension_semantics = [#tpu.dimension_semantics<parallel>], iteration_bounds = array<i64: 1>, scalar_prefetch = 0 : i64, scratch_operands = 0 : i64, tpu.core_type = #tpu.core_type<tc>, window_params = [{transform_indices = @transform_0, window_bounds = array<i64: 16, 32>}, {pipeline_mode = #tpu.pipeline_mode<synchronous>, transform_indices = @transform_1, window_bounds = array<i64: 32, 168>}, {pipeline_mode = #tpu.pipeline_mode<synchronous>, transform_indices = @transform_2, window_bounds = array<i64: 1, 168>}, {transform_indices = @transform_3, window_bounds = array<i64: 16, 168>}]} {
    %c0 = arith.constant 0 : index
    %c0_0 = arith.constant 0 : index
    %0 = vector.load %arg1[%c0, %c0_0] : memref<16x32xf32, #tpu.memory_space<vmem>>, vector<16x32xf32>
    %1 = arith.truncf %0 : vector<16x32xf32> to vector<16x32xbf16>
    %c0_1 = arith.constant 0 : index
    %c0_2 = arith.constant 0 : index
    %2 = vector.load %arg2[%c0_1, %c0_2] : memref<32x168xbf16, #tpu.memory_space<vmem>>, vector<32x168xbf16>
    %cst = arith.constant dense<0.000000e+00> : vector<16x168xf32>
    %3 = tpu.matmul %1, %2, %cst {dimension_numbers = #tpu.dot_dimension_numbers<[1], [0], [0], [1], [0, 0, 1, 1], [], []>} : vector<16x32xbf16>, vector<32x168xbf16>, vector<16x168xf32> -> vector<16x168xf32>
    %c0_3 = arith.constant 0 : index
    %c0_4 = arith.constant 0 : index
    %4 = vector.load %arg3[%c0_3, %c0_4] : memref<1x168xf32, #tpu.memory_space<vmem>>, vector<1x168xf32>
    %5 = vector.broadcast %4 : vector<1x168xf32> to vector<16x168xf32>
    %6 = arith.addf %3, %5 : vector<16x168xf32>
    %c0_5 = arith.constant 0 : index
    %c0_6 = arith.constant 0 : index
    %7 = vector.load %arg4[%c0_5, %c0_6] : memref<16x168xf32, #tpu.memory_space<vmem>>, vector<16x168xf32>
    tpu.vector_store %arg4[%c0_5, %c0_6], %6 {strides = array<i32>} : memref<16x168xf32, #tpu.memory_space<vmem>>, vector<16x168xf32>,
    return
  }
  func.func @transform_0(%arg0: i32) -> (i32, i32) {
    %c0_i32 = arith.constant 0 : i32
    %c0_i32_0 = arith.constant 0 : i32
    return %arg0, %c0_i32 : i32, i32
  }
  func.func @transform_1(%arg0: i32) -> (i32, i32) {
    %c0_i32 = arith.constant 0 : i32
    %c0_i32_0 = arith.constant 0 : i32
    %c0_i32_1 = arith.constant 0 : i32
    return %c0_i32, %c0_i32_0 : i32, i32
  }
  func.func @transform_2(%arg0: i32) -> (i32, i32) {
    %c0_i32 = arith.constant 0 : i32
    %c0_i32_0 = arith.constant 0 : i32
    %c0_i32_1 = arith.constant 0 : i32
    return %c0_i32, %c0_i32_0 : i32, i32
  }
  func.func @transform_3(%arg0: i32) -> (i32, i32) {
    %c0_i32 = arith.constant 0 : i32
    %c0_i32_0 = arith.constant 0 : i32
    return %arg0, %c0_i32 : i32, i32
  }
}

module attributes {stable_mosaic.version = 11 : i64} {
  func.func @_linear_kernel(%arg0: i32, %arg1: memref<128x16xf32, #tpu.memory_space<vmem>>, %arg2: memref<16x2xbf16, #tpu.memory_space<vmem>>, %arg3: memref<1x2xf32, #tpu.memory_space<vmem>>, %arg4: memref<128x2xf32, #tpu.memory_space<vmem>>) attributes {dimension_semantics = [#tpu.dimension_semantics<parallel>], iteration_bounds = array<i64: 1>, scalar_prefetch = 0 : i64, scratch_operands = 0 : i64, tpu.core_type = #tpu.core_type<tc>, window_params = [{transform_indices = @transform_0, window_bounds = array<i64: 128, 16>}, {pipeline_mode = #tpu.pipeline_mode<synchronous>, transform_indices = @transform_1, window_bounds = array<i64: 16, 2>}, {pipeline_mode = #tpu.pipeline_mode<synchronous>, transform_indices = @transform_2, window_bounds = array<i64: 1, 2>}, {transform_indices = @transform_3, window_bounds = array<i64: 128, 2>}]} {
    %c0 = arith.constant 0 : index
    %c0_0 = arith.constant 0 : index
    %0 = vector.load %arg1[%c0, %c0_0] : memref<128x16xf32, #tpu.memory_space<vmem>>, vector<128x16xf32>
    %1 = arith.truncf %0 : vector<128x16xf32> to vector<128x16xbf16>
    %c0_1 = arith.constant 0 : index
    %c0_2 = arith.constant 0 : index
    %2 = vector.load %arg2[%c0_1, %c0_2] : memref<16x2xbf16, #tpu.memory_space<vmem>>, vector<16x2xbf16>
    %cst = arith.constant dense<0.000000e+00> : vector<128x2xf32>
    %3 = tpu.matmul %1, %2, %cst {dimension_numbers = #tpu.dot_dimension_numbers<[1], [0], [0], [1], [0, 0, 1, 1], [], []>} : vector<128x16xbf16>, vector<16x2xbf16>, vector<128x2xf32> -> vector<128x2xf32>
    %c0_3 = arith.constant 0 : index
    %c0_4 = arith.constant 0 : index
    %4 = vector.load %arg3[%c0_3, %c0_4] : memref<1x2xf32, #tpu.memory_space<vmem>>, vector<1x2xf32>
    %5 = vector.broadcast %4 : vector<1x2xf32> to vector<128x2xf32>
    %6 = arith.addf %3, %5 : vector<128x2xf32>
    %c0_5 = arith.constant 0 : index
    %c0_6 = arith.constant 0 : index
    %7 = vector.load %arg4[%c0_5, %c0_6] : memref<128x2xf32, #tpu.memory_space<vmem>>, vector<128x2xf32>
    tpu.vector_store %arg4[%c0_5, %c0_6], %6 {strides = array<i32>} : memref<128x2xf32, #tpu.memory_space<vmem>>, vector<128x2xf32>,
    return
  }
  func.func @transform_0(%arg0: i32) -> (i32, i32) {
    %c0_i32 = arith.constant 0 : i32
    %c0_i32_0 = arith.constant 0 : i32
    return %arg0, %c0_i32 : i32, i32
  }
  func.func @transform_1(%arg0: i32) -> (i32, i32) {
    %c0_i32 = arith.constant 0 : i32
    %c0_i32_0 = arith.constant 0 : i32
    %c0_i32_1 = arith.constant 0 : i32
    return %c0_i32, %c0_i32_0 : i32, i32
  }
  func.func @transform_2(%arg0: i32) -> (i32, i32) {
    %c0_i32 = arith.constant 0 : i32
    %c0_i32_0 = arith.constant 0 : i32
    %c0_i32_1 = arith.constant 0 : i32
    return %c0_i32, %c0_i32_0 : i32, i32
  }
  func.func @transform_3(%arg0: i32) -> (i32, i32) {
    %c0_i32 = arith.constant 0 : i32
    %c0_i32_0 = arith.constant 0 : i32
    return %arg0, %c0_i32 : i32, i32
  }
}

module attributes {stable_mosaic.version = 11 : i64} {
  func.func @_layernorm_kernel(%arg0: i32, %arg1: memref<128x16xf32, #tpu.memory_space<vmem>>, %arg2: memref<1x16xf32, #tpu.memory_space<vmem>>, %arg3: memref<1x16xf32, #tpu.memory_space<vmem>>, %arg4: memref<128x16xf32, #tpu.memory_space<vmem>>) attributes {dimension_semantics = [#tpu.dimension_semantics<parallel>], iteration_bounds = array<i64: 1>, scalar_prefetch = 0 : i64, scratch_operands = 0 : i64, tpu.core_type = #tpu.core_type<tc>, window_params = [{transform_indices = @transform_0, window_bounds = array<i64: 128, 16>}, {pipeline_mode = #tpu.pipeline_mode<synchronous>, transform_indices = @transform_1, window_bounds = array<i64: 1, 16>}, {pipeline_mode = #tpu.pipeline_mode<synchronous>, transform_indices = @transform_2, window_bounds = array<i64: 1, 16>}, {transform_indices = @transform_3, window_bounds = array<i64: 128, 16>}]} {
    %c0 = arith.constant 0 : index
    %c0_0 = arith.constant 0 : index
    %0 = vector.load %arg1[%c0, %c0_0] : memref<128x16xf32, #tpu.memory_space<vmem>>, vector<128x16xf32>
    %cst = arith.constant dense<0.000000e+00> : vector<128xf32>
    %1 = vector.multi_reduction <add>, %0, %cst [1] : vector<128x16xf32> to vector<128xf32>
    %2 = vector.shape_cast %1 : vector<128xf32> to vector<128x1xf32>
    %cst_1 = arith.constant 1.600000e+01 : f32
    %3 = vector.broadcast %cst_1 : f32 to vector<128x1xf32>
    %4 = arith.divf %2, %3 : vector<128x1xf32>
    %5 = vector.broadcast %4 : vector<128x1xf32> to vector<128x16xf32>
    %6 = arith.subf %0, %5 : vector<128x16xf32>
    %7 = arith.mulf %6, %6 : vector<128x16xf32>
    %cst_2 = arith.constant dense<0.000000e+00> : vector<128xf32>
    %8 = vector.multi_reduction <add>, %7, %cst_2 [1] : vector<128x16xf32> to vector<128xf32>
    %9 = vector.shape_cast %8 : vector<128xf32> to vector<128x1xf32>
    %cst_3 = arith.constant 1.600000e+01 : f32
    %10 = vector.broadcast %cst_3 : f32 to vector<128x1xf32>
    %11 = arith.divf %9, %10 : vector<128x1xf32>
    %cst_4 = arith.constant 9.99999974E-6 : f32
    %12 = vector.broadcast %cst_4 : f32 to vector<128x1xf32>
    %13 = arith.addf %11, %12 : vector<128x1xf32>
    %14 = math.rsqrt %13 : vector<128x1xf32>
    %15 = vector.broadcast %14 : vector<128x1xf32> to vector<128x16xf32>
    %16 = arith.mulf %6, %15 : vector<128x16xf32>
    %c0_5 = arith.constant 0 : index
    %c0_6 = arith.constant 0 : index
    %17 = vector.load %arg2[%c0_5, %c0_6] : memref<1x16xf32, #tpu.memory_space<vmem>>, vector<1x16xf32>
    %18 = vector.broadcast %17 : vector<1x16xf32> to vector<128x16xf32>
    %19 = arith.mulf %16, %18 : vector<128x16xf32>
    %c0_7 = arith.constant 0 : index
    %c0_8 = arith.constant 0 : index
    %20 = vector.load %arg3[%c0_7, %c0_8] : memref<1x16xf32, #tpu.memory_space<vmem>>, vector<1x16xf32>
    %21 = vector.broadcast %20 : vector<1x16xf32> to vector<128x16xf32>
    %22 = arith.addf %19, %21 : vector<128x16xf32>
    %c0_9 = arith.constant 0 : index
    %c0_10 = arith.constant 0 : index
    %23 = vector.load %arg4[%c0_9, %c0_10] : memref<128x16xf32, #tpu.memory_space<vmem>>, vector<128x16xf32>
    tpu.vector_store %arg4[%c0_9, %c0_10], %22 {strides = array<i32>} : memref<128x16xf32, #tpu.memory_space<vmem>>, vector<128x16xf32>,
    return
  }
  func.func @transform_0(%arg0: i32) -> (i32, i32) {
    %c0_i32 = arith.constant 0 : i32
    %c0_i32_0 = arith.constant 0 : i32
    return %arg0, %c0_i32 : i32, i32
  }
  func.func @transform_1(%arg0: i32) -> (i32, i32) {
    %c0_i32 = arith.constant 0 : i32
    %c0_i32_0 = arith.constant 0 : i32
    %c0_i32_1 = arith.constant 0 : i32
    return %c0_i32, %c0_i32_0 : i32, i32
  }
  func.func @transform_2(%arg0: i32) -> (i32, i32) {
    %c0_i32 = arith.constant 0 : i32
    %c0_i32_0 = arith.constant 0 : i32
    %c0_i32_1 = arith.constant 0 : i32
    return %c0_i32, %c0_i32_0 : i32, i32
  }
  func.func @transform_3(%arg0: i32) -> (i32, i32) {
    %c0_i32 = arith.constant 0 : i32
    %c0_i32_0 = arith.constant 0 : i32
    return %arg0, %c0_i32 : i32, i32
  }
}

module attributes {stable_mosaic.version = 11 : i64} {
  func.func @_ipa_attn_kernel(%arg0: i32, %arg1: i32, %arg2: memref<1x1x8x16xf32, #tpu.memory_space<vmem>>, %arg3: memref<1x1x8x16xf32, #tpu.memory_space<vmem>>, %arg4: memref<1x1x8x16xf32, #tpu.memory_space<vmem>>, %arg5: memref<1x1x8x12xf32, #tpu.memory_space<vmem>>, %arg6: memref<1x1x8x12xf32, #tpu.memory_space<vmem>>, %arg7: memref<1x1x8x12xf32, #tpu.memory_space<vmem>>, %arg8: memref<1x1x8x8xf32, #tpu.memory_space<vmem>>, %arg9: memref<1x1x8xf32, #tpu.memory_space<vmem>>, %arg10: memref<1x8x1xf32, #tpu.memory_space<vmem>>, %arg11: memref<1x1x8x28xf32, #tpu.memory_space<vmem>>, %arg12: memref<1x1x8x8xbf16, #tpu.memory_space<vmem>>) attributes {dimension_semantics = [#tpu.dimension_semantics<parallel>, #tpu.dimension_semantics<parallel>], iteration_bounds = array<i64: 2, 2>, scalar_prefetch = 0 : i64, scratch_operands = 0 : i64, tpu.core_type = #tpu.core_type<tc>, window_params = [{transform_indices = @transform_0, window_bounds = array<i64: 1, 1, 8, 16>}, {transform_indices = @transform_1, window_bounds = array<i64: 1, 1, 8, 16>}, {transform_indices = @transform_2, window_bounds = array<i64: 1, 1, 8, 16>}, {transform_indices = @transform_3, window_bounds = array<i64: 1, 1, 8, 12>}, {transform_indices = @transform_4, window_bounds = array<i64: 1, 1, 8, 12>}, {transform_indices = @transform_5, window_bounds = array<i64: 1, 1, 8, 12>}, {transform_indices = @transform_6, window_bounds = array<i64: 1, 1, 8, 8>}, {transform_indices = @transform_7, window_bounds = array<i64: 1, 1, 8>}, {transform_indices = @transform_8, window_bounds = array<i64: 1, 8, 1>}, {transform_indices = @transform_9, window_bounds = array<i64: 1, 1, 8, 28>}, {transform_indices = @transform_10, window_bounds = array<i64: 1, 1, 8, 8>}]} {
    %c0 = arith.constant 0 : index
    %c0_0 = arith.constant 0 : index
    %c0_1 = arith.constant 0 : index
    %c0_2 = arith.constant 0 : index
    %0 = vector.load %arg2[%c0, %c0_0, %c0_1, %c0_2] : memref<1x1x8x16xf32, #tpu.memory_space<vmem>>, vector<1x1x8x16xf32>
    %1 = vector.shape_cast %0 : vector<1x1x8x16xf32> to vector<8x16xf32>
    %c0_3 = arith.constant 0 : index
    %c0_4 = arith.constant 0 : index
    %c0_5 = arith.constant 0 : index
    %c0_6 = arith.constant 0 : index
    %2 = vector.load %arg3[%c0_3, %c0_4, %c0_5, %c0_6] : memref<1x1x8x16xf32, #tpu.memory_space<vmem>>, vector<1x1x8x16xf32>
    %3 = vector.shape_cast %2 : vector<1x1x8x16xf32> to vector<8x16xf32>
    %c0_7 = arith.constant 0 : index
    %c0_8 = arith.constant 0 : index
    %c0_9 = arith.constant 0 : index
    %c0_10 = arith.constant 0 : index
    %4 = vector.load %arg4[%c0_7, %c0_8, %c0_9, %c0_10] : memref<1x1x8x16xf32, #tpu.memory_space<vmem>>, vector<1x1x8x16xf32>
    %5 = vector.shape_cast %4 : vector<1x1x8x16xf32> to vector<8x16xf32>
    %6 = arith.truncf %5 : vector<8x16xf32> to vector<8x16xbf16>
    %c0_11 = arith.constant 0 : index
    %c0_12 = arith.constant 0 : index
    %c0_13 = arith.constant 0 : index
    %c0_14 = arith.constant 0 : index
    %7 = vector.load %arg5[%c0_11, %c0_12, %c0_13, %c0_14] : memref<1x1x8x12xf32, #tpu.memory_space<vmem>>, vector<1x1x8x12xf32>
    %8 = vector.shape_cast %7 : vector<1x1x8x12xf32> to vector<8x12xf32>
    %c0_15 = arith.constant 0 : index
    %c0_16 = arith.constant 0 : index
    %c0_17 = arith.constant 0 : index
    %c0_18 = arith.constant 0 : index
    %9 = vector.load %arg6[%c0_15, %c0_16, %c0_17, %c0_18] : memref<1x1x8x12xf32, #tpu.memory_space<vmem>>, vector<1x1x8x12xf32>
    %10 = vector.shape_cast %9 : vector<1x1x8x12xf32> to vector<8x12xf32>
    %c0_19 = arith.constant 0 : index
    %c0_20 = arith.constant 0 : index
    %c0_21 = arith.constant 0 : index
    %c0_22 = arith.constant 0 : index
    %11 = vector.load %arg7[%c0_19, %c0_20, %c0_21, %c0_22] : memref<1x1x8x12xf32, #tpu.memory_space<vmem>>, vector<1x1x8x12xf32>
    %12 = vector.shape_cast %11 : vector<1x1x8x12xf32> to vector<8x12xf32>
    %13 = arith.truncf %12 : vector<8x12xf32> to vector<8x12xbf16>
    %c0_23 = arith.constant 0 : index
    %c0_24 = arith.constant 0 : index
    %c0_25 = arith.constant 0 : index
    %c0_26 = arith.constant 0 : index
    %14 = vector.load %arg8[%c0_23, %c0_24, %c0_25, %c0_26] : memref<1x1x8x8xf32, #tpu.memory_space<vmem>>, vector<1x1x8x8xf32>
    %15 = vector.shape_cast %14 : vector<1x1x8x8xf32> to vector<8x8xf32>
    %c0_27 = arith.constant 0 : index
    %c0_28 = arith.constant 0 : index
    %c0_29 = arith.constant 0 : index
    %16 = vector.load %arg9[%c0_27, %c0_28, %c0_29] : memref<1x1x8xf32, #tpu.memory_space<vmem>>, vector<1x1x8xf32>
    %17 = vector.shape_cast %16 : vector<1x1x8xf32> to vector<1x8xf32>
    %c0_30 = arith.constant 0 : index
    %c0_31 = arith.constant 0 : index
    %c0_32 = arith.constant 0 : index
    %18 = vector.load %arg10[%c0_30, %c0_31, %c0_32] : memref<1x8x1xf32, #tpu.memory_space<vmem>>, vector<1x8x1xf32>
    %19 = vector.shape_cast %18 : vector<1x8x1xf32> to vector<8x1xf32>
    %cst = arith.constant 1.41421354 : f32
    %20 = vector.broadcast %cst : f32 to vector<8x12xf32>
    %21 = arith.mulf %20, %8 : vector<8x12xf32>
    %22 = tpu.concatenate %1, %21 in 1 : vector<8x16xf32>, vector<8x12xf32> -> vector<8x28xf32>
    %23 = arith.truncf %22 : vector<8x28xf32> to vector<8x28xbf16>
    %cst_33 = arith.constant 1.41421354 : f32
    %24 = vector.broadcast %cst_33 : f32 to vector<8x12xf32>
    %25 = arith.mulf %24, %10 : vector<8x12xf32>
    %26 = tpu.concatenate %3, %25 in 1 : vector<8x16xf32>, vector<8x12xf32> -> vector<8x28xf32>
    %27 = arith.truncf %26 : vector<8x28xf32> to vector<8x28xbf16>
    %cst_34 = arith.constant dense<0.000000e+00> : vector<8x8xf32>
    %28 = tpu.matmul %23, %27, %cst_34 {dimension_numbers = #tpu.dot_dimension_numbers<[1], [1], [0], [0], [0, 0, 1, 0], [], []>} : vector<8x28xbf16>, vector<8x28xbf16>, vector<8x8xf32> -> vector<8x8xf32>
    %29 = arith.mulf %8, %8 : vector<8x12xf32>
    %cst_35 = arith.constant dense<0.000000e+00> : vector<8xf32>
    %30 = vector.multi_reduction <add>, %29, %cst_35 [1] : vector<8x12xf32> to vector<8xf32>
    %31 = vector.shape_cast %30 : vector<8xf32> to vector<8x1xf32>
    %32 = arith.mulf %10, %10 : vector<8x12xf32>
    %cst_36 = arith.constant dense<0.000000e+00> : vector<8xf32>
    %33 = vector.multi_reduction <add>, %32, %cst_36 [1] : vector<8x12xf32> to vector<8xf32>
    %34 = vector.shape_cast %33 : vector<8xf32> to vector<8x1xf32>
    %35 = arith.addf %28, %15 : vector<8x8xf32>
    %36 = vector.broadcast %31 : vector<8x1xf32> to vector<8x8xf32>
    %37 = arith.subf %35, %36 : vector<8x8xf32>
    %38 = tpu.transpose %34, [1, 0] : vector<8x1xf32> -> vector<1x8xf32>
    %39 = vector.broadcast %38 : vector<1x8xf32> to vector<8x8xf32>
    %40 = arith.subf %37, %39 : vector<8x8xf32>
    %41 = vector.broadcast %19 : vector<8x1xf32> to vector<8x8xf32>
    %42 = vector.broadcast %17 : vector<1x8xf32> to vector<8x8xf32>
    %43 = arith.mulf %41, %42 : vector<8x8xf32>
    %cst_37 = arith.constant 0.000000e+00 : f32
    %44 = vector.broadcast %cst_37 : f32 to vector<8x8xf32>
    %45 = arith.cmpf ogt, %43, %44 : vector<8x8xf32>
    %cst_38 = arith.constant -1.000000e+09 : f32
    %46 = vector.broadcast %cst_38 : f32 to vector<8x8xf32>
    %47 = arith.select %45, %40, %46 : vector<8x8xi1>, vector<8x8xf32>
    %cst_39 = arith.constant dense<0xFF800000> : vector<8xf32>
    %48 = vector.multi_reduction <maximumf>, %47, %cst_39 [1] : vector<8x8xf32> to vector<8xf32>
    %49 = vector.shape_cast %48 : vector<8xf32> to vector<8x1xf32>
    %50 = vector.broadcast %49 : vector<8x1xf32> to vector<8x8xf32>
    %51 = arith.subf %47, %50 : vector<8x8xf32>
    %52 = math.exp %51 : vector<8x8xf32>
    %cst_40 = arith.constant dense<0.000000e+00> : vector<8xf32>
    %53 = vector.multi_reduction <add>, %52, %cst_40 [1] : vector<8x8xf32> to vector<8xf32>
    %54 = vector.shape_cast %53 : vector<8xf32> to vector<8x1xf32>
    %55 = tpu.reciprocal %54 : vector<8x1xf32> -> vector<8x1xf32>
    %56 = vector.broadcast %55 : vector<8x1xf32> to vector<8x8xf32>
    %57 = arith.mulf %52, %56 : vector<8x8xf32>
    %58 = arith.truncf %57 : vector<8x8xf32> to vector<8x8xbf16>
    %cst_41 = arith.constant dense<0.000000e+00> : vector<8x16xf32>
    %59 = tpu.matmul %58, %6, %cst_41 {dimension_numbers = #tpu.dot_dimension_numbers<[1], [0], [0], [1], [0, 0, 1, 1], [], []>} : vector<8x8xbf16>, vector<8x16xbf16>, vector<8x16xf32> -> vector<8x16xf32>
    %cst_42 = arith.constant dense<0.000000e+00> : vector<8x12xf32>
    %60 = tpu.matmul %58, %13, %cst_42 {dimension_numbers = #tpu.dot_dimension_numbers<[1], [0], [0], [1], [0, 0, 1, 1], [], []>} : vector<8x8xbf16>, vector<8x12xbf16>, vector<8x12xf32> -> vector<8x12xf32>
    %61 = tpu.concatenate %59, %60 in 1 : vector<8x16xf32>, vector<8x12xf32> -> vector<8x28xf32>
    %c0_43 = arith.constant 0 : index
    %c0_44 = arith.constant 0 : index
    %c0_45 = arith.constant 0 : index
    %c0_46 = arith.constant 0 : index
    %62 = vector.load %arg11[%c0_43, %c0_44, %c0_45, %c0_46] : memref<1x1x8x28xf32, #tpu.memory_space<vmem>>, vector<1x1x8x28xf32>
    %63 = vector.shape_cast %62 : vector<1x1x8x28xf32> to vector<8x28xf32>
    %64 = vector.shape_cast %61 : vector<8x28xf32> to vector<1x1x8x28xf32>
    tpu.vector_store %arg11[%c0_43, %c0_44, %c0_45, %c0_46], %64 {strides = array<i32>} : memref<1x1x8x28xf32, #tpu.memory_space<vmem>>, vector<1x1x8x28xf32>,
    %c0_47 = arith.constant 0 : index
    %c0_48 = arith.constant 0 : index
    %c0_49 = arith.constant 0 : index
    %c0_50 = arith.constant 0 : index
    %65 = vector.load %arg12[%c0_47, %c0_48, %c0_49, %c0_50] : memref<1x1x8x8xbf16, #tpu.memory_space<vmem>>, vector<1x1x8x8xbf16>
    %66 = vector.shape_cast %65 : vector<1x1x8x8xbf16> to vector<8x8xbf16>
    %67 = vector.shape_cast %58 : vector<8x8xbf16> to vector<1x1x8x8xbf16>
    tpu.vector_store %arg12[%c0_47, %c0_48, %c0_49, %c0_50], %67 {strides = array<i32>} : memref<1x1x8x8xbf16, #tpu.memory_space<vmem>>, vector<1x1x8x8xbf16>,
    return
  }
  func.func @transform_0(%arg0: i32, %arg1: i32) -> (i32, i32, i32, i32) {
    %c0_i32 = arith.constant 0 : i32
    %c0_i32_0 = arith.constant 0 : i32
    %c0_i32_1 = arith.constant 0 : i32
    return %arg0, %arg1, %c0_i32, %c0_i32_0 : i32, i32, i32, i32
  }
  func.func @transform_1(%arg0: i32, %arg1: i32) -> (i32, i32, i32, i32) {
    %c0_i32 = arith.constant 0 : i32
    %c0_i32_0 = arith.constant 0 : i32
    %c0_i32_1 = arith.constant 0 : i32
    return %arg0, %arg1, %c0_i32, %c0_i32_0 : i32, i32, i32, i32
  }
  func.func @transform_2(%arg0: i32, %arg1: i32) -> (i32, i32, i32, i32) {
    %c0_i32 = arith.constant 0 : i32
    %c0_i32_0 = arith.constant 0 : i32
    %c0_i32_1 = arith.constant 0 : i32
    return %arg0, %arg1, %c0_i32, %c0_i32_0 : i32, i32, i32, i32
  }
  func.func @transform_3(%arg0: i32, %arg1: i32) -> (i32, i32, i32, i32) {
    %c0_i32 = arith.constant 0 : i32
    %c0_i32_0 = arith.constant 0 : i32
    %c0_i32_1 = arith.constant 0 : i32
    return %arg0, %arg1, %c0_i32, %c0_i32_0 : i32, i32, i32, i32
  }
  func.func @transform_4(%arg0: i32, %arg1: i32) -> (i32, i32, i32, i32) {
    %c0_i32 = arith.constant 0 : i32
    %c0_i32_0 = arith.constant 0 : i32
    %c0_i32_1 = arith.constant 0 : i32
    return %arg0, %arg1, %c0_i32, %c0_i32_0 : i32, i32, i32, i32
  }
  func.func @transform_5(%arg0: i32, %arg1: i32) -> (i32, i32, i32, i32) {
    %c0_i32 = arith.constant 0 : i32
    %c0_i32_0 = arith.constant 0 : i32
    %c0_i32_1 = arith.constant 0 : i32
    return %arg0, %arg1, %c0_i32, %c0_i32_0 : i32, i32, i32, i32
  }
  func.func @transform_6(%arg0: i32, %arg1: i32) -> (i32, i32, i32, i32) {
    %c0_i32 = arith.constant 0 : i32
    %c0_i32_0 = arith.constant 0 : i32
    %c0_i32_1 = arith.constant 0 : i32
    return %arg0, %arg1, %c0_i32, %c0_i32_0 : i32, i32, i32, i32
  }
  func.func @transform_7(%arg0: i32, %arg1: i32) -> (i32, i32, i32) {
    %c0_i32 = arith.constant 0 : i32
    %c0_i32_0 = arith.constant 0 : i32
    %c0_i32_1 = arith.constant 0 : i32
    return %arg0, %c0_i32, %c0_i32_0 : i32, i32, i32
  }
  func.func @transform_8(%arg0: i32, %arg1: i32) -> (i32, i32, i32) {
    %c0_i32 = arith.constant 0 : i32
    %c0_i32_0 = arith.constant 0 : i32
    %c0_i32_1 = arith.constant 0 : i32
    return %arg0, %c0_i32, %c0_i32_0 : i32, i32, i32
  }
  func.func @transform_9(%arg0: i32, %arg1: i32) -> (i32, i32, i32, i32) {
    %c0_i32 = arith.constant 0 : i32
    %c0_i32_0 = arith.constant 0 : i32
    %c0_i32_1 = arith.constant 0 : i32
    return %arg0, %arg1, %c0_i32, %c0_i32_0 : i32, i32, i32, i32
  }
  func.func @transform_10(%arg0: i32, %arg1: i32) -> (i32, i32, i32, i32) {
    %c0_i32 = arith.constant 0 : i32
    %c0_i32_0 = arith.constant 0 : i32
    %c0_i32_1 = arith.constant 0 : i32
    return %arg0, %arg1, %c0_i32, %c0_i32_0 : i32, i32, i32, i32
  }
}

module attributes {stable_mosaic.version = 11 : i64} {
  func.func @_ipa_post_kernel(%arg0: i32, %arg1: memref<16x32xf32, #tpu.memory_space<vmem>>, %arg2: memref<1x32xf32, #tpu.memory_space<vmem>>, %arg3: memref<1x32xf32, #tpu.memory_space<vmem>>, %arg4: memref<32x32xbf16, #tpu.memory_space<vmem>>, %arg5: memref<1x32xf32, #tpu.memory_space<vmem>>, %arg6: memref<32x32xbf16, #tpu.memory_space<vmem>>, %arg7: memref<1x32xf32, #tpu.memory_space<vmem>>, %arg8: memref<32x32xbf16, #tpu.memory_space<vmem>>, %arg9: memref<1x32xf32, #tpu.memory_space<vmem>>, %arg10: memref<1x32xf32, #tpu.memory_space<vmem>>, %arg11: memref<1x32xf32, #tpu.memory_space<vmem>>, %arg12: memref<16x32xf32, #tpu.memory_space<vmem>>) attributes {dimension_semantics = [#tpu.dimension_semantics<parallel>], iteration_bounds = array<i64: 1>, scalar_prefetch = 0 : i64, scratch_operands = 0 : i64, tpu.core_type = #tpu.core_type<tc>, window_params = [{transform_indices = @transform_0, window_bounds = array<i64: 16, 32>}, {pipeline_mode = #tpu.pipeline_mode<synchronous>, transform_indices = @transform_1, window_bounds = array<i64: 1, 32>}, {pipeline_mode = #tpu.pipeline_mode<synchronous>, transform_indices = @transform_2, window_bounds = array<i64: 1, 32>}, {pipeline_mode = #tpu.pipeline_mode<synchronous>, transform_indices = @transform_3, window_bounds = array<i64: 32, 32>}, {pipeline_mode = #tpu.pipeline_mode<synchronous>, transform_indices = @transform_4, window_bounds = array<i64: 1, 32>}, {pipeline_mode = #tpu.pipeline_mode<synchronous>, transform_indices = @transform_5, window_bounds = array<i64: 32, 32>}, {pipeline_mode = #tpu.pipeline_mode<synchronous>, transform_indices = @transform_6, window_bounds = array<i64: 1, 32>}, {pipeline_mode = #tpu.pipeline_mode<synchronous>, transform_indices = @transform_7, window_bounds = array<i64: 32, 32>}, {pipeline_mode = #tpu.pipeline_mode<synchronous>, transform_indices = @transform_8, window_bounds = array<i64: 1, 32>}, {pipeline_mode = #tpu.pipeline_mode<synchronous>, transform_indices = @transform_9, window_bounds = array<i64: 1, 32>}, {pipeline_mode = #tpu.pipeline_mode<synchronous>, transform_indices = @transform_10, window_bounds = array<i64: 1, 32>}, {transform_indices = @transform_11, window_bounds = array<i64: 16, 32>}]} {
    %c0 = arith.constant 0 : index
    %c0_0 = arith.constant 0 : index
    %0 = vector.load %arg1[%c0, %c0_0] : memref<16x32xf32, #tpu.memory_space<vmem>>, vector<16x32xf32>
    %c0_1 = arith.constant 0 : index
    %c0_2 = arith.constant 0 : index
    %1 = vector.load %arg2[%c0_1, %c0_2] : memref<1x32xf32, #tpu.memory_space<vmem>>, vector<1x32xf32>
    %c0_3 = arith.constant 0 : index
    %c0_4 = arith.constant 0 : index
    %2 = vector.load %arg3[%c0_3, %c0_4] : memref<1x32xf32, #tpu.memory_space<vmem>>, vector<1x32xf32>
    %cst = arith.constant dense<0.000000e+00> : vector<16xf32>
    %3 = vector.multi_reduction <add>, %0, %cst [1] : vector<16x32xf32> to vector<16xf32>
    %4 = vector.shape_cast %3 : vector<16xf32> to vector<16x1xf32>
    %cst_5 = arith.constant 3.200000e+01 : f32
    %5 = vector.broadcast %cst_5 : f32 to vector<16x1xf32>
    %6 = arith.divf %4, %5 : vector<16x1xf32>
    %7 = vector.broadcast %6 : vector<16x1xf32> to vector<16x32xf32>
    %8 = arith.subf %0, %7 : vector<16x32xf32>
    %9 = arith.mulf %8, %8 : vector<16x32xf32>
    %cst_6 = arith.constant dense<0.000000e+00> : vector<16xf32>
    %10 = vector.multi_reduction <add>, %9, %cst_6 [1] : vector<16x32xf32> to vector<16xf32>
    %11 = vector.shape_cast %10 : vector<16xf32> to vector<16x1xf32>
    %cst_7 = arith.constant 3.200000e+01 : f32
    %12 = vector.broadcast %cst_7 : f32 to vector<16x1xf32>
    %13 = arith.divf %11, %12 : vector<16x1xf32>
    %cst_8 = arith.constant 9.99999974E-6 : f32
    %14 = vector.broadcast %cst_8 : f32 to vector<16x1xf32>
    %15 = arith.addf %13, %14 : vector<16x1xf32>
    %16 = math.rsqrt %15 : vector<16x1xf32>
    %17 = vector.broadcast %16 : vector<16x1xf32> to vector<16x32xf32>
    %18 = arith.mulf %8, %17 : vector<16x32xf32>
    %19 = vector.broadcast %1 : vector<1x32xf32> to vector<16x32xf32>
    %20 = arith.mulf %18, %19 : vector<16x32xf32>
    %21 = vector.broadcast %2 : vector<1x32xf32> to vector<16x32xf32>
    %22 = arith.addf %20, %21 : vector<16x32xf32>
    %23 = arith.truncf %22 : vector<16x32xf32> to vector<16x32xbf16>
    %c0_9 = arith.constant 0 : index
    %c0_10 = arith.constant 0 : index
    %24 = vector.load %arg4[%c0_9, %c0_10] : memref<32x32xbf16, #tpu.memory_space<vmem>>, vector<32x32xbf16>
    %cst_11 = arith.constant dense<0.000000e+00> : vector<16x32xf32>
    %25 = tpu.matmul %23, %24, %cst_11 {dimension_numbers = #tpu.dot_dimension_numbers<[1], [0], [0], [1], [0, 0, 1, 1], [], []>} : vector<16x32xbf16>, vector<32x32xbf16>, vector<16x32xf32> -> vector<16x32xf32>
    %c0_12 = arith.constant 0 : index
    %c0_13 = arith.constant 0 : index
    %26 = vector.load %arg5[%c0_12, %c0_13] : memref<1x32xf32, #tpu.memory_space<vmem>>, vector<1x32xf32>
    %27 = vector.broadcast %26 : vector<1x32xf32> to vector<16x32xf32>
    %28 = arith.addf %25, %27 : vector<16x32xf32>
    %cst_14 = arith.constant 0.000000e+00 : f32
    %29 = vector.broadcast %cst_14 : f32 to vector<16x32xf32>
    %30 = arith.maximumf %28, %29 : vector<16x32xf32>
    %31 = arith.truncf %30 : vector<16x32xf32> to vector<16x32xbf16>
    %c0_15 = arith.constant 0 : index
    %c0_16 = arith.constant 0 : index
    %32 = vector.load %arg6[%c0_15, %c0_16] : memref<32x32xbf16, #tpu.memory_space<vmem>>, vector<32x32xbf16>
    %cst_17 = arith.constant dense<0.000000e+00> : vector<16x32xf32>
    %33 = tpu.matmul %31, %32, %cst_17 {dimension_numbers = #tpu.dot_dimension_numbers<[1], [0], [0], [1], [0, 0, 1, 1], [], []>} : vector<16x32xbf16>, vector<32x32xbf16>, vector<16x32xf32> -> vector<16x32xf32>
    %c0_18 = arith.constant 0 : index
    %c0_19 = arith.constant 0 : index
    %34 = vector.load %arg7[%c0_18, %c0_19] : memref<1x32xf32, #tpu.memory_space<vmem>>, vector<1x32xf32>
    %35 = vector.broadcast %34 : vector<1x32xf32> to vector<16x32xf32>
    %36 = arith.addf %33, %35 : vector<16x32xf32>
    %cst_20 = arith.constant 0.000000e+00 : f32
    %37 = vector.broadcast %cst_20 : f32 to vector<16x32xf32>
    %38 = arith.maximumf %36, %37 : vector<16x32xf32>
    %39 = arith.truncf %38 : vector<16x32xf32> to vector<16x32xbf16>
    %c0_21 = arith.constant 0 : index
    %c0_22 = arith.constant 0 : index
    %40 = vector.load %arg8[%c0_21, %c0_22] : memref<32x32xbf16, #tpu.memory_space<vmem>>, vector<32x32xbf16>
    %cst_23 = arith.constant dense<0.000000e+00> : vector<16x32xf32>
    %41 = tpu.matmul %39, %40, %cst_23 {dimension_numbers = #tpu.dot_dimension_numbers<[1], [0], [0], [1], [0, 0, 1, 1], [], []>} : vector<16x32xbf16>, vector<32x32xbf16>, vector<16x32xf32> -> vector<16x32xf32>
    %c0_24 = arith.constant 0 : index
    %c0_25 = arith.constant 0 : index
    %42 = vector.load %arg9[%c0_24, %c0_25] : memref<1x32xf32, #tpu.memory_space<vmem>>, vector<1x32xf32>
    %43 = vector.broadcast %42 : vector<1x32xf32> to vector<16x32xf32>
    %44 = arith.addf %41, %43 : vector<16x32xf32>
    %45 = arith.addf %22, %44 : vector<16x32xf32>
    %c0_26 = arith.constant 0 : index
    %c0_27 = arith.constant 0 : index
    %46 = vector.load %arg10[%c0_26, %c0_27] : memref<1x32xf32, #tpu.memory_space<vmem>>, vector<1x32xf32>
    %c0_28 = arith.constant 0 : index
    %c0_29 = arith.constant 0 : index
    %47 = vector.load %arg11[%c0_28, %c0_29] : memref<1x32xf32, #tpu.memory_space<vmem>>, vector<1x32xf32>
    %cst_30 = arith.constant dense<0.000000e+00> : vector<16xf32>
    %48 = vector.multi_reduction <add>, %45, %cst_30 [1] : vector<16x32xf32> to vector<16xf32>
    %49 = vector.shape_cast %48 : vector<16xf32> to vector<16x1xf32>
    %cst_31 = arith.constant 3.200000e+01 : f32
    %50 = vector.broadcast %cst_31 : f32 to vector<16x1xf32>
    %51 = arith.divf %49, %50 : vector<16x1xf32>
    %52 = vector.broadcast %51 : vector<16x1xf32> to vector<16x32xf32>
    %53 = arith.subf %45, %52 : vector<16x32xf32>
    %54 = arith.mulf %53, %53 : vector<16x32xf32>
    %cst_32 = arith.constant dense<0.000000e+00> : vector<16xf32>
    %55 = vector.multi_reduction <add>, %54, %cst_32 [1] : vector<16x32xf32> to vector<16xf32>
    %56 = vector.shape_cast %55 : vector<16xf32> to vector<16x1xf32>
    %cst_33 = arith.constant 3.200000e+01 : f32
    %57 = vector.broadcast %cst_33 : f32 to vector<16x1xf32>
    %58 = arith.divf %56, %57 : vector<16x1xf32>
    %cst_34 = arith.constant 9.99999974E-6 : f32
    %59 = vector.broadcast %cst_34 : f32 to vector<16x1xf32>
    %60 = arith.addf %58, %59 : vector<16x1xf32>
    %61 = math.rsqrt %60 : vector<16x1xf32>
    %62 = vector.broadcast %61 : vector<16x1xf32> to vector<16x32xf32>
    %63 = arith.mulf %53, %62 : vector<16x32xf32>
    %64 = vector.broadcast %46 : vector<1x32xf32> to vector<16x32xf32>
    %65 = arith.mulf %63, %64 : vector<16x32xf32>
    %66 = vector.broadcast %47 : vector<1x32xf32> to vector<16x32xf32>
    %67 = arith.addf %65, %66 : vector<16x32xf32>
    %c0_35 = arith.constant 0 : index
    %c0_36 = arith.constant 0 : index
    %68 = vector.load %arg12[%c0_35, %c0_36] : memref<16x32xf32, #tpu.memory_space<vmem>>, vector<16x32xf32>
    tpu.vector_store %arg12[%c0_35, %c0_36], %67 {strides = array<i32>} : memref<16x32xf32, #tpu.memory_space<vmem>>, vector<16x32xf32>,
    return
  }
  func.func @transform_0(%arg0: i32) -> (i32, i32) {
    %c0_i32 = arith.constant 0 : i32
    %c0_i32_0 = arith.constant 0 : i32
    return %arg0, %c0_i32 : i32, i32
  }
  func.func @transform_1(%arg0: i32) -> (i32, i32) {
    %c0_i32 = arith.constant 0 : i32
    %c0_i32_0 = arith.constant 0 : i32
    %c0_i32_1 = arith.constant 0 : i32
    return %c0_i32, %c0_i32_0 : i32, i32
  }
  func.func @transform_2(%arg0: i32) -> (i32, i32) {
    %c0_i32 = arith.constant 0 : i32
    %c0_i32_0 = arith.constant 0 : i32
    %c0_i32_1 = arith.constant 0 : i32
    return %c0_i32, %c0_i32_0 : i32, i32
  }
  func.func @transform_3(%arg0: i32) -> (i32, i32) {
    %c0_i32 = arith.constant 0 : i32
    %c0_i32_0 = arith.constant 0 : i32
    %c0_i32_1 = arith.constant 0 : i32
    return %c0_i32, %c0_i32_0 : i32, i32
  }
  func.func @transform_4(%arg0: i32) -> (i32, i32) {
    %c0_i32 = arith.constant 0 : i32
    %c0_i32_0 = arith.constant 0 : i32
    %c0_i32_1 = arith.constant 0 : i32
    return %c0_i32, %c0_i32_0 : i32, i32
  }
  func.func @transform_5(%arg0: i32) -> (i32, i32) {
    %c0_i32 = arith.constant 0 : i32
    %c0_i32_0 = arith.constant 0 : i32
    %c0_i32_1 = arith.constant 0 : i32
    return %c0_i32, %c0_i32_0 : i32, i32
  }
  func.func @transform_6(%arg0: i32) -> (i32, i32) {
    %c0_i32 = arith.constant 0 : i32
    %c0_i32_0 = arith.constant 0 : i32
    %c0_i32_1 = arith.constant 0 : i32
    return %c0_i32, %c0_i32_0 : i32, i32
  }
  func.func @transform_7(%arg0: i32) -> (i32, i32) {
    %c0_i32 = arith.constant 0 : i32
    %c0_i32_0 = arith.constant 0 : i32
    %c0_i32_1 = arith.constant 0 : i32
    return %c0_i32, %c0_i32_0 : i32, i32
  }
  func.func @transform_8(%arg0: i32) -> (i32, i32) {
    %c0_i32 = arith.constant 0 : i32
    %c0_i32_0 = arith.constant 0 : i32
    %c0_i32_1 = arith.constant 0 : i32
    return %c0_i32, %c0_i32_0 : i32, i32
  }
  func.func @transform_9(%arg0: i32) -> (i32, i32) {
    %c0_i32 = arith.constant 0 : i32
    %c0_i32_0 = arith.constant 0 : i32
    %c0_i32_1 = arith.constant 0 : i32
    return %c0_i32, %c0_i32_0 : i32, i32
  }
  func.func @transform_10(%arg0: i32) -> (i32, i32) {
    %c0_i32 = arith.constant 0 : i32
    %c0_i32_0 = arith.constant 0 : i32
    %c0_i32_1 = arith.constant 0 : i32
    return %c0_i32, %c0_i32_0 : i32, i32
  }
  func.func @transform_11(%arg0: i32) -> (i32, i32) {
    %c0_i32 = arith.constant 0 : i32
    %c0_i32_0 = arith.constant 0 : i32
    return %arg0, %c0_i32 : i32, i32
  }
}

module attributes {stable_mosaic.version = 11 : i64} {
  func.func @_linear_kernel(%arg0: i32, %arg1: memref<16x96xf32, #tpu.memory_space<vmem>>, %arg2: memref<96x32xbf16, #tpu.memory_space<vmem>>, %arg3: memref<1x32xf32, #tpu.memory_space<vmem>>, %arg4: memref<16x32xf32, #tpu.memory_space<vmem>>) attributes {dimension_semantics = [#tpu.dimension_semantics<parallel>], iteration_bounds = array<i64: 1>, scalar_prefetch = 0 : i64, scratch_operands = 0 : i64, tpu.core_type = #tpu.core_type<tc>, window_params = [{transform_indices = @transform_0, window_bounds = array<i64: 16, 96>}, {pipeline_mode = #tpu.pipeline_mode<synchronous>, transform_indices = @transform_1, window_bounds = array<i64: 96, 32>}, {pipeline_mode = #tpu.pipeline_mode<synchronous>, transform_indices = @transform_2, window_bounds = array<i64: 1, 32>}, {transform_indices = @transform_3, window_bounds = array<i64: 16, 32>}]} {
    %c0 = arith.constant 0 : index
    %c0_0 = arith.constant 0 : index
    %0 = vector.load %arg1[%c0, %c0_0] : memref<16x96xf32, #tpu.memory_space<vmem>>, vector<16x96xf32>
    %1 = arith.truncf %0 : vector<16x96xf32> to vector<16x96xbf16>
    %c0_1 = arith.constant 0 : index
    %c0_2 = arith.constant 0 : index
    %2 = vector.load %arg2[%c0_1, %c0_2] : memref<96x32xbf16, #tpu.memory_space<vmem>>, vector<96x32xbf16>
    %cst = arith.constant dense<0.000000e+00> : vector<16x32xf32>
    %3 = tpu.matmul %1, %2, %cst {dimension_numbers = #tpu.dot_dimension_numbers<[1], [0], [0], [1], [0, 0, 1, 1], [], []>} : vector<16x96xbf16>, vector<96x32xbf16>, vector<16x32xf32> -> vector<16x32xf32>
    %c0_3 = arith.constant 0 : index
    %c0_4 = arith.constant 0 : index
    %4 = vector.load %arg3[%c0_3, %c0_4] : memref<1x32xf32, #tpu.memory_space<vmem>>, vector<1x32xf32>
    %5 = vector.broadcast %4 : vector<1x32xf32> to vector<16x32xf32>
    %6 = arith.addf %3, %5 : vector<16x32xf32>
    %c0_5 = arith.constant 0 : index
    %c0_6 = arith.constant 0 : index
    %7 = vector.load %arg4[%c0_5, %c0_6] : memref<16x32xf32, #tpu.memory_space<vmem>>, vector<16x32xf32>
    tpu.vector_store %arg4[%c0_5, %c0_6], %6 {strides = array<i32>} : memref<16x32xf32, #tpu.memory_space<vmem>>, vector<16x32xf32>,
    return
  }
  func.func @transform_0(%arg0: i32) -> (i32, i32) {
    %c0_i32 = arith.constant 0 : i32
    %c0_i32_0 = arith.constant 0 : i32
    return %arg0, %c0_i32 : i32, i32
  }
  func.func @transform_1(%arg0: i32) -> (i32, i32) {
    %c0_i32 = arith.constant 0 : i32
    %c0_i32_0 = arith.constant 0 : i32
    %c0_i32_1 = arith.constant 0 : i32
    return %c0_i32, %c0_i32_0 : i32, i32
  }
  func.func @transform_2(%arg0: i32) -> (i32, i32) {
    %c0_i32 = arith.constant 0 : i32
    %c0_i32_0 = arith.constant 0 : i32
    %c0_i32_1 = arith.constant 0 : i32
    return %c0_i32, %c0_i32_0 : i32, i32
  }
  func.func @transform_3(%arg0: i32) -> (i32, i32) {
    %c0_i32 = arith.constant 0 : i32
    %c0_i32_0 = arith.constant 0 : i32
    return %arg0, %c0_i32 : i32, i32
  }
}

module attributes {stable_mosaic.version = 11 : i64} {
  func.func @_linear_kernel(%arg0: i32, %arg1: memref<16x32xf32, #tpu.memory_space<vmem>>, %arg2: memref<32x6xbf16, #tpu.memory_space<vmem>>, %arg3: memref<1x6xf32, #tpu.memory_space<vmem>>, %arg4: memref<16x6xf32, #tpu.memory_space<vmem>>) attributes {dimension_semantics = [#tpu.dimension_semantics<parallel>], iteration_bounds = array<i64: 1>, scalar_prefetch = 0 : i64, scratch_operands = 0 : i64, tpu.core_type = #tpu.core_type<tc>, window_params = [{transform_indices = @transform_0, window_bounds = array<i64: 16, 32>}, {pipeline_mode = #tpu.pipeline_mode<synchronous>, transform_indices = @transform_1, window_bounds = array<i64: 32, 6>}, {pipeline_mode = #tpu.pipeline_mode<synchronous>, transform_indices = @transform_2, window_bounds = array<i64: 1, 6>}, {transform_indices = @transform_3, window_bounds = array<i64: 16, 6>}]} {
    %c0 = arith.constant 0 : index
    %c0_0 = arith.constant 0 : index
    %0 = vector.load %arg1[%c0, %c0_0] : memref<16x32xf32, #tpu.memory_space<vmem>>, vector<16x32xf32>
    %1 = arith.truncf %0 : vector<16x32xf32> to vector<16x32xbf16>
    %c0_1 = arith.constant 0 : index
    %c0_2 = arith.constant 0 : index
    %2 = vector.load %arg2[%c0_1, %c0_2] : memref<32x6xbf16, #tpu.memory_space<vmem>>, vector<32x6xbf16>
    %cst = arith.constant dense<0.000000e+00> : vector<16x6xf32>
    %3 = tpu.matmul %1, %2, %cst {dimension_numbers = #tpu.dot_dimension_numbers<[1], [0], [0], [1], [0, 0, 1, 1], [], []>} : vector<16x32xbf16>, vector<32x6xbf16>, vector<16x6xf32> -> vector<16x6xf32>
    %c0_3 = arith.constant 0 : index
    %c0_4 = arith.constant 0 : index
    %4 = vector.load %arg3[%c0_3, %c0_4] : memref<1x6xf32, #tpu.memory_space<vmem>>, vector<1x6xf32>
    %5 = vector.broadcast %4 : vector<1x6xf32> to vector<16x6xf32>
    %6 = arith.addf %3, %5 : vector<16x6xf32>
    %c0_5 = arith.constant 0 : index
    %c0_6 = arith.constant 0 : index
    %7 = vector.load %arg4[%c0_5, %c0_6] : memref<16x6xf32, #tpu.memory_space<vmem>>, vector<16x6xf32>
    tpu.vector_store %arg4[%c0_5, %c0_6], %6 {strides = array<i32>} : memref<16x6xf32, #tpu.memory_space<vmem>>, vector<16x6xf32>,
    return
  }
  func.func @transform_0(%arg0: i32) -> (i32, i32) {
    %c0_i32 = arith.constant 0 : i32
    %c0_i32_0 = arith.constant 0 : i32
    return %arg0, %c0_i32 : i32, i32
  }
  func.func @transform_1(%arg0: i32) -> (i32, i32) {
    %c0_i32 = arith.constant 0 : i32
    %c0_i32_0 = arith.constant 0 : i32
    %c0_i32_1 = arith.constant 0 : i32
    return %c0_i32, %c0_i32_0 : i32, i32
  }
  func.func @transform_2(%arg0: i32) -> (i32, i32) {
    %c0_i32 = arith.constant 0 : i32
    %c0_i32_0 = arith.constant 0 : i32
    %c0_i32_1 = arith.constant 0 : i32
    return %c0_i32, %c0_i32_0 : i32, i32
  }
  func.func @transform_3(%arg0: i32) -> (i32, i32) {
    %c0_i32 = arith.constant 0 : i32
    %c0_i32_0 = arith.constant 0 : i32
    return %arg0, %c0_i32 : i32, i32
  }
}

module attributes {stable_mosaic.version = 11 : i64} {
  func.func @_angle_kernel(%arg0: i32, %arg1: memref<16x32xf32, #tpu.memory_space<vmem>>, %arg2: memref<16x32xf32, #tpu.memory_space<vmem>>, %arg3: memref<32x128xbf16, #tpu.memory_space<vmem>>, %arg4: memref<1x128xf32, #tpu.memory_space<vmem>>, %arg5: memref<32x128xbf16, #tpu.memory_space<vmem>>, %arg6: memref<1x128xf32, #tpu.memory_space<vmem>>, %arg7: memref<2x128x128xbf16, #tpu.memory_space<vmem>>, %arg8: memref<2x1x128xf32, #tpu.memory_space<vmem>>, %arg9: memref<2x128x128xbf16, #tpu.memory_space<vmem>>, %arg10: memref<2x1x128xf32, #tpu.memory_space<vmem>>, %arg11: memref<128x14xbf16, #tpu.memory_space<vmem>>, %arg12: memref<1x14xf32, #tpu.memory_space<vmem>>, %arg13: memref<16x14xf32, #tpu.memory_space<vmem>>) attributes {dimension_semantics = [#tpu.dimension_semantics<parallel>], iteration_bounds = array<i64: 1>, scalar_prefetch = 0 : i64, scratch_operands = 0 : i64, tpu.core_type = #tpu.core_type<tc>, window_params = [{transform_indices = @transform_0, window_bounds = array<i64: 16, 32>}, {transform_indices = @transform_1, window_bounds = array<i64: 16, 32>}, {pipeline_mode = #tpu.pipeline_mode<synchronous>, transform_indices = @transform_2, window_bounds = array<i64: 32, 128>}, {pipeline_mode = #tpu.pipeline_mode<synchronous>, transform_indices = @transform_3, window_bounds = array<i64: 1, 128>}, {pipeline_mode = #tpu.pipeline_mode<synchronous>, transform_indices = @transform_4, window_bounds = array<i64: 32, 128>}, {pipeline_mode = #tpu.pipeline_mode<synchronous>, transform_indices = @transform_5, window_bounds = array<i64: 1, 128>}, {pipeline_mode = #tpu.pipeline_mode<synchronous>, transform_indices = @transform_6, window_bounds = array<i64: 2, 128, 128>}, {pipeline_mode = #tpu.pipeline_mode<synchronous>, transform_indices = @transform_7, window_bounds = array<i64: 2, 1, 128>}, {pipeline_mode = #tpu.pipeline_mode<synchronous>, transform_indices = @transform_8, window_bounds = array<i64: 2, 128, 128>}, {pipeline_mode = #tpu.pipeline_mode<synchronous>, transform_indices = @transform_9, window_bounds = array<i64: 2, 1, 128>}, {pipeline_mode = #tpu.pipeline_mode<synchronous>, transform_indices = @transform_10, window_bounds = array<i64: 128, 14>}, {pipeline_mode = #tpu.pipeline_mode<synchronous>, transform_indices = @transform_11, window_bounds = array<i64: 1, 14>}, {transform_indices = @transform_12, window_bounds = array<i64: 16, 14>}]} {
    %c0 = arith.constant 0 : index
    %c0_0 = arith.constant 0 : index
    %0 = vector.load %arg1[%c0, %c0_0] : memref<16x32xf32, #tpu.memory_space<vmem>>, vector<16x32xf32>
    %cst = arith.constant 0.000000e+00 : f32
    %1 = vector.broadcast %cst : f32 to vector<16x32xf32>
    %2 = arith.maximumf %0, %1 : vector<16x32xf32>
    %3 = arith.truncf %2 : vector<16x32xf32> to vector<16x32xbf16>
    %c0_1 = arith.constant 0 : index
    %c0_2 = arith.constant 0 : index
    %4 = vector.load %arg3[%c0_1, %c0_2] : memref<32x128xbf16, #tpu.memory_space<vmem>>, vector<32x128xbf16>
    %cst_3 = arith.constant dense<0.000000e+00> : vector<16x128xf32>
    %5 = tpu.matmul %3, %4, %cst_3 {dimension_numbers = #tpu.dot_dimension_numbers<[1], [0], [0], [1], [0, 0, 1, 1], [], []>} : vector<16x32xbf16>, vector<32x128xbf16>, vector<16x128xf32> -> vector<16x128xf32>
    %c0_4 = arith.constant 0 : index
    %c0_5 = arith.constant 0 : index
    %6 = vector.load %arg4[%c0_4, %c0_5] : memref<1x128xf32, #tpu.memory_space<vmem>>, vector<1x128xf32>
    %7 = vector.broadcast %6 : vector<1x128xf32> to vector<16x128xf32>
    %8 = arith.addf %5, %7 : vector<16x128xf32>
    %c0_6 = arith.constant 0 : index
    %c0_7 = arith.constant 0 : index
    %9 = vector.load %arg2[%c0_6, %c0_7] : memref<16x32xf32, #tpu.memory_space<vmem>>, vector<16x32xf32>
    %cst_8 = arith.constant 0.000000e+00 : f32
    %10 = vector.broadcast %cst_8 : f32 to vector<16x32xf32>
    %11 = arith.maximumf %9, %10 : vector<16x32xf32>
    %12 = arith.truncf %11 : vector<16x32xf32> to vector<16x32xbf16>
    %c0_9 = arith.constant 0 : index
    %c0_10 = arith.constant 0 : index
    %13 = vector.load %arg5[%c0_9, %c0_10] : memref<32x128xbf16, #tpu.memory_space<vmem>>, vector<32x128xbf16>
    %cst_11 = arith.constant dense<0.000000e+00> : vector<16x128xf32>
    %14 = tpu.matmul %12, %13, %cst_11 {dimension_numbers = #tpu.dot_dimension_numbers<[1], [0], [0], [1], [0, 0, 1, 1], [], []>} : vector<16x32xbf16>, vector<32x128xbf16>, vector<16x128xf32> -> vector<16x128xf32>
    %15 = arith.addf %8, %14 : vector<16x128xf32>
    %c0_12 = arith.constant 0 : index
    %c0_13 = arith.constant 0 : index
    %16 = vector.load %arg6[%c0_12, %c0_13] : memref<1x128xf32, #tpu.memory_space<vmem>>, vector<1x128xf32>
    %17 = vector.broadcast %16 : vector<1x128xf32> to vector<16x128xf32>
    %18 = arith.addf %15, %17 : vector<16x128xf32>
    %cst_14 = arith.constant 0.000000e+00 : f32
    %19 = vector.broadcast %cst_14 : f32 to vector<16x128xf32>
    %20 = arith.maximumf %18, %19 : vector<16x128xf32>
    %21 = arith.truncf %20 : vector<16x128xf32> to vector<16x128xbf16>
    %c0_15 = arith.constant 0 : index
    %c0_16 = arith.constant 0 : index
    %c0_17 = arith.constant 0 : index
    %22 = vector.load %arg7[%c0_15, %c0_16, %c0_17] : memref<2x128x128xbf16, #tpu.memory_space<vmem>>, vector<1x128x128xbf16>
    %23 = vector.shape_cast %22 : vector<1x128x128xbf16> to vector<128x128xbf16>
    %cst_18 = arith.constant dense<0.000000e+00> : vector<16x128xf32>
    %24 = tpu.matmul %21, %23, %cst_18 {dimension_numbers = #tpu.dot_dimension_numbers<[1], [0], [0], [1], [0, 0, 1, 1], [], []>} : vector<16x128xbf16>, vector<128x128xbf16>, vector<16x128xf32> -> vector<16x128xf32>
    %c0_19 = arith.constant 0 : index
    %c0_20 = arith.constant 0 : index
    %c0_21 = arith.constant 0 : index
    %25 = vector.load %arg8[%c0_19, %c0_20, %c0_21] : memref<2x1x128xf32, #tpu.memory_space<vmem>>, vector<1x1x128xf32>
    %26 = vector.shape_cast %25 : vector<1x1x128xf32> to vector<1x128xf32>
    %27 = vector.broadcast %26 : vector<1x128xf32> to vector<16x128xf32>
    %28 = arith.addf %24, %27 : vector<16x128xf32>
    %cst_22 = arith.constant 0.000000e+00 : f32
    %29 = vector.broadcast %cst_22 : f32 to vector<16x128xf32>
    %30 = arith.maximumf %28, %29 : vector<16x128xf32>
    %31 = arith.truncf %30 : vector<16x128xf32> to vector<16x128xbf16>
    %c0_23 = arith.constant 0 : index
    %c0_24 = arith.constant 0 : index
    %c0_25 = arith.constant 0 : index
    %32 = vector.load %arg9[%c0_23, %c0_24, %c0_25] : memref<2x128x128xbf16, #tpu.memory_space<vmem>>, vector<1x128x128xbf16>
    %33 = vector.shape_cast %32 : vector<1x128x128xbf16> to vector<128x128xbf16>
    %cst_26 = arith.constant dense<0.000000e+00> : vector<16x128xf32>
    %34 = tpu.matmul %31, %33, %cst_26 {dimension_numbers = #tpu.dot_dimension_numbers<[1], [0], [0], [1], [0, 0, 1, 1], [], []>} : vector<16x128xbf16>, vector<128x128xbf16>, vector<16x128xf32> -> vector<16x128xf32>
    %c0_27 = arith.constant 0 : index
    %c0_28 = arith.constant 0 : index
    %c0_29 = arith.constant 0 : index
    %35 = vector.load %arg10[%c0_27, %c0_28, %c0_29] : memref<2x1x128xf32, #tpu.memory_space<vmem>>, vector<1x1x128xf32>
    %36 = vector.shape_cast %35 : vector<1x1x128xf32> to vector<1x128xf32>
    %37 = vector.broadcast %36 : vector<1x128xf32> to vector<16x128xf32>
    %38 = arith.addf %34, %37 : vector<16x128xf32>
    %39 = arith.addf %18, %38 : vector<16x128xf32>
    %cst_30 = arith.constant 0.000000e+00 : f32
    %40 = vector.broadcast %cst_30 : f32 to vector<16x128xf32>
    %41 = arith.maximumf %39, %40 : vector<16x128xf32>
    %42 = arith.truncf %41 : vector<16x128xf32> to vector<16x128xbf16>
    %c1 = arith.constant 1 : index
    %c0_31 = arith.constant 0 : index
    %c0_32 = arith.constant 0 : index
    %43 = vector.load %arg7[%c1, %c0_31, %c0_32] : memref<2x128x128xbf16, #tpu.memory_space<vmem>>, vector<1x128x128xbf16>
    %44 = vector.shape_cast %43 : vector<1x128x128xbf16> to vector<128x128xbf16>
    %cst_33 = arith.constant dense<0.000000e+00> : vector<16x128xf32>
    %45 = tpu.matmul %42, %44, %cst_33 {dimension_numbers = #tpu.dot_dimension_numbers<[1], [0], [0], [1], [0, 0, 1, 1], [], []>} : vector<16x128xbf16>, vector<128x128xbf16>, vector<16x128xf32> -> vector<16x128xf32>
    %c1_34 = arith.constant 1 : index
    %c0_35 = arith.constant 0 : index
    %c0_36 = arith.constant 0 : index
    %46 = vector.load %arg8[%c1_34, %c0_35, %c0_36] : memref<2x1x128xf32, #tpu.memory_space<vmem>>, vector<1x1x128xf32>
    %47 = vector.shape_cast %46 : vector<1x1x128xf32> to vector<1x128xf32>
    %48 = vector.broadcast %47 : vector<1x128xf32> to vector<16x128xf32>
    %49 = arith.addf %45, %48 : vector<16x128xf32>
    %cst_37 = arith.constant 0.000000e+00 : f32
    %50 = vector.broadcast %cst_37 : f32 to vector<16x128xf32>
    %51 = arith.maximumf %49, %50 : vector<16x128xf32>
    %52 = arith.truncf %51 : vector<16x128xf32> to vector<16x128xbf16>
    %c1_38 = arith.constant 1 : index
    %c0_39 = arith.constant 0 : index
    %c0_40 = arith.constant 0 : index
    %53 = vector.load %arg9[%c1_38, %c0_39, %c0_40] : memref<2x128x128xbf16, #tpu.memory_space<vmem>>, vector<1x128x128xbf16>
    %54 = vector.shape_cast %53 : vector<1x128x128xbf16> to vector<128x128xbf16>
    %cst_41 = arith.constant dense<0.000000e+00> : vector<16x128xf32>
    %55 = tpu.matmul %52, %54, %cst_41 {dimension_numbers = #tpu.dot_dimension_numbers<[1], [0], [0], [1], [0, 0, 1, 1], [], []>} : vector<16x128xbf16>, vector<128x128xbf16>, vector<16x128xf32> -> vector<16x128xf32>
    %c1_42 = arith.constant 1 : index
    %c0_43 = arith.constant 0 : index
    %c0_44 = arith.constant 0 : index
    %56 = vector.load %arg10[%c1_42, %c0_43, %c0_44] : memref<2x1x128xf32, #tpu.memory_space<vmem>>, vector<1x1x128xf32>
    %57 = vector.shape_cast %56 : vector<1x1x128xf32> to vector<1x128xf32>
    %58 = vector.broadcast %57 : vector<1x128xf32> to vector<16x128xf32>
    %59 = arith.addf %55, %58 : vector<16x128xf32>
    %60 = arith.addf %39, %59 : vector<16x128xf32>
    %cst_45 = arith.constant 0.000000e+00 : f32
    %61 = vector.broadcast %cst_45 : f32 to vector<16x128xf32>
    %62 = arith.maximumf %60, %61 : vector<16x128xf32>
    %63 = arith.truncf %62 : vector<16x128xf32> to vector<16x128xbf16>
    %c0_46 = arith.constant 0 : index
    %c0_47 = arith.constant 0 : index
    %64 = vector.load %arg11[%c0_46, %c0_47] : memref<128x14xbf16, #tpu.memory_space<vmem>>, vector<128x14xbf16>
    %cst_48 = arith.constant dense<0.000000e+00> : vector<16x14xf32>
    %65 = tpu.matmul %63, %64, %cst_48 {dimension_numbers = #tpu.dot_dimension_numbers<[1], [0], [0], [1], [0, 0, 1, 1], [], []>} : vector<16x128xbf16>, vector<128x14xbf16>, vector<16x14xf32> -> vector<16x14xf32>
    %c0_49 = arith.constant 0 : index
    %c0_50 = arith.constant 0 : index
    %66 = vector.load %arg12[%c0_49, %c0_50] : memref<1x14xf32, #tpu.memory_space<vmem>>, vector<1x14xf32>
    %67 = vector.broadcast %66 : vector<1x14xf32> to vector<16x14xf32>
    %68 = arith.addf %65, %67 : vector<16x14xf32>
    %c0_51 = arith.constant 0 : index
    %c0_52 = arith.constant 0 : index
    %69 = vector.load %arg13[%c0_51, %c0_52] : memref<16x14xf32, #tpu.memory_space<vmem>>, vector<16x14xf32>
    tpu.vector_store %arg13[%c0_51, %c0_52], %68 {strides = array<i32>} : memref<16x14xf32, #tpu.memory_space<vmem>>, vector<16x14xf32>,
    return
  }
  func.func @transform_0(%arg0: i32) -> (i32, i32) {
    %c0_i32 = arith.constant 0 : i32
    %c0_i32_0 = arith.constant 0 : i32
    return %arg0, %c0_i32 : i32, i32
  }
  func.func @transform_1(%arg0: i32) -> (i32, i32) {
    %c0_i32 = arith.constant 0 : i32
    %c0_i32_0 = arith.constant 0 : i32
    return %arg0, %c0_i32 : i32, i32
  }
  func.func @transform_2(%arg0: i32) -> (i32, i32) {
    %c0_i32 = arith.constant 0 : i32
    %c0_i32_0 = arith.constant 0 : i32
    %c0_i32_1 = arith.constant 0 : i32
    return %c0_i32, %c0_i32_0 : i32, i32
  }
  func.func @transform_3(%arg0: i32) -> (i32, i32) {
    %c0_i32 = arith.constant 0 : i32
    %c0_i32_0 = arith.constant 0 : i32
    %c0_i32_1 = arith.constant 0 : i32
    return %c0_i32, %c0_i32_0 : i32, i32
  }
  func.func @transform_4(%arg0: i32) -> (i32, i32) {
    %c0_i32 = arith.constant 0 : i32
    %c0_i32_0 = arith.constant 0 : i32
    %c0_i32_1 = arith.constant 0 : i32
    return %c0_i32, %c0_i32_0 : i32, i32
  }
  func.func @transform_5(%arg0: i32) -> (i32, i32) {
    %c0_i32 = arith.constant 0 : i32
    %c0_i32_0 = arith.constant 0 : i32
    %c0_i32_1 = arith.constant 0 : i32
    return %c0_i32, %c0_i32_0 : i32, i32
  }
  func.func @transform_6(%arg0: i32) -> (i32, i32, i32) {
    %c0_i32 = arith.constant 0 : i32
    %c0_i32_0 = arith.constant 0 : i32
    %c0_i32_1 = arith.constant 0 : i32
    %c0_i32_2 = arith.constant 0 : i32
    return %c0_i32, %c0_i32_0, %c0_i32_1 : i32, i32, i32
  }
  func.func @transform_7(%arg0: i32) -> (i32, i32, i32) {
    %c0_i32 = arith.constant 0 : i32
    %c0_i32_0 = arith.constant 0 : i32
    %c0_i32_1 = arith.constant 0 : i32
    %c0_i32_2 = arith.constant 0 : i32
    return %c0_i32, %c0_i32_0, %c0_i32_1 : i32, i32, i32
  }
  func.func @transform_8(%arg0: i32) -> (i32, i32, i32) {
    %c0_i32 = arith.constant 0 : i32
    %c0_i32_0 = arith.constant 0 : i32
    %c0_i32_1 = arith.constant 0 : i32
    %c0_i32_2 = arith.constant 0 : i32
    return %c0_i32, %c0_i32_0, %c0_i32_1 : i32, i32, i32
  }
  func.func @transform_9(%arg0: i32) -> (i32, i32, i32) {
    %c0_i32 = arith.constant 0 : i32
    %c0_i32_0 = arith.constant 0 : i32
    %c0_i32_1 = arith.constant 0 : i32
    %c0_i32_2 = arith.constant 0 : i32
    return %c0_i32, %c0_i32_0, %c0_i32_1 : i32, i32, i32
  }
  func.func @transform_10(%arg0: i32) -> (i32, i32) {
    %c0_i32 = arith.constant 0 : i32
    %c0_i32_0 = arith.constant 0 : i32
    %c0_i32_1 = arith.constant 0 : i32
    return %c0_i32, %c0_i32_0 : i32, i32
  }
  func.func @transform_11(%arg0: i32) -> (i32, i32) {
    %c0_i32 = arith.constant 0 : i32
    %c0_i32_0 = arith.constant 0 : i32
    %c0_i32_1 = arith.constant 0 : i32
    return %c0_i32, %c0_i32_0 : i32, i32
  }
  func.func @transform_12(%arg0: i32) -> (i32, i32) {
    %c0_i32 = arith.constant 0 : i32
    %c0_i32_0 = arith.constant 0 : i32
    return %arg0, %c0_i32 : i32, i32
  }
}

</mosaic_0001>

<bundles_post_ra>
// kernel: run.15
= control target key start
LH: loop header
LB: loop body
LE: loop exit
PB: predicated region body
PF: predicated region fallthrough
CT: control target
= control target key end

     0   :  { %vm16_vm0 = vcmask 261120   ;;  %s118_s0 = inlined_call_operand.vmem [shape: f32[16,32], index: 0, kind: input, shape index: {}]   ;;  %s119_s1 = inlined_call_operand.vmem [shape: f32[1,32], index: 1, kind: input, shape index: {}]   ;;  %s120_s2 = inlined_call_operand.vmem [shape: f32[1,32], index: 2, kind: input, shape index: {}]   ;;  %s121_s3 = inlined_call_operand.vmem [shape: f32[16,32], index: 3, kind: output, shape index: {}]  }
   0x1   :  { %v14_v0 = vld [vmem:[%s118_s0] sm:$0xff]  ;;  %v15_v1 = vld [vmem:[%s118_s0 + $0x8] sm:$0xff] }
   0x2   :  { %v17_v2 = vsel %vm16_vm0, %v14_v0, 0.0  ;;  %v20_v3 = vsel %vm16_vm0, %v15_v1, 0.0  ;;  %v68_v21 = vld [vmem:[%s119_s1] ss:$0 sm:$0xff] }
   0x3   :  { %18 = vadd.xlane.f32.xlu0 %v17_v2  ;;  %v69_v23 = vld [vmem:[%s120_s2] ss:$0 sm:$0xff] }
   0x7   :  { %21 = vadd.xlane.f32.xlu0 %v20_v3 }
  0x90   :  { %v19_v4 = vpop.xlane.xlu0 %18 }
  0x91   :  { %v24_v5 = vmul.f32 0.03125, %v19_v4 }
  0x93   :  { %v26_v6 = vsub.f32 %v14_v0, %v24_v5 }
  0x94   :  { %v22_v7 = vpop.xlane.xlu0 %21 }
  0x95   :  { %v25_v8 = vmul.f32 0.03125, %v22_v7  ;;  %v28_v9 = vmul.f32 %v26_v6, %v26_v6 }
  0x97   :  { %v27_v10 = vsub.f32 %v15_v1, %v25_v8  ;;  %v30_v11 = vsel %vm16_vm0, %v28_v9, 0.0 }
  0x98   :  { %31 = vadd.xlane.f32.xlu1 %v30_v11 }
  0x99   :  { %v29_v12 = vmul.f32 %v27_v10, %v27_v10 }
  0x9b   :  { %v33_v13 = vsel %vm16_vm0, %v29_v12, 0.0 }
  0x9c   :  { %34 = vadd.xlane.f32.xlu1 %v33_v13 }
 0x125   :  { %v32_v14 = vpop.xlane.xlu1 %31 }
 0x126   :  { %v36_v15 = vmul.f32 0.03125, %v32_v14 }
 0x128   :  { %v38_v16 = vadd.f32 1e-05, %v36_v15 }
 0x129   :  { %v35_v17 = vpop.xlane.xlu1 %34 }
 0x12a   :  { %70 = vrsqrt.f32 %v38_v16  ;;  %v37_v18 = vmul.f32 0.03125, %v35_v17 }
 0x12c   :  { %v39_v19 = vadd.f32 1e-05, %v37_v18 }
 0x12e   :  { %72 = vrsqrt.f32 %v39_v19 }
 0x134   :  { %v71_v20 = vpop.eup %70 }
 0x135   :  { %v42_v22 = vmul.f32 %v71_v20, %v26_v6 }
 0x137   :  { %v51_v24 = vmul.f32 %v68_v21, %v42_v22 }
 0x138   :  { %v73_v25 = vpop.eup %72 }
 0x139   :  { %v60_v26 = vadd.f32 %v69_v23, %v51_v24  ;;  %v43_v27 = vmul.f32 %v73_v25, %v27_v10 }
 0x13b   :  { %62 = vst.msk [vmem:[%s121_s3] sm:$0xff] %vm16_vm0, %v60_v26  ;;  %v52_v28 = vmul.f32 %v68_v21, %v43_v27 }
 0x13d   :  { %v61_v29 = vadd.f32 %v69_v23, %v52_v28 }
 0x13f   :  { %63 = vst.msk [vmem:[%s121_s3 + $0x8] sm:$0xff] %vm16_vm0, %v61_v29 }

// kernel: run.17
= control target key start
LH: loop header
LB: loop body
LE: loop exit
PB: predicated region body
PF: predicated region fallthrough
CT: control target
= control target key end

     0   :  { %v111_v0 = vmov 0.0   ;;  %vm112_vm0 = vmmov 0   ;;  %vm41_vm1 = vcmask 261120   ;;  %s154_s1 = inlined_call_operand.vmem [shape: bf16[32,32], index: 1, kind: input, shape index: {}]   ;;  %s155_s0 = inlined_call_operand.vmem [shape: f32[16,32], index: 0, kind: input, shape index: {}]   ;;  %s156_s2 = inlined_call_operand.vmem [shape: f32[1,32], index: 2, kind: input, shape index: {}]   ;;  %s157_s3 = inlined_call_operand.vmem [shape: f32[16,32], index: 3, kind: output, shape index: {}]  }
   0x1   :  { %99 = vmatprep.subr.bf16.mxu0 %v111_v0  ;;  %v109_v1 = vld [vmem:[%s154_s1] sm:$0xff]   ;;  %103 = vmatprep.mubr.msk.bf16.mxu0 %vm112_vm0, %v111_v0  ;;  %v110_v2 = vld [vmem:[%s154_s1 + $0x8] sm:$0xff]  }
   0x2   :  { %100 = vmatpush3.bf16.msra.mxu0 %v109_v1  ;;  %v15_v3 = vld [vmem:[%s155_s0] sm:$0xff]  ;;  %v16_v4 = vld [vmem:[%s155_s0 + $0x8] sm:$0xff] }
   0x3   :  { %101 = vmatprep.subr.bf16.mxu0 %v111_v0  ;;  %v17_v5 = vpack.c.bf16 %v16_v4, %v15_v3  ;;  %v92_v6 = vld [vmem:[%s156_s2] ss:$0 sm:$0xff] }
   0x6   :  { %102 = vmatpush3.bf16.msra.mxu0 %v110_v2 }
   0x9   :  { %104 = vmatmul.mubr.msk.bf16.vlgmr.msra.gmra.mrb[0].mxu0 %vm41_vm1, %v17_v5 }
  0xdc   :  { %v79_v7 = vpop.f32.mrb[0].mxu0 }
  0xdd   :  { %v80_v8 = vadd.f32 %v92_v6, %v79_v7  ;;  %v105_v9 = vpop.f32.mrb[1].mxu0 }
  0xde   :  { %v82_v10 = vpop.f32.mrb[2].mxu0 }
  0xdf   :  { %86 = vst.msk [vmem:[%s157_s3] sm:$0xff] %vm41_vm1, %v80_v8  ;;  %v83_v11 = vadd.f32 %v92_v6, %v82_v10  ;;  %v106_v12 = vpop.f32.mrb[3].mxu0 }
  0xe1   :  { %87 = vst.msk [vmem:[%s157_s3 + $0x8] sm:$0xff] %vm41_vm1, %v83_v11 }

// kernel: run.19
= control target key start
LH: loop header
LB: loop body
LE: loop exit
PB: predicated region body
PF: predicated region fallthrough
CT: control target
= control target key end

     0   :  { %v122_v1 = vmov 0   ;;  %vm54_vm0 = vcmask 261120   ;;  %v24_v8 = vlaneseq  ;;  %vm102_vm1 = vcmask 326656   ;;  %s176_s1 = inlined_call_operand.vmem [shape: bf16[32,168], index: 1, kind: input, shape index: {}]   ;;  %s177_s0 = inlined_call_operand.vmem [shape: f32[16,32], index: 0, kind: input, shape index: {}]   ;;  %s178_s2 = inlined_call_operand.vmem [shape: f32[1,168], index: 2, kind: input, shape index: {}]   ;;  %s179_s3 = inlined_call_operand.vmem [shape: f32[16,168], index: 3, kind: output, shape index: {}]  }
   0x1   :  { %v116_v0 = vld [vmem:[%s176_s1 + $0x4] ss:$8 sps:$4 sm:$0xff]   ;;  %90 = vmatprep.mubr.bf16.mxu0 %v122_v1  ;;  %v118_v2 = vld [vmem:[%s176_s1] ss:$8 sps:$4 sm:$0xff]   ;;  %v119_v3 = vld [vmem:[%s176_s1 + $0x14] ss:$8 sps:$4 sm:$0xff]  }
   0x2   :  { %58 = vmatprep.subr.bf16.mxu0 %v116_v0  ;;  %v121_v4 = vld [vmem:[%s176_s1 + $0x10] ss:$8 sps:$4 sm:$0xff]   ;;  %v15_v5 = vld [vmem:[%s177_s0] sm:$0xff]  ;;  %v16_v6 = vld [vmem:[%s177_s0 + $0x8] sm:$0xff]  ;;  %v25_v9 = vshrl.u32 %v24_v8, 7 }
   0x3   :  { %59 = vmatpush1.bf16.msra.mxu0 %v118_v2  ;;  %v17_v7 = vpack.c.bf16 %v16_v6, %v15_v5  ;;  %v22_v11 = vld [vmem:[%s178_s2] sm:$0x3] }
   0x4   :  { %60 = vmatprep.subr.bf16.mxu0 %v119_v3  ;;  %v26_v10 = vsub.s32 0, %v25_v9  ;;  %v30_v12 = vsub.s32 1, %v25_v9 }
   0x6   :  { %v27_v13 = vrot.slane %v22_v11, %v26_v10  ;;  %v31_v14 = vrot.slane %v22_v11, %v30_v12 }
   0x7   :  { %61 = vmatpush1.bf16.msra.mxu0 %v121_v4 }
   0xa   :  { %114 = vmatmul.mubr.msk.bf16.vlgmr.msra.gmra.mrb[0].mxu0 %vm54_vm0, %v17_v7 }
  0xdd   :  { %v92_v15 = vpop.f32.mrb[0].mxu0 }
  0xde   :  { %v93_v16 = vadd.f32 %v92_v15, %v27_v13  ;;  %v94_v17 = vpop.f32.mrb[1].mxu0 }
  0xdf   :  { %v95_v18 = vadd.f32 %v94_v17, %v31_v14  ;;  %v96_v19 = vpop.f32.mrb[2].mxu0 }
  0xe0   :  { %101 = vst [vmem:[%s179_s3] sm:$0xff] %v93_v16  ;;  %v97_v20 = vadd.f32 %v96_v19, %v27_v13  ;;  %v98_v21 = vpop.f32.mrb[3].mxu0 }
  0xe1   :  { %103 = vst.msk [vmem:[%s179_s3 + $0x8] sm:$0xff] %vm102_vm1, %v95_v18  ;;  %v99_v22 = vadd.f32 %v98_v21, %v31_v14 }
  0xe2   :  { %104 = vst [vmem:[%s179_s3 + $0x10] sm:$0xff] %v97_v20 }
  0xe3   :  { %105 = vst.msk [vmem:[%s179_s3 + $0x18] sm:$0xff] %vm102_vm1, %v99_v22 }

// kernel: run.18
= control target key start
LH: loop header
LB: loop body
LE: loop exit
PB: predicated region body
PF: predicated region fallthrough
CT: control target
= control target key end

     0   :  { %vm54_vm0 = vcmask 130048   ;;  %vm176_vm1 = vcmask 15360   ;;  %s383_s1 = inlined_call_operand.vmem [shape: bf16[16,2], index: 1, kind: input, shape index: {}]   ;;  %s384_s0 = inlined_call_operand.vmem [shape: f32[128,16], index: 0, kind: input, shape index: {}]   ;;  %s385_s2 = inlined_call_operand.vmem [shape: f32[1,2], index: 2, kind: input, shape index: {}]   ;;  %s386_s3 = inlined_call_operand.vmem [shape: f32[128,2], index: 3, kind: output, shape index: {}]  }
   0x1   :  { %v236_v0 = vld [vmem:[%s383_s1] sm:$0xff]   ;;  %v16_v2 = vld [vmem:[%s384_s0 + $0x8] sm:$0xff]  ;;  %v17_v6 = vld [vmem:[%s384_s0 + $0x10] sm:$0xff] }
   0x2   :  { %v15_v1 = vld [vmem:[%s384_s0] sm:$0xff]  ;;  %216 = vmatprep.subr.bf16.mxu0 %v236_v0  ;;  %234 = vmatprep.subr.bf16.mxu1 %v236_v0  ;;  %v24_v5 = vld [vmem:[%s384_s0 + $0x48] sm:$0xff]  ;;  %v18_v7 = vld [vmem:[%s384_s0 + $0x18] sm:$0xff] }
   0x3   :  { %v23_v3 = vld [vmem:[%s384_s0 + $0x40] sm:$0xff]  ;;  %v31_v4 = vpack.c.bf16 %v16_v2, %v15_v1  ;;  %217 = vmatpush3.bf16.msra.mxu0 %v236_v0  ;;  %235 = vmatpush3.bf16.msra.mxu1 %v236_v0  ;;  %v32_v9 = vpack.c.bf16 %v18_v7, %v17_v6  ;;  %v25_v10 = vld [vmem:[%s384_s0 + $0x50] sm:$0xff]  ;;  %v26_v11 = vld [vmem:[%s384_s0 + $0x58] sm:$0xff] }
   0x4   :  { %v35_v8 = vpack.c.bf16 %v24_v5, %v23_v3  ;;  %v19_v12 = vld [vmem:[%s384_s0 + $0x20] sm:$0xff]  ;;  %v36_v13 = vpack.c.bf16 %v26_v11, %v25_v10  ;;  %v20_v14 = vld [vmem:[%s384_s0 + $0x28] sm:$0xff]  ;;  %v21_v19 = vld [vmem:[%s384_s0 + $0x30] sm:$0xff] }
   0x5   :  { %218 = vmatprep.mubr.msk.bf16.mxu0 %vm54_vm0, %v31_v4  ;;  %v27_v15 = vld [vmem:[%s384_s0 + $0x60] sm:$0xff]  ;;  %v28_v16 = vld [vmem:[%s384_s0 + $0x68] sm:$0xff]  ;;  %v33_v17 = vpack.c.bf16 %v20_v14, %v19_v12  ;;  %v22_v20 = vld [vmem:[%s384_s0 + $0x38] sm:$0xff] }
   0x6   :  { %226 = vmatprep.mubr.msk.bf16.mxu1 %vm54_vm0, %v35_v8  ;;  %v37_v18 = vpack.c.bf16 %v28_v16, %v27_v15  ;;  %219 = vmatmul.mubr.msk.bf16.vlgmr.msra.gmra.mrb[0].mxu0 %vm54_vm0, %v32_v9  ;;  %v29_v21 = vld [vmem:[%s384_s0 + $0x70] sm:$0xff]  ;;  %v30_v22 = vld [vmem:[%s384_s0 + $0x78] sm:$0xff]  ;;  %v34_v23 = vpack.c.bf16 %v22_v20, %v21_v19  ;;  %v197_v25 = vld [vmem:[%s385_s2] ss:$0 sm:$0xff] }
   0x7   :  { %227 = vmatmul.mubr.msk.bf16.vlgmr.msra.gmra.mrb[0].mxu1 %vm54_vm0, %v36_v13  ;;  %222 = vmatprep.mubr.msk.bf16.mxu0 %vm54_vm0, %v33_v17  ;;  %v38_v24 = vpack.c.bf16 %v30_v22, %v29_v21 }
   0x8   :  { %230 = vmatprep.mubr.msk.bf16.mxu1 %vm54_vm0, %v37_v18 }
   0xe   :  { %223 = vmatmul.mubr.msk.bf16.gmra.mrb[4].mxu0 %vm54_vm0, %v34_v23 }
   0xf   :  { %231 = vmatmul.mubr.msk.bf16.gmra.mrb[4].mxu1 %vm54_vm0, %v38_v24 }
  0xd9   :  { %v220_v26 = vpop.f32.mrb[0].mxu0 }
  0xda   :  { %v228_v27 = vpop.f32.mrb[0].mxu1  ;;  %v122_v28 = vadd.f32 %v220_v26, %v197_v25  ;;  %v113_v30 = vpop.f32.mrb[1].mxu0 }
  0xdb   :  { %v154_v29 = vadd.f32 %v228_v27, %v197_v25  ;;  %v145_v31 = vpop.f32.mrb[1].mxu1  ;;  %v114_v32 = vadd.f32 %v197_v25, %v113_v30  ;;  %v221_v34 = vpop.f32.mrb[2].mxu0 }
  0xdc   :  { %v146_v33 = vadd.f32 %v197_v25, %v145_v31  ;;  %v229_v35 = vpop.f32.mrb[2].mxu1  ;;  %179 = vst.msk [vmem:[%s386_s3 + $0x10] sm:$0xff] %vm176_vm1, %v122_v28  ;;  %v125_v36 = vadd.f32 %v221_v34, %v197_v25  ;;  %v116_v38 = vpop.f32.mrb[3].mxu0 }
  0xdd   :  { %187 = vst.msk [vmem:[%s386_s3 + $0x50] sm:$0xff] %vm176_vm1, %v154_v29  ;;  %v157_v37 = vadd.f32 %v229_v35, %v197_v25  ;;  %v148_v39 = vpop.f32.mrb[3].mxu1  ;;  %177 = vst.msk [vmem:[%s386_s3] sm:$0xff] %vm176_vm1, %v114_v32  ;;  %v117_v40 = vadd.f32 %v197_v25, %v116_v38 }
  0xde   :  { %185 = vst.msk [vmem:[%s386_s3 + $0x40] sm:$0xff] %vm176_vm1, %v146_v33  ;;  %v149_v41 = vadd.f32 %v197_v25, %v148_v39  ;;  %180 = vst.msk [vmem:[%s386_s3 + $0x18] sm:$0xff] %vm176_vm1, %v125_v36 }
  0xdf   :  { %188 = vst.msk [vmem:[%s386_s3 + $0x58] sm:$0xff] %vm176_vm1, %v157_v37  ;;  %178 = vst.msk [vmem:[%s386_s3 + $0x8] sm:$0xff] %vm176_vm1, %v117_v40 }
  0xe0   :  { %186 = vst.msk [vmem:[%s386_s3 + $0x48] sm:$0xff] %vm176_vm1, %v149_v41 }
  0xe1   :  { %v224_v42 = vpop.f32.mrb[4].mxu0 }
  0xe2   :  { %v232_v43 = vpop.f32.mrb[4].mxu1  ;;  %v138_v44 = vadd.f32 %v224_v42, %v197_v25  ;;  %v129_v46 = vpop.f32.mrb[5].mxu0 }
  0xe3   :  { %v170_v45 = vadd.f32 %v232_v43, %v197_v25  ;;  %v161_v47 = vpop.f32.mrb[5].mxu1  ;;  %v130_v48 = vadd.f32 %v197_v25, %v129_v46  ;;  %v225_v50 = vpop.f32.mrb[6].mxu0 }
  0xe4   :  { %v162_v49 = vadd.f32 %v197_v25, %v161_v47  ;;  %v233_v51 = vpop.f32.mrb[6].mxu1  ;;  %183 = vst.msk [vmem:[%s386_s3 + $0x30] sm:$0xff] %vm176_vm1, %v138_v44  ;;  %v141_v52 = vadd.f32 %v225_v50, %v197_v25  ;;  %v132_v54 = vpop.f32.mrb[7].mxu0 }
  0xe5   :  { %191 = vst.msk [vmem:[%s386_s3 + $0x70] sm:$0xff] %vm176_vm1, %v170_v45  ;;  %v173_v53 = vadd.f32 %v233_v51, %v197_v25  ;;  %v164_v55 = vpop.f32.mrb[7].mxu1  ;;  %181 = vst.msk [vmem:[%s386_s3 + $0x20] sm:$0xff] %vm176_vm1, %v130_v48  ;;  %v133_v56 = vadd.f32 %v197_v25, %v132_v54 }
  0xe6   :  { %189 = vst.msk [vmem:[%s386_s3 + $0x60] sm:$0xff] %vm176_vm1, %v162_v49  ;;  %v165_v57 = vadd.f32 %v197_v25, %v164_v55  ;;  %184 = vst.msk [vmem:[%s386_s3 + $0x38] sm:$0xff] %vm176_vm1, %v141_v52 }
  0xe7   :  { %192 = vst.msk [vmem:[%s386_s3 + $0x78] sm:$0xff] %vm176_vm1, %v173_v53  ;;  %182 = vst.msk [vmem:[%s386_s3 + $0x28] sm:$0xff] %vm176_vm1, %v133_v56 }
  0xe8   :  { %190 = vst.msk [vmem:[%s386_s3 + $0x68] sm:$0xff] %vm176_vm1, %v165_v57 }

// kernel: run.16
= control target key start
LH: loop header
LB: loop body
LE: loop exit
PB: predicated region body
PF: predicated region fallthrough
CT: control target
= control target key end

     0   :  { %vm30_vm0 = vcmask 130048   ;;  %s666_s0 = inlined_call_operand.vmem [shape: f32[128,16], index: 0, kind: input, shape index: {}]   ;;  %s667_s1 = inlined_call_operand.vmem [shape: f32[1,16], index: 1, kind: input, shape index: {}]   ;;  %s668_s2 = inlined_call_operand.vmem [shape: f32[1,16], index: 2, kind: input, shape index: {}]   ;;  %s669_s3 = inlined_call_operand.vmem [shape: f32[128,16], index: 3, kind: output, shape index: {}]  }
   0x1   :  { %v14_v0 = vld [vmem:[%s666_s0] sm:$0xff]  ;;  %v16_v1 = vld [vmem:[%s666_s0 + $0x10] sm:$0xff]  ;;  %v15_v2 = vld [vmem:[%s666_s0 + $0x8] sm:$0xff] }
   0x2   :  { %v31_v3 = vsel %vm30_vm0, %v14_v0, 0.0  ;;  %v37_v4 = vsel %vm30_vm0, %v16_v1, 0.0  ;;  %v17_v5 = vld [vmem:[%s666_s0 + $0x18] sm:$0xff]  ;;  %v34_v6 = vsel %vm30_vm0, %v15_v2, 0.0  ;;  %v18_v8 = vld [vmem:[%s666_s0 + $0x20] sm:$0xff]  ;;  %v19_v9 = vld [vmem:[%s666_s0 + $0x28] sm:$0xff] }
   0x3   :  { %32 = vadd.xlane.f32.xlu0 %v31_v3  ;;  %38 = vadd.xlane.f32.xlu1 %v37_v4  ;;  %v40_v7 = vsel %vm30_vm0, %v17_v5, 0.0  ;;  %v43_v10 = vsel %vm30_vm0, %v18_v8, 0.0  ;;  %v46_v11 = vsel %vm30_vm0, %v19_v9, 0.0  ;;  %v387_v12 = vld [vmem:[%s666_s0 + $0x30] sm:$0xff]  ;;  %v392_v13 = vld [vmem:[%s666_s0 + $0x38] sm:$0xff]  ;;  %v401_v16 = vld [vmem:[%s666_s0 + $0x40] sm:$0xff] }
   0x4   :  { %v49_v14 = vsel %vm30_vm0, %v387_v12, 0.0  ;;  %v52_v15 = vsel %vm30_vm0, %v392_v13, 0.0  ;;  %v406_v17 = vld [vmem:[%s666_s0 + $0x48] sm:$0xff]  ;;  %v55_v18 = vsel %vm30_vm0, %v401_v16, 0.0  ;;  %v415_v20 = vld [vmem:[%s666_s0 + $0x50] sm:$0xff]  ;;  %v420_v21 = vld [vmem:[%s666_s0 + $0x58] sm:$0xff] }
   0x5   :  { %v58_v19 = vsel %vm30_vm0, %v406_v17, 0.0  ;;  %v61_v22 = vsel %vm30_vm0, %v415_v20, 0.0  ;;  %v64_v23 = vsel %vm30_vm0, %v420_v21, 0.0  ;;  %v429_v24 = vld [vmem:[%s666_s0 + $0x60] sm:$0xff]  ;;  %v434_v25 = vld [vmem:[%s666_s0 + $0x68] sm:$0xff]  ;;  %v443_v28 = vld [vmem:[%s666_s0 + $0x70] sm:$0xff] }
   0x6   :  { %v67_v26 = vsel %vm30_vm0, %v429_v24, 0.0  ;;  %v70_v27 = vsel %vm30_vm0, %v434_v25, 0.0  ;;  %v448_v29 = vld [vmem:[%s666_s0 + $0x78] sm:$0xff]  ;;  %v73_v30 = vsel %vm30_vm0, %v443_v28, 0.0 }
   0x7   :  { %35 = vadd.xlane.f32.xlu0 %v34_v6  ;;  %41 = vadd.xlane.f32.xlu1 %v40_v7  ;;  %v76_v31 = vsel %vm30_vm0, %v448_v29, 0.0 }
   0xb   :  { %44 = vadd.xlane.f32.xlu0 %v43_v10  ;;  %47 = vadd.xlane.f32.xlu1 %v46_v11 }
   0xf   :  { %50 = vadd.xlane.f32.xlu0 %v49_v14  ;;  %53 = vadd.xlane.f32.xlu1 %v52_v15 }
  0x13   :  { %56 = vadd.xlane.f32.xlu0 %v55_v18  ;;  %59 = vadd.xlane.f32.xlu1 %v58_v19 }
  0x17   :  { %62 = vadd.xlane.f32.xlu0 %v61_v22  ;;  %65 = vadd.xlane.f32.xlu1 %v64_v23 }
  0x1b   :  { %68 = vadd.xlane.f32.xlu0 %v67_v26  ;;  %71 = vadd.xlane.f32.xlu1 %v70_v27 }
  0x1f   :  { %74 = vadd.xlane.f32.xlu0 %v73_v30  ;;  %77 = vadd.xlane.f32.xlu1 %v76_v31 }
  0x90   :  { %v33_v32 = vpop.xlane.xlu0 %32  ;;  %v39_v33 = vpop.xlane.xlu1 %38 }
  0x91   :  { %v80_v34 = vmul.f32 0.0625, %v33_v32  ;;  %v82_v35 = vmul.f32 0.0625, %v39_v33 }
  0x93   :  { %v454_v36 = vsub.f32 %v14_v0, %v80_v34  ;;  %v456_v37 = vsub.f32 %v16_v1, %v82_v35 }
  0x94   :  { %v36_v38 = vpop.xlane.xlu0 %35  ;;  %v42_v39 = vpop.xlane.xlu1 %41 }
  0x95   :  { %v81_v40 = vmul.f32 0.0625, %v36_v38  ;;  %v83_v41 = vmul.f32 0.0625, %v42_v39  ;;  %v112_v42 = vmul.f32 %v454_v36, %v454_v36  ;;  %v114_v43 = vmul.f32 %v456_v37, %v456_v37 }
  0x97   :  { %v462_v44 = vsub.f32 %v15_v2, %v81_v40  ;;  %v464_v45 = vsub.f32 %v17_v5, %v83_v41  ;;  %v128_v46 = vsel %vm30_vm0, %v112_v42, 0.0  ;;  %v134_v49 = vsel %vm30_vm0, %v114_v43, 0.0 }
  0x98   :  { %129 = vadd.xlane.f32.xlu0 %v128_v46  ;;  %v45_v47 = vpop.xlane.xlu0 %44  ;;  %v48_v48 = vpop.xlane.xlu1 %47 }
  0x99   :  { %v84_v50 = vmul.f32 0.0625, %v45_v47  ;;  %v85_v51 = vmul.f32 0.0625, %v48_v48  ;;  %v113_v52 = vmul.f32 %v462_v44, %v462_v44  ;;  %v115_v53 = vmul.f32 %v464_v45, %v464_v45 }
  0x9b   :  { %v472_v54 = vsub.f32 %v18_v8, %v84_v50  ;;  %v474_v55 = vsub.f32 %v19_v9, %v85_v51  ;;  %v131_v56 = vsel %vm30_vm0, %v113_v52, 0.0  ;;  %v137_v59 = vsel %vm30_vm0, %v115_v53, 0.0 }
  0x9c   :  { %135 = vadd.xlane.f32.xlu0 %v134_v49  ;;  %132 = vadd.xlane.f32.xlu1 %v131_v56  ;;  %v51_v57 = vpop.xlane.xlu0 %50  ;;  %v54_v58 = vpop.xlane.xlu1 %53 }
  0x9d   :  { %v86_v60 = vmul.f32 0.0625, %v51_v57  ;;  %v87_v61 = vmul.f32 0.0625, %v54_v58  ;;  %v116_v62 = vmul.f32 %v472_v54, %v472_v54  ;;  %v117_v63 = vmul.f32 %v474_v55, %v474_v55 }
  0x9f   :  { %v483_v0 = vsub.f32 %v387_v12, %v86_v60  ;;  %v486_v1 = vsub.f32 %v392_v13, %v87_v61  ;;  %v140_v2 = vsel %vm30_vm0, %v116_v62, 0.0  ;;  %v143_v5 = vsel %vm30_vm0, %v117_v63, 0.0 }
  0xa0   :  { %138 = vadd.xlane.f32.xlu1 %v137_v59  ;;  %141 = vadd.xlane.f32.xlu0 %v140_v2  ;;  %v57_v3 = vpop.xlane.xlu0 %56  ;;  %v60_v4 = vpop.xlane.xlu1 %59 }
  0xa1   :  { %v88_v6 = vmul.f32 0.0625, %v57_v3  ;;  %v89_v7 = vmul.f32 0.0625, %v60_v4  ;;  %v118_v8 = vmul.f32 %v483_v0, %v483_v0  ;;  %v119_v9 = vmul.f32 %v486_v1, %v486_v1 }
  0xa3   :  { %v495_v10 = vsub.f32 %v401_v16, %v88_v6  ;;  %v498_v11 = vsub.f32 %v406_v17, %v89_v7  ;;  %v146_v12 = vsel %vm30_vm0, %v118_v8, 0.0  ;;  %v149_v15 = vsel %vm30_vm0, %v119_v9, 0.0 }
  0xa4   :  { %144 = vadd.xlane.f32.xlu1 %v143_v5  ;;  %147 = vadd.xlane.f32.xlu0 %v146_v12  ;;  %v63_v13 = vpop.xlane.xlu0 %62  ;;  %v66_v14 = vpop.xlane.xlu1 %65 }
  0xa5   :  { %v90_v18 = vmul.f32 0.0625, %v63_v13  ;;  %v91_v19 = vmul.f32 0.0625, %v66_v14  ;;  %v120_v22 = vmul.f32 %v495_v10, %v495_v10  ;;  %v121_v16 = vmul.f32 %v498_v11, %v498_v11  ;;  %v547_v14 = vld [vmem:[%s667_s1] ss:$0 sm:$0xff] }
  0xa7   :  { %v507_v23 = vsub.f32 %v415_v20, %v90_v18  ;;  %v510_v17 = vsub.f32 %v420_v21, %v91_v19  ;;  %v152_v26 = vsel %vm30_vm0, %v120_v22, 0.0  ;;  %v155_v31 = vsel %vm30_vm0, %v121_v16, 0.0 }
  0xa8   :  { %150 = vadd.xlane.f32.xlu1 %v149_v15  ;;  %153 = vadd.xlane.f32.xlu0 %v152_v26  ;;  %v69_v27 = vpop.xlane.xlu0 %68  ;;  %v72_v30 = vpop.xlane.xlu1 %71  ;;  %v553_v26 = vld [vmem:[%s668_s2] ss:$0 sm:$0xff] }
  0xa9   :  { %v92_v32 = vmul.f32 0.0625, %v69_v27  ;;  %v93_v33 = vmul.f32 0.0625, %v72_v30  ;;  %v122_v34 = vmul.f32 %v507_v23, %v507_v23  ;;  %v123_v20 = vmul.f32 %v510_v17, %v510_v17 }
  0xab   :  { %v519_v35 = vsub.f32 %v429_v24, %v92_v32  ;;  %v522_v21 = vsub.f32 %v434_v25, %v93_v33  ;;  %v158_v38 = vsel %vm30_vm0, %v122_v34, 0.0  ;;  %v161_v41 = vsel %vm30_vm0, %v123_v20, 0.0 }
  0xac   :  { %156 = vadd.xlane.f32.xlu1 %v155_v31  ;;  %159 = vadd.xlane.f32.xlu0 %v158_v38  ;;  %v75_v39 = vpop.xlane.xlu0 %74  ;;  %v78_v40 = vpop.xlane.xlu1 %77 }
  0xad   :  { %v94_v42 = vmul.f32 0.0625, %v75_v39  ;;  %v95_v43 = vmul.f32 0.0625, %v78_v40  ;;  %v124_v46 = vmul.f32 %v519_v35, %v519_v35  ;;  %v125_v24 = vmul.f32 %v522_v21, %v522_v21 }
  0xaf   :  { %v531_v47 = vsub.f32 %v443_v28, %v94_v42  ;;  %v534_v25 = vsub.f32 %v448_v29, %v95_v43  ;;  %v164_v48 = vsel %vm30_vm0, %v124_v46, 0.0  ;;  %v167_v49 = vsel %vm30_vm0, %v125_v24, 0.0 }
  0xb0   :  { %162 = vadd.xlane.f32.xlu1 %v161_v41  ;;  %165 = vadd.xlane.f32.xlu0 %v164_v48 }
  0xb1   :  { %v126_v50 = vmul.f32 %v531_v47, %v531_v47  ;;  %v127_v51 = vmul.f32 %v534_v25, %v534_v25 }
  0xb3   :  { %v170_v52 = vsel %vm30_vm0, %v126_v50, 0.0  ;;  %v173_v28 = vsel %vm30_vm0, %v127_v51, 0.0 }
  0xb4   :  { %168 = vadd.xlane.f32.xlu1 %v167_v49  ;;  %171 = vadd.xlane.f32.xlu0 %v170_v52 }
  0xb8   :  { %174 = vadd.xlane.f32.xlu1 %v173_v28 }
 0x125   :  { %v130_v29 = vpop.xlane.xlu0 %129 }
 0x126   :  { %v176_v53 = vmul.f32 0.0625, %v130_v29 }
 0x128   :  { %v192_v56 = vadd.f32 1e-05, %v176_v53 }
 0x129   :  { %v133_v57 = vpop.xlane.xlu1 %132  ;;  %v136_v58 = vpop.xlane.xlu0 %135 }
 0x12a   :  { %308 = vrsqrt.f32 %v192_v56  ;;  %v177_v59 = vmul.f32 0.0625, %v133_v57  ;;  %v178_v60 = vmul.f32 0.0625, %v136_v58 }
 0x12c   :  { %v193_v61 = vadd.f32 1e-05, %v177_v59  ;;  %v194_v62 = vadd.f32 1e-05, %v178_v60 }
 0x12d   :  { %v139_v63 = vpop.xlane.xlu1 %138  ;;  %v142_v2 = vpop.xlane.xlu0 %141 }
 0x12e   :  { %310 = vrsqrt.f32 %v193_v61  ;;  %v179_v3 = vmul.f32 0.0625, %v139_v63  ;;  %v180_v4 = vmul.f32 0.0625, %v142_v2 }
 0x12f   :  { %312 = vrsqrt.f32 %v194_v62 }
 0x130   :  { %v195_v5 = vadd.f32 1e-05, %v179_v3  ;;  %v196_v6 = vadd.f32 1e-05, %v180_v4 }
 0x131   :  { %v145_v7 = vpop.xlane.xlu1 %144  ;;  %v148_v8 = vpop.xlane.xlu0 %147 }
 0x132   :  { %314 = vrsqrt.f32 %v195_v5  ;;  %v181_v9 = vmul.f32 0.0625, %v145_v7  ;;  %v182_v12 = vmul.f32 0.0625, %v148_v8 }
 0x133   :  { %316 = vrsqrt.f32 %v196_v6 }
 0x134   :  { %v309_v13 = vpop.eup %308  ;;  %v197_v15 = vadd.f32 1e-05, %v181_v9  ;;  %v198_v18 = vadd.f32 1e-05, %v182_v12 }
 0x135   :  { %v224_v19 = vmul.f32 %v309_v13, %v454_v36  ;;  %v151_v22 = vpop.xlane.xlu1 %150  ;;  %v154_v16 = vpop.xlane.xlu0 %153 }
 0x136   :  { %318 = vrsqrt.f32 %v197_v15  ;;  %v183_v27 = vmul.f32 0.0625, %v151_v22  ;;  %v184_v30 = vmul.f32 0.0625, %v154_v16 }
 0x137   :  { %v247_v31 = vmul.f32 %v547_v14, %v224_v19  ;;  %320 = vrsqrt.f32 %v198_v18 }
 0x138   :  { %v311_v32 = vpop.eup %310  ;;  %v199_v33 = vadd.f32 1e-05, %v183_v27  ;;  %v200_v34 = vadd.f32 1e-05, %v184_v30 }
 0x139   :  { %v313_v20 = vpop.eup %312  ;;  %v270_v38 = vadd.f32 %v553_v26, %v247_v31  ;;  %v225_v36 = vmul.f32 %v311_v32, %v462_v44  ;;  %v157_v39 = vpop.xlane.xlu1 %156 }
 0x13a   :  { %v160_v40 = vpop.xlane.xlu0 %159  ;;  %v226_v41 = vmul.f32 %v313_v20, %v456_v37  ;;  %322 = vrsqrt.f32 %v199_v33  ;;  %v185_v42 = vmul.f32 0.0625, %v157_v39 }
 0x13b   :  { %v186_v43 = vmul.f32 0.0625, %v160_v40  ;;  %286 = vst.msk [vmem:[%s669_s3] sm:$0xff] %vm30_vm0, %v270_v38  ;;  %v248_v46 = vmul.f32 %v547_v14, %v225_v36  ;;  %324 = vrsqrt.f32 %v200_v34 }
 0x13c   :  { %v315_v24 = vpop.eup %314  ;;  %v249_v48 = vmul.f32 %v547_v14, %v226_v41  ;;  %v201_v49 = vadd.f32 1e-05, %v185_v42 }
 0x13d   :  { %v202_v44 = vadd.f32 1e-05, %v186_v43  ;;  %v317_v50 = vpop.eup %316  ;;  %v271_v51 = vadd.f32 %v553_v26, %v248_v46  ;;  %v227_v37 = vmul.f32 %v315_v24, %v464_v45  ;;  %v163_v52 = vpop.xlane.xlu1 %162 }
 0x13e   :  { %v166_v28 = vpop.xlane.xlu0 %165  ;;  %v272_v29 = vadd.f32 %v553_v26, %v249_v48  ;;  %v228_v53 = vmul.f32 %v317_v50, %v472_v54  ;;  %326 = vrsqrt.f32 %v201_v49  ;;  %v187_v56 = vmul.f32 0.0625, %v163_v52 }
 0x13f   :  { %287 = vst.msk [vmem:[%s669_s3 + $0x8] sm:$0xff] %vm30_vm0, %v271_v51  ;;  %v250_v57 = vmul.f32 %v547_v14, %v227_v37  ;;  %328 = vrsqrt.f32 %v202_v44  ;;  %v188_v58 = vmul.f32 0.0625, %v166_v28 }
 0x140   :  { %v319_v59 = vpop.eup %318  ;;  %288 = vst.msk [vmem:[%s669_s3 + $0x10] sm:$0xff] %vm30_vm0, %v272_v29  ;;  %v251_v45 = vmul.f32 %v547_v14, %v228_v53  ;;  %v203_v54 = vadd.f32 1e-05, %v187_v56 }
 0x141   :  { %v321_v60 = vpop.eup %320  ;;  %v273_v61 = vadd.f32 %v553_v26, %v250_v57  ;;  %v229_v62 = vmul.f32 %v319_v59, %v474_v55  ;;  %v204_v63 = vadd.f32 1e-05, %v188_v58  ;;  %v169_v2 = vpop.xlane.xlu1 %168 }
 0x142   :  { %v172_v3 = vpop.xlane.xlu0 %171  ;;  %v274_v4 = vadd.f32 %v553_v26, %v251_v45  ;;  %v230_v5 = vmul.f32 %v321_v60, %v483_v0  ;;  %330 = vrsqrt.f32 %v203_v54  ;;  %v189_v6 = vmul.f32 0.0625, %v169_v2 }
 0x143   :  { %289 = vst.msk [vmem:[%s669_s3 + $0x18] sm:$0xff] %vm30_vm0, %v273_v61  ;;  %v252_v7 = vmul.f32 %v547_v14, %v229_v62  ;;  %332 = vrsqrt.f32 %v204_v63  ;;  %v190_v8 = vmul.f32 0.0625, %v172_v3 }
 0x144   :  { %v323_v9 = vpop.eup %322  ;;  %290 = vst.msk [vmem:[%s669_s3 + $0x20] sm:$0xff] %vm30_vm0, %v274_v4  ;;  %v253_v55 = vmul.f32 %v547_v14, %v230_v5  ;;  %v205_v0 = vadd.f32 1e-05, %v189_v6 }
 0x145   :  { %v325_v12 = vpop.eup %324  ;;  %v275_v13 = vadd.f32 %v553_v26, %v252_v7  ;;  %v231_v15 = vmul.f32 %v323_v9, %v486_v1  ;;  %v206_v18 = vadd.f32 1e-05, %v190_v8  ;;  %v175_v19 = vpop.xlane.xlu1 %174 }
 0x146   :  { %v276_v22 = vadd.f32 %v553_v26, %v253_v55  ;;  %v232_v16 = vmul.f32 %v325_v12, %v495_v10  ;;  %334 = vrsqrt.f32 %v205_v0  ;;  %v191_v27 = vmul.f32 0.0625, %v175_v19 }
 0x147   :  { %291 = vst.msk [vmem:[%s669_s3 + $0x28] sm:$0xff] %vm30_vm0, %v275_v13  ;;  %v254_v30 = vmul.f32 %v547_v14, %v231_v15  ;;  %336 = vrsqrt.f32 %v206_v18 }
 0x148   :  { %v327_v31 = vpop.eup %326  ;;  %292 = vst.msk [vmem:[%s669_s3 + $0x30] sm:$0xff] %vm30_vm0, %v276_v22  ;;  %v255_v1 = vmul.f32 %v547_v14, %v232_v16  ;;  %v207_v32 = vadd.f32 1e-05, %v191_v27 }
 0x149   :  { %v329_v10 = vpop.eup %328  ;;  %v277_v33 = vadd.f32 %v553_v26, %v254_v30  ;;  %v233_v34 = vmul.f32 %v327_v31, %v498_v11 }
 0x14a   :  { %v278_v20 = vadd.f32 %v553_v26, %v255_v1  ;;  %v234_v38 = vmul.f32 %v329_v10, %v507_v23  ;;  %338 = vrsqrt.f32 %v207_v32 }
 0x14b   :  { %293 = vst.msk [vmem:[%s669_s3 + $0x38] sm:$0xff] %vm30_vm0, %v277_v33  ;;  %v256_v36 = vmul.f32 %v547_v14, %v233_v34 }
 0x14c   :  { %v331_v39 = vpop.eup %330  ;;  %294 = vst.msk [vmem:[%s669_s3 + $0x40] sm:$0xff] %vm30_vm0, %v278_v20  ;;  %v257_v11 = vmul.f32 %v547_v14, %v234_v38 }
 0x14d   :  { %v333_v40 = vpop.eup %332  ;;  %v279_v41 = vadd.f32 %v553_v26, %v256_v36  ;;  %v235_v23 = vmul.f32 %v331_v39, %v510_v17 }
 0x14e   :  { %v280_v42 = vadd.f32 %v553_v26, %v257_v11  ;;  %v236_v43 = vmul.f32 %v333_v40, %v519_v35 }
 0x14f   :  { %295 = vst.msk [vmem:[%s669_s3 + $0x48] sm:$0xff] %vm30_vm0, %v279_v41  ;;  %v258_v46 = vmul.f32 %v547_v14, %v235_v23 }
 0x150   :  { %v335_v24 = vpop.eup %334  ;;  %296 = vst.msk [vmem:[%s669_s3 + $0x50] sm:$0xff] %vm30_vm0, %v280_v42  ;;  %v259_v48 = vmul.f32 %v547_v14, %v236_v43 }
 0x151   :  { %v337_v17 = vpop.eup %336  ;;  %v281_v49 = vadd.f32 %v553_v26, %v258_v46  ;;  %v237_v35 = vmul.f32 %v335_v24, %v522_v21 }
 0x152   :  { %v282_v44 = vadd.f32 %v553_v26, %v259_v48  ;;  %v238_v50 = vmul.f32 %v337_v17, %v531_v47 }
 0x153   :  { %297 = vst.msk [vmem:[%s669_s3 + $0x58] sm:$0xff] %vm30_vm0, %v281_v49  ;;  %v260_v51 = vmul.f32 %v547_v14, %v237_v35 }
 0x154   :  { %v339_v37 = vpop.eup %338  ;;  %298 = vst.msk [vmem:[%s669_s3 + $0x60] sm:$0xff] %vm30_vm0, %v282_v44  ;;  %v261_v52 = vmul.f32 %v547_v14, %v238_v50 }
 0x155   :  { %v283_v21 = vadd.f32 %v553_v26, %v260_v51  ;;  %v239_v28 = vmul.f32 %v339_v37, %v534_v25 }
 0x156   :  { %v284_v47 = vadd.f32 %v553_v26, %v261_v52 }
 0x157   :  { %299 = vst.msk [vmem:[%s669_s3 + $0x68] sm:$0xff] %vm30_vm0, %v283_v21  ;;  %v262_v29 = vmul.f32 %v547_v14, %v239_v28 }
 0x158   :  { %300 = vst.msk [vmem:[%s669_s3 + $0x70] sm:$0xff] %vm30_vm0, %v284_v47 }
 0x159   :  { %v285_v53 = vadd.f32 %v553_v26, %v262_v29 }
 0x15b   :  { %301 = vst.msk [vmem:[%s669_s3 + $0x78] sm:$0xff] %vm30_vm0, %v285_v53 }

// kernel: run.20
= control target key start
LH: loop header
LB: loop body
LE: loop exit
PB: predicated region body
PF: predicated region fallthrough
CT: control target
= control target key end

     0   :  { %s1339_s13 = smov 0   ;;  %s1341_s14 = smov 0   ;;  %s1458_s0 = inlined_call_operand.vmem [shape: f32[2,2,8,16], index: 0, kind: input, shape index: {}]   ;;  %s1459_s1 = inlined_call_operand.vmem [shape: f32[2,2,8,16], index: 1, kind: input, shape index: {}]   ;;  %s1460_s2 = inlined_call_operand.vmem [shape: f32[2,2,8,16], index: 2, kind: input, shape index: {}]   ;;  %s1461_s3 = inlined_call_operand.vmem [shape: f32[2,2,8,12], index: 3, kind: input, shape index: {}]   ;;  %s1462_s4 = inlined_call_operand.vmem [shape: f32[2,2,8,12], index: 4, kind: input, shape index: {}]   ;;  %s1463_s5 = inlined_call_operand.vmem [shape: f32[2,2,8,12], index: 5, kind: input, shape index: {}]   ;;  %s1464_s6 = inlined_call_operand.vmem [shape: f32[2,2,8,8], index: 6, kind: input, shape index: {}]   ;;  %s1465_s7 = inlined_call_operand.vmem [shape: f32[2,1,8], index: 7, kind: input, shape index: {}]   ;;  %s1466_s8 = inlined_call_operand.vmem [shape: f32[2,8,1], index: 8, kind: input, shape index: {}]   ;;  %s1467_s9 = inlined_call_operand.vmem [shape: f32[2,2,8,28], index: 9, kind: output, shape index: {0}]   ;;  %s1468_s10 = inlined_call_operand.vmem [shape: bf16[2,2,8,8], index: 10, kind: output, shape index: {1}]  }
   0x1   :  { %s1343_s15 = smov 0   ;;  %s1345_s16 = smov 0  }
   0x2   :  { %s1347_s17 = smov 0  }
   0x3 LB: > { %s30_s18 = sadd.s32 1, %s1270_s15  ;;  %s33_s19 = sadd.s32 1, %s1274_s16  ;;  %s1278_s17 = sphi %s1347_s17, %s21_s17   ;;  %s1274_s16 = sphi %s1345_s16, %s1472_s16   ;;  %s1270_s15 = sphi %s1343_s15, %s1471_s15   ;;  %s1266_s14 = sphi %s1341_s14, %s1470_s14   ;;  %s1262_s13 = sphi %s1339_s13, %s1469_s13  }
   0x4   : > { %p31_p0 = scmp.ge.s32.totalorder %s30_s18, 2  ;;  %p1141_p1 = scmp.ge.s32.totalorder %s1278_s17, 1 }
   0x5   : > { %p443_p2 = scmp.lt.s32.totalorder %s1278_s17, 5 }
   0x6   : > { %s1474_s18 = smov (%p31_p0, %s30_s18), 0  ;;  %s1476_s19 = smov (!%p31_p0, %s33_s19), %s1274_s16 }
   0x7   : > { %p444_p3 = pnand %p1141_p1, %p443_p2  ;;  %p35_p4 = scmp.ge.s32.totalorder %s1476_s19, 2 }
   0x8   : > { %p550_p5 = scmp.lt.s32.totalorder (!%p444_p3), %s1266_s14, 1  ;;  %p552_p6 = scmp.lt.s32.totalorder (!%p444_p3), %s1262_s13, 1  ;;  %v1280_v0 = vmov (!%p444_p3), 0.0   ;;  %vm1281_vm0 = vmmov (!%p444_p3), 0   ;;  %vm657_vm1 = vcmask (!%p444_p3), 97280   ;;  %v1283_v9 = vmov (!%p444_p3), 0  }
   0x9   : > { %s1478_s19 = smov (%p35_p4, %s1476_s19), 0  ;;  %447 = sbr.rel (%p444_p3) target bundleno = 1022 (0x3fe), region = 56 }
   0xa   : > { %1173 = vmatprep.subr.bf16.mxu0 (!%p444_p3), %v1280_v0  ;;  %1179 = vmatprep.subr.bf16.mxu1 (!%p444_p3), %v1280_v0  ;;  %s1282_s29 = smov (!%p444_p3), 16   ;;  %vm646_vm2 = vcmask (!%p444_p3), 130048   ;;  %vm665_vm3 = vcmask (!%p444_p3), 228352   ;;  %v745_v21 = vlaneseq (!%p444_p3)  ;;  %vm764_vm5 = vcmask (!%p444_p3), 64512  }
   0xb   : > { %1175 = vmatprep.mubr.msk.bf16.mxu0 (!%p444_p3), %vm1281_vm0, %v1280_v0  ;;  %1181 = vmatprep.mubr.msk.bf16.mxu1 (!%p444_p3), %vm1281_vm0, %v1280_v0  ;;  %vm780_vm6 = vcmask (!%p444_p3), 1043456   ;;  %vm873_vm7 = vcmask (!%p444_p3), 60416  }
   0xc   : > { %1235 = vset.pattern.permute.xlu0 (!%p444_p3), %v1283_v9  ;;  %v746_v22 = vshrl.u32 (!%p444_p3), %v745_v21, 7 }
   0xe   : > { %v747_v24 = vsub.s32 (!%p444_p3), 0, %v746_v22 }
  0x10   : > { %s1480_s14 = smov (!%p550_p5, %s1266_s14), 1  ;;  %s1482_s13 = smov (!%p552_p6, %s1262_s13), 1 }
  0x11   : > { %s1142_s20 = sshll.u32 %s1480_s14, 1  ;;  %s1156_s30 = sshll.u32 %s1480_s14, 3 }
  0x12   : > { %s1378_s21 = sadd.s32 %s1142_s20, %s1482_s13  ;;  %s612_s13 = scalar_lea.vmem %s1466_s8, %s1156_s30 }
  0x13   : > { %s1381_s22 = sshll.u32 %s1378_s21, 3  ;;  %v640_v10 = vld [vmem:[%s612_s13] sm:$0xff]  ;;  %s608_s11 = scalar_lea.vmem %s1465_s7, %s1480_s14 }
  0x14   : > { %s589_s25 = scalar_lea.vmem %s1462_s4, %s1381_s22  ;;  %s581_s28 = scalar_lea.vmem %s1461_s3, %s1381_s22  ;;  %v1162_v25 = vld [vmem:[%s608_s11] ss:$0 sm:$0xff] }
  0x15   : > { %v635_v1 = vld [vmem:[%s589_s25] sm:$0xff]  ;;  %s565_s24 = scalar_lea.vmem %s1459_s1, %s1381_s22  ;;  %s557_s27 = scalar_lea.vmem %s1458_s0, %s1381_s22 }
  0x16   : > { %v634_v2 = vld [vmem:[%s581_s28] sm:$0xff]  ;;  %v649_v3 = vmul.f32 1.4142135, %v635_v1  ;;  %v661_v4 = vmul.f32 %v635_v1, %v635_v1  ;;  %s605_s20 = scalar_lea.vmem %s1464_s6, %s1381_s22  ;;  %s1160_s28 = sshll.u32 %s1378_s21, 2 }
  0x17   : > { %v656_v5 = vmul.f32 %v634_v2, %v634_v2  ;;  %v641_v6 = vmul.f32 1.4142135, %v634_v2  ;;  %v631_v11 = vld [vmem:[%s565_s24] sm:$0xff]  ;;  %s573_s24 = scalar_lea.vmem %s1460_s2, %s1381_s22  ;;  %s628_s12 = scalar_lea.vmem %s1468_s10, %s1160_s28 }
  0x18   : > { %651 = vrot.lane.b32.xlu0 %v649_v3, %s1282_s29  ;;  %v662_v7 = vsel %vm657_vm1, %v661_v4, 0.0  ;;  %v630_v15 = vld [vmem:[%s557_s27] sm:$0xff]  ;;  %s597_s27 = scalar_lea.vmem %s1463_s5, %s1381_s22 }
  0x19   : > { %663 = vadd.xlane.f32.xlu1 %v662_v7  ;;  %v658_v8 = vsel %vm657_vm1, %v656_v5, 0.0  ;;  %v638_v27 = vld [vmem:[%s605_s20] sm:$0xff]  ;;  %s620_s20 = scalar_lea.vmem %s1467_s9, %s1381_s22 }
  0x1a   : > { %v632_v45 = vld [vmem:[%s573_s24] sm:$0xff] }
  0x1b   : > { %v633_v46 = vpack.c.bf16 %v632_v45, %v632_v45  ;;  %v636_v49 = vld [vmem:[%s597_s27] sm:$0xff] }
  0x1c   : > { %643 = vrot.lane.b32.xlu0 %v641_v6, %s1282_s29  ;;  %v637_v50 = vpack.c.bf16 %v636_v49, %v636_v49 }
  0x1d   : > { %659 = vadd.xlane.f32.xlu1 %v658_v8  ;;  %v782_v47 = vsel %vm780_vm6, %v633_v46, 0 }
  0x1e   : > { %1180 = vmatpush3.bf16.msra.mxu1 %v782_v47  ;;  %v825_v53 = vsel %vm780_vm6, %v637_v50, 0 }
  0x1f   : > { %1185 = vmatprep.subr.bf16.mxu1 %v1280_v0 }
  0x20   : > { %752 = vperm.xlu0 %1235, %v640_v10  }
  0x8a   : > { %v652_v12 = vpop.permute.xlu0 %651 }
  0x8b   : > { %v654_v13 = vsel %vm646_vm2, %v631_v11, %v652_v12 }
  0x8c   : > { %v655_v14 = vpack.c.bf16 %v654_v13, %v654_v13 }
  0x8e   : > { %v670_v16 = vsel %vm665_vm3, %v655_v14, 0  ;;  %v644_v17 = vpop.permute.xlu0 %643 }
  0x8f   : > { %1174 = vmatpush3.bf16.xpose.msra.mxu0 %v670_v16  ;;  %v647_v18 = vsel %vm646_vm2, %v630_v15, %v644_v17 }
  0x90   : > { %v648_v19 = vpack.c.bf16 %v647_v18, %v647_v18 }
  0x96   : > { %1176 = vmatmul.mubr.msk.bf16.vlgmr.msra.gmra.mrb[0].mxu0 %vm665_vm3, %v648_v19 }
  0x9f   : > { %v753_v26 = vpop.permute.xlu0 %752 }
  0xa0   : > { %v761_v30 = vmul.f32 %v1162_v25, %v753_v26 }
  0xa2   : > { %vm762_vm4 = vcmp.gt.f32.partialorder %v761_v30, 0.0 }
  0xa6   : > { %v664_v20 = vpop.xlane.xlu1 %663 }
  0xa7   : > { %713 = vxpose.xlu1.b32.start.end [1/1] (short) (narrow) %v664_v20, 8 }
  0xaa   : > { %v660_v23 = vpop.xlane.xlu1 %659 }
 0x127   : > { %v729_v28 = vpop.trf.xlu1 }
 0x128   : > { %v748_v33 = vrot.slane %v729_v28, %v747_v24 }
 0x169   : > { %v706_v29 = vpop.f32.mrb[0].mxu0 }
 0x16a   : > { %v707_v31 = vadd.f32 %v706_v29, %v638_v27  ;;  %v1177_v32 = vpop.f32.mrb[1].mxu0 }
 0x16b   : > { %v709_v34 = vpop.f32.mrb[2].mxu0 }
 0x16c   : > { %v712_v35 = vsub.f32 %v707_v31, %v660_v23  ;;  %v1178_v36 = vpop.f32.mrb[3].mxu0 }
 0x16e   : > { %v749_v37 = vsub.f32 %v712_v35, %v748_v33 }
 0x170   : > { %v763_v38 = vsel %vm762_vm4, %v749_v37, -1e+09 }
 0x171   : > { %v765_v39 = vsel %vm764_vm5, %v763_v38, -inf }
 0x172   : > { %766 = vmax.xlane.f32.xlu0 %v765_v39 }
 0x1ff   : > { %v767_v40 = vpop.xlane.xlu0 %766 }
 0x200   : > { %v768_v41 = vsub.f32 %v763_v38, %v767_v40 }
 0x202   : > { %v769_v42 = vmul.f32 1.442695, %v768_v41 }
 0x204   : > { %1236 = vpow2.f32 %v769_v42 }
 0x20e   : > { %v1237_v43 = vpop.eup %1236 }
 0x20f   : > { %v771_v44 = vsel %vm764_vm5, %v1237_v43, 0.0 }
 0x210   : > { %772 = vadd.xlane.f32.xlu0 %v771_v44 }
 0x29d   : > { %v773_v48 = vpop.xlane.xlu0 %772 }
 0x29e   : > { %1238 = vrcp.f32 %v773_v48 }
 0x2a8   : > { %v1239_v51 = vpop.eup %1238 }
 0x2a9   : > { %v775_v52 = vmul.f32 %v1239_v51, %v1237_v43 }
 0x2ab   : > { %v776_v54 = vpack.c.bf16 %v775_v52, %v775_v52 }
 0x2ad   : > { %1182 = vmatmul.mubr.msk.bf16.vlgmr.msra.gmra.mrb[0].mxu1 %vm764_vm5, %v776_v54  ;;  %874 = vst.msk [vmem:[%s628_s12] sm:$0xf] %vm873_vm7, %v776_v54 }
 0x2ae   : > { %1186 = vmatpush3.bf16.msra.mxu1 %v825_v53  ;;  %1187 = vmatprep.mubr.msk.bf16.mxu1 %vm1281_vm0, %v1280_v0 }
 0x2b5   : > { %1188 = vmatmul.mubr.msk.bf16.vlgmr.msra.gmra.mrb[4].mxu1 %vm764_vm5, %v776_v54 }
 0x380   : > { %v818_v55 = vpop.f32.mrb[0].mxu1 }
 0x381   : > { %v1183_v56 = vpop.f32.mrb[1].mxu1 }
 0x382   : > { %v821_v57 = vpop.f32.mrb[2].mxu1 }
 0x383   : > { %v1184_v58 = vpop.f32.mrb[3].mxu1 }
 0x388   : > { %v861_v59 = vpop.f32.mrb[4].mxu1 }
 0x389   : > { %868 = vrot.lane.b32.xlu0 %v861_v59, %s1282_s29  ;;  %v1189_v60 = vpop.f32.mrb[5].mxu1 }
 0x38a   : > { %v864_v61 = vpop.f32.mrb[6].mxu1 }
 0x38b   : > { %v1190_v62 = vpop.f32.mrb[7].mxu1 }
 0x3fb   : > { %v869_v63 = vpop.permute.xlu0 %868 }
 0x3fc   : > { %v871_v1 = vsel %vm646_vm2, %v818_v55, %v869_v63 }
 0x3fd   : > { %872 = vst.msk [vmem:[%s620_s20] sm:$0xff] %vm665_vm3, %v871_v1 }
 0x3fe PF: > { %s21_s17 = sadd.s32 1, %s1278_s17   ;;  %s1469_s13 = smov %s1270_s15 }
 0x3ff   : > { %p18_p7 = scmp.ge.s32.totalorder %s21_s17, 6   ;;  %s1470_s14 = smov %s1274_s16 }
 0x400   : > { %s1471_s15 = smov %s1474_s18  ;;  %s1472_s16 = smov %s1478_s19 }
 0x401   :  { %20 = sbr.rel (!%p18_p7) target bundleno = 3 (0x3), region = 122 }

// kernel: run.22
= control target key start
LH: loop header
LB: loop body
LE: loop exit
PB: predicated region body
PF: predicated region fallthrough
CT: control target
= control target key end

     0   :  { %vm43_vm0 = vcmask 261120   ;;  %v412_v15 = vmov 0.0   ;;  %vm413_vm1 = vmmov 0   ;;  %s541_s0 = inlined_call_operand.vmem [shape: f32[16,32], index: 0, kind: input, shape index: {}]   ;;  %s542_s3 = inlined_call_operand.vmem [shape: bf16[32,32], index: 3, kind: input, shape index: {}]   ;;  %s543_s1 = inlined_call_operand.vmem [shape: f32[1,32], index: 1, kind: input, shape index: {}]   ;;  %s544_s2 = inlined_call_operand.vmem [shape: f32[1,32], index: 2, kind: input, shape index: {}]   ;;  %s545_s5 = inlined_call_operand.vmem [shape: bf16[32,32], index: 5, kind: input, shape index: {}]   ;;  %s546_s4 = inlined_call_operand.vmem [shape: f32[1,32], index: 4, kind: input, shape index: {}]   ;;  %s547_s7 = inlined_call_operand.vmem [shape: bf16[32,32], index: 7, kind: input, shape index: {}]   ;;  %s548_s6 = inlined_call_operand.vmem [shape: f32[1,32], index: 6, kind: input, shape index: {}]   ;;  %s549_s8 = inlined_call_operand.vmem [shape: f32[1,32], index: 8, kind: input, shape index: {}]   ;;  %s550_s9 = inlined_call_operand.vmem [shape: f32[1,32], index: 9, kind: input, shape index: {}]   ;;  %s551_s10 = inlined_call_operand.vmem [shape: f32[1,32], index: 10, kind: input, shape index: {}]   ;;  %s552_s11 = inlined_call_operand.vmem [shape: f32[16,32], index: 11, kind: output, shape index: {}]  }
   0x1   :  { %v39_v0 = vld [vmem:[%s541_s0] sm:$0xff]  ;;  %v40_v1 = vld [vmem:[%s541_s0 + $0x8] sm:$0xff]  ;;  %372 = vmatprep.subr.bf16.mxu0 %v412_v15  ;;  %380 = vmatprep.subr.bf16.mxu1 %v412_v15 }
   0x2   :  { %v44_v2 = vsel %vm43_vm0, %v39_v0, 0.0  ;;  %v47_v3 = vsel %vm43_vm0, %v40_v1, 0.0  ;;  %v398_v14 = vld [vmem:[%s542_s3] sm:$0xff]   ;;  %v399_v16 = vld [vmem:[%s542_s3 + $0x8] sm:$0xff]   ;;  %376 = vmatprep.mubr.msk.bf16.mxu0 %vm413_vm1, %v412_v15  ;;  %384 = vmatprep.mubr.msk.bf16.mxu1 %vm413_vm1, %v412_v15 }
   0x3   :  { %45 = vadd.xlane.f32.xlu0 %v44_v2  ;;  %373 = vmatpush3.bf16.msra.mxu0 %v398_v14  ;;  %v347_v25 = vld [vmem:[%s543_s1] ss:$0 sm:$0xff]  ;;  %v401_v35 = vld [vmem:[%s545_s5 + $0x8] sm:$0xff]  }
   0x4   :  { %374 = vmatprep.subr.bf16.mxu0 %v412_v15  ;;  %v348_v29 = vld [vmem:[%s544_s2] ss:$0 sm:$0xff]  ;;  %v403_v47 = vld [vmem:[%s547_s7 + $0x8] sm:$0xff]  }
   0x5   :  { %v400_v34 = vld [vmem:[%s545_s5] sm:$0xff]  }
   0x6   :  { %381 = vmatpush3.bf16.msra.mxu1 %v400_v34  ;;  %v349_v36 = vld [vmem:[%s546_s4] ss:$0 sm:$0xff] }
   0x7   :  { %48 = vadd.xlane.f32.xlu0 %v47_v3  ;;  %375 = vmatpush3.bf16.msra.mxu0 %v399_v16  ;;  %v402_v46 = vld [vmem:[%s547_s7] sm:$0xff]  }
   0x8   :  { %388 = vmatprep.subr.bf16.mxu0 %v412_v15  ;;  %382 = vmatprep.subr.bf16.mxu1 %v412_v15  ;;  %v353_v48 = vld [vmem:[%s548_s6] ss:$0 sm:$0xff] }
   0x9   :  { %v357_v58 = vld [vmem:[%s549_s8] ss:$0 sm:$0xff] }
   0xa   :  { %383 = vmatpush3.bf16.msra.mxu1 %v401_v35 }
  0x90   :  { %v46_v4 = vpop.xlane.xlu0 %45 }
  0x91   :  { %v51_v5 = vmul.f32 0.03125, %v46_v4 }
  0x93   :  { %v53_v6 = vsub.f32 %v39_v0, %v51_v5 }
  0x94   :  { %v49_v7 = vpop.xlane.xlu0 %48 }
  0x95   :  { %v52_v8 = vmul.f32 0.03125, %v49_v7  ;;  %v55_v9 = vmul.f32 %v53_v6, %v53_v6 }
  0x97   :  { %v54_v10 = vsub.f32 %v40_v1, %v52_v8  ;;  %v57_v11 = vsel %vm43_vm0, %v55_v9, 0.0 }
  0x98   :  { %58 = vadd.xlane.f32.xlu1 %v57_v11 }
  0x99   :  { %v56_v12 = vmul.f32 %v54_v10, %v54_v10 }
  0x9b   :  { %v60_v13 = vsel %vm43_vm0, %v56_v12, 0.0 }
  0x9c   :  { %61 = vadd.xlane.f32.xlu1 %v60_v13 }
 0x125   :  { %v59_v17 = vpop.xlane.xlu1 %58 }
 0x126   :  { %v63_v18 = vmul.f32 0.03125, %v59_v17 }
 0x128   :  { %v65_v19 = vadd.f32 1e-05, %v63_v18 }
 0x129   :  { %v62_v20 = vpop.xlane.xlu1 %61 }
 0x12a   :  { %404 = vrsqrt.f32 %v65_v19  ;;  %v64_v21 = vmul.f32 0.03125, %v62_v20 }
 0x12c   :  { %v66_v22 = vadd.f32 1e-05, %v64_v21 }
 0x12e   :  { %406 = vrsqrt.f32 %v66_v22  ;;  %v361_v22 = vld [vmem:[%s550_s9] ss:$0 sm:$0xff] }
 0x134   :  { %v405_v23 = vpop.eup %404 }
 0x135   :  { %v69_v24 = vmul.f32 %v405_v23, %v53_v6 }
 0x137   :  { %v77_v28 = vmul.f32 %v347_v25, %v69_v24 }
 0x138   :  { %v407_v26 = vpop.eup %406 }
 0x139   :  { %v70_v27 = vmul.f32 %v407_v26, %v54_v10  ;;  %v85_v31 = vadd.f32 %v348_v29, %v77_v28 }
 0x13b   :  { %v78_v30 = vmul.f32 %v347_v25, %v70_v27  ;;  %v362_v25 = vld [vmem:[%s551_s10] ss:$0 sm:$0xff] }
 0x13d   :  { %v86_v32 = vadd.f32 %v348_v29, %v78_v30 }
 0x13f   :  { %v87_v33 = vpack.c.bf16 %v86_v32, %v85_v31 }
 0x141   :  { %377 = vmatmul.mubr.msk.bf16.vlgmr.msra.gmra.mrb[0].mxu0 %vm43_vm0, %v87_v33 }
 0x142   :  { %392 = vmatprep.mubr.msk.bf16.mxu0 %vm413_vm1, %v412_v15  ;;  %389 = vmatpush3.bf16.msra.mxu0 %v402_v46 }
 0x143   :  { %390 = vmatprep.subr.bf16.mxu0 %v412_v15 }
 0x146   :  { %391 = vmatpush3.bf16.msra.mxu0 %v403_v47 }
 0x214   :  { %v148_v37 = vpop.f32.mrb[0].mxu0 }
 0x215   :  { %v149_v38 = vadd.f32 %v349_v36, %v148_v37  ;;  %v378_v39 = vpop.f32.mrb[1].mxu0 }
 0x216   :  { %v151_v40 = vpop.f32.mrb[2].mxu0 }
 0x217   :  { %v152_v41 = vadd.f32 %v349_v36, %v151_v40  ;;  %v379_v42 = vpop.f32.mrb[3].mxu0  ;;  %v155_v43 = vmax.f32 %v149_v38, 0.0 }
 0x219   :  { %v156_v44 = vmax.f32 %v152_v41, 0.0 }
 0x21b   :  { %v157_v45 = vpack.c.bf16 %v156_v44, %v155_v43 }
 0x21d   :  { %385 = vmatmul.mubr.msk.bf16.vlgmr.msra.gmra.mrb[0].mxu1 %vm43_vm0, %v157_v45 }
 0x2f0   :  { %v218_v49 = vpop.f32.mrb[0].mxu1 }
 0x2f1   :  { %v219_v50 = vadd.f32 %v353_v48, %v218_v49  ;;  %v386_v51 = vpop.f32.mrb[1].mxu1 }
 0x2f2   :  { %v221_v52 = vpop.f32.mrb[2].mxu1 }
 0x2f3   :  { %v222_v53 = vadd.f32 %v353_v48, %v221_v52  ;;  %v387_v54 = vpop.f32.mrb[3].mxu1  ;;  %v225_v55 = vmax.f32 %v219_v50, 0.0 }
 0x2f5   :  { %v226_v56 = vmax.f32 %v222_v53, 0.0 }
 0x2f7   :  { %v227_v57 = vpack.c.bf16 %v226_v56, %v225_v55 }
 0x2f9   :  { %393 = vmatmul.mubr.msk.bf16.vlgmr.msra.gmra.mrb[4].mxu0 %vm43_vm0, %v227_v57 }
 0x3cc   :  { %v288_v59 = vpop.f32.mrb[4].mxu0 }
 0x3cd   :  { %v289_v60 = vadd.f32 %v357_v58, %v288_v59  ;;  %v394_v61 = vpop.f32.mrb[5].mxu0 }
 0x3ce   :  { %v291_v62 = vpop.f32.mrb[6].mxu0 }
 0x3cf   :  { %v292_v63 = vadd.f32 %v357_v58, %v291_v62  ;;  %v395_v0 = vpop.f32.mrb[7].mxu0  ;;  %v295_v1 = vadd.f32 %v289_v60, %v85_v31 }
 0x3d1   :  { %v299_v2 = vsel %vm43_vm0, %v295_v1, 0.0  ;;  %v296_v3 = vadd.f32 %v292_v63, %v86_v32 }
 0x3d2   :  { %300 = vadd.xlane.f32.xlu0 %v299_v2 }
 0x3d3   :  { %v302_v4 = vsel %vm43_vm0, %v296_v3, 0.0 }
 0x3d4   :  { %303 = vadd.xlane.f32.xlu1 %v302_v4 }
 0x45f   :  { %v301_v5 = vpop.xlane.xlu0 %300 }
 0x460   :  { %v305_v6 = vmul.f32 0.03125, %v301_v5 }
 0x461   :  { %v304_v7 = vpop.xlane.xlu1 %303 }
 0x462   :  { %v307_v8 = vsub.f32 %v295_v1, %v305_v6  ;;  %v306_v9 = vmul.f32 0.03125, %v304_v7 }
 0x464   :  { %v308_v10 = vsub.f32 %v296_v3, %v306_v9  ;;  %v309_v11 = vmul.f32 %v307_v8, %v307_v8 }
 0x466   :  { %v311_v12 = vsel %vm43_vm0, %v309_v11, 0.0  ;;  %v310_v13 = vmul.f32 %v308_v10, %v308_v10 }
 0x467   :  { %312 = vadd.xlane.f32.xlu0 %v311_v12 }
 0x468   :  { %v314_v14 = vsel %vm43_vm0, %v310_v13, 0.0 }
 0x469   :  { %315 = vadd.xlane.f32.xlu1 %v314_v14 }
 0x4f4   :  { %v313_v15 = vpop.xlane.xlu0 %312 }
 0x4f5   :  { %v317_v16 = vmul.f32 0.03125, %v313_v15 }
 0x4f6   :  { %v316_v17 = vpop.xlane.xlu1 %315 }
 0x4f7   :  { %v319_v18 = vadd.f32 1e-05, %v317_v16  ;;  %v318_v19 = vmul.f32 0.03125, %v316_v17 }
 0x4f9   :  { %408 = vrsqrt.f32 %v319_v18  ;;  %v320_v20 = vadd.f32 1e-05, %v318_v19 }
 0x4fb   :  { %410 = vrsqrt.f32 %v320_v20 }
 0x503   :  { %v409_v21 = vpop.eup %408 }
 0x504   :  { %v323_v23 = vmul.f32 %v409_v21, %v307_v8 }
 0x505   :  { %v411_v24 = vpop.eup %410 }
 0x506   :  { %v331_v26 = vmul.f32 %v361_v22, %v323_v23  ;;  %v324_v27 = vmul.f32 %v411_v24, %v308_v10 }
 0x508   :  { %v339_v28 = vadd.f32 %v362_v25, %v331_v26  ;;  %v332_v29 = vmul.f32 %v361_v22, %v324_v27 }
 0x50a   :  { %341 = vst.msk [vmem:[%s552_s11] sm:$0xff] %vm43_vm0, %v339_v28  ;;  %v340_v30 = vadd.f32 %v362_v25, %v332_v29 }
 0x50c   :  { %342 = vst.msk [vmem:[%s552_s11 + $0x8] sm:$0xff] %vm43_vm0, %v340_v30 }

// kernel: run.21
= control target key start
LH: loop header
LB: loop body
LE: loop exit
PB: predicated region body
PF: predicated region fallthrough
CT: control target
= control target key end

     0   :  { %v164_v0 = vmov 0.0   ;;  %vm165_vm0 = vmmov 0   ;;  %vm73_vm1 = vcmask 785408   ;;  %vm118_vm2 = vcmask 261120   ;;  %s219_s1 = inlined_call_operand.vmem [shape: bf16[96,32], index: 1, kind: input, shape index: {}]   ;;  %s220_s0 = inlined_call_operand.vmem [shape: f32[16,96], index: 0, kind: input, shape index: {}]   ;;  %s221_s2 = inlined_call_operand.vmem [shape: f32[1,32], index: 2, kind: input, shape index: {}]   ;;  %s222_s3 = inlined_call_operand.vmem [shape: f32[16,32], index: 3, kind: output, shape index: {}]  }
   0x1   :  { %140 = vmatprep.subr.bf16.mxu0 %v164_v0  ;;  %v158_v1 = vld [vmem:[%s219_s1] sm:$0xff]   ;;  %152 = vmatprep.mubr.msk.bf16.mxu0 %vm165_vm0, %v164_v0  ;;  %v159_v2 = vld [vmem:[%s219_s1 + $0x8] sm:$0xff]   ;;  %v160_v3 = vld [vmem:[%s219_s1 + $0x10] sm:$0xff]  }
   0x2   :  { %141 = vmatpush3.bf16.msra.mxu0 %v158_v1  ;;  %v161_v4 = vld [vmem:[%s219_s1 + $0x18] sm:$0xff]   ;;  %v162_v5 = vld [vmem:[%s219_s1 + $0x20] sm:$0xff]   ;;  %v163_v6 = vld [vmem:[%s219_s1 + $0x28] sm:$0xff]  }
   0x3   :  { %142 = vmatprep.subr.bf16.mxu0 %v164_v0  ;;  %v15_v7 = vld [vmem:[%s220_s0] sm:$0xff]  ;;  %v16_v8 = vld [vmem:[%s220_s0 + $0x8] sm:$0xff] }
   0x4   :  { %v17_v9 = vpack.c.bf16 %v16_v8, %v15_v7  ;;  %v125_v10 = vld [vmem:[%s221_s2] ss:$0 sm:$0xff] }
   0x6   :  { %143 = vmatpush3.bf16.msra.mxu0 %v159_v2 }
   0x7   :  { %144 = vmatprep.subr.bf16.mxu0 %v164_v0 }
   0xa   :  { %145 = vmatpush3.bf16.msra.mxu0 %v160_v3 }
   0xb   :  { %146 = vmatprep.subr.bf16.mxu0 %v164_v0 }
   0xe   :  { %147 = vmatpush3.bf16.msra.mxu0 %v161_v4 }
   0xf   :  { %148 = vmatprep.subr.bf16.mxu0 %v164_v0 }
  0x12   :  { %149 = vmatpush3.bf16.msra.mxu0 %v162_v5 }
  0x13   :  { %150 = vmatprep.subr.bf16.mxu0 %v164_v0 }
  0x16   :  { %151 = vmatpush3.bf16.msra.mxu0 %v163_v6 }
  0x19   :  { %153 = vmatmul.mubr.msk.bf16.vlgmr.msra.gmra.mrb[0].mxu0 %vm73_vm1, %v17_v9 }
  0xec   :  { %v111_v11 = vpop.f32.mrb[0].mxu0 }
  0xed   :  { %v112_v12 = vadd.f32 %v125_v10, %v111_v11  ;;  %v154_v13 = vpop.f32.mrb[1].mxu0 }
  0xee   :  { %v114_v14 = vpop.f32.mrb[2].mxu0 }
  0xef   :  { %119 = vst.msk [vmem:[%s222_s3] sm:$0xff] %vm118_vm2, %v112_v12  ;;  %v115_v15 = vadd.f32 %v125_v10, %v114_v14  ;;  %v155_v16 = vpop.f32.mrb[3].mxu0 }
  0xf1   :  { %120 = vst.msk [vmem:[%s222_s3 + $0x8] sm:$0xff] %vm118_vm2, %v115_v15 }

// kernel: run.23
= control target key start
LH: loop header
LB: loop body
LE: loop exit
PB: predicated region body
PF: predicated region fallthrough
CT: control target
= control target key end

     0   :  { %v112_v0 = vmov 0.0   ;;  %vm113_vm0 = vmmov 0   ;;  %vm41_vm1 = vcmask 261120   ;;  %vm86_vm2 = vcmask 48128   ;;  %s155_s1 = inlined_call_operand.vmem [shape: bf16[32,6], index: 1, kind: input, shape index: {}]   ;;  %s156_s0 = inlined_call_operand.vmem [shape: f32[16,32], index: 0, kind: input, shape index: {}]   ;;  %s157_s2 = inlined_call_operand.vmem [shape: f32[1,6], index: 2, kind: input, shape index: {}]   ;;  %s158_s3 = inlined_call_operand.vmem [shape: f32[16,6], index: 3, kind: output, shape index: {}]  }
   0x1   :  { %100 = vmatprep.subr.bf16.mxu0 %v112_v0  ;;  %v110_v1 = vld [vmem:[%s155_s1] sm:$0xff]   ;;  %104 = vmatprep.mubr.msk.bf16.mxu0 %vm113_vm0, %v112_v0  ;;  %v111_v2 = vld [vmem:[%s155_s1 + $0x8] sm:$0xff]  }
   0x2   :  { %101 = vmatpush3.bf16.msra.mxu0 %v110_v1  ;;  %v15_v3 = vld [vmem:[%s156_s0] sm:$0xff]  ;;  %v16_v4 = vld [vmem:[%s156_s0 + $0x8] sm:$0xff] }
   0x3   :  { %102 = vmatprep.subr.bf16.mxu0 %v112_v0  ;;  %v17_v5 = vpack.c.bf16 %v16_v4, %v15_v3  ;;  %v93_v6 = vld [vmem:[%s157_s2] ss:$0 sm:$0xff] }
   0x6   :  { %103 = vmatpush3.bf16.msra.mxu0 %v111_v2 }
   0x9   :  { %105 = vmatmul.mubr.msk.bf16.vlgmr.msra.gmra.mrb[0].mxu0 %vm41_vm1, %v17_v5 }
  0xdc   :  { %v79_v7 = vpop.f32.mrb[0].mxu0 }
  0xdd   :  { %v80_v8 = vadd.f32 %v93_v6, %v79_v7  ;;  %v106_v9 = vpop.f32.mrb[1].mxu0 }
  0xde   :  { %v82_v10 = vpop.f32.mrb[2].mxu0 }
  0xdf   :  { %87 = vst.msk [vmem:[%s158_s3] sm:$0xff] %vm86_vm2, %v80_v8  ;;  %v83_v11 = vadd.f32 %v93_v6, %v82_v10  ;;  %v107_v12 = vpop.f32.mrb[3].mxu0 }
  0xe1   :  { %88 = vst.msk [vmem:[%s158_s3 + $0x8] sm:$0xff] %vm86_vm2, %v83_v11 }

// kernel: run.29
= control target key start
LH: loop header
LB: loop body
LE: loop exit
PB: predicated region body
PF: predicated region fallthrough
CT: control target
= control target key end

     0   :  { %v1081_v0 = vmov 0.0   ;;  %vm1082_vm0 = vmmov 0   ;;  %vm70_vm1 = vcmask 261120   ;;  %vm774_vm2 = vcmask 113664   ;;  %s1387_s2 = inlined_call_operand.vmem [shape: bf16[32,128], index: 2, kind: input, shape index: {}]   ;;  %s1388_s0 = inlined_call_operand.vmem [shape: f32[16,32], index: 0, kind: input, shape index: {}]   ;;  %s1389_s4 = inlined_call_operand.vmem [shape: bf16[32,128], index: 4, kind: input, shape index: {}]   ;;  %s1390_s1 = inlined_call_operand.vmem [shape: f32[16,32], index: 1, kind: input, shape index: {}]   ;;  %s1391_s6 = inlined_call_operand.vmem [shape: bf16[2,128,128], index: 6, kind: input, shape index: {}]   ;;  %s1392_s8 = inlined_call_operand.vmem [shape: bf16[2,128,128], index: 8, kind: input, shape index: {}]   ;;  %s1393_s3 = inlined_call_operand.vmem [shape: f32[1,128], index: 3, kind: input, shape index: {}]   ;;  %s1394_s5 = inlined_call_operand.vmem [shape: f32[1,128], index: 5, kind: input, shape index: {}]   ;;  %s1395_s7 = inlined_call_operand.vmem [shape: f32[2,1,128], index: 7, kind: input, shape index: {}]   ;;  %s1396_s9 = inlined_call_operand.vmem [shape: f32[2,1,128], index: 9, kind: input, shape index: {}]   ;;  %s1397_s10 = inlined_call_operand.vmem [shape: bf16[128,14], index: 10, kind: input, shape index: {}]   ;;  %s1398_s11 = inlined_call_operand.vmem [shape: f32[1,14], index: 11, kind: input, shape index: {}]   ;;  %s1399_s12 = inlined_call_operand.vmem [shape: f32[16,14], index: 12, kind: output, shape index: {}]  }
   0x1   :  { %919 = vmatprep.subr.bf16.mxu1 %v1081_v0  ;;  %v1037_v1 = vld [vmem:[%s1387_s2] sm:$0xff]   ;;  %923 = vmatprep.mubr.msk.bf16.mxu1 %vm1082_vm0, %v1081_v0  ;;  %v1038_v2 = vld [vmem:[%s1387_s2 + $0x8] sm:$0xff]   ;;  %v1043_v16 = vld [vmem:[%s1391_s6 + $0x10] sm:$0xff]  }
   0x2   :  { %935 = vmatprep.subr.bf16.mxu0 %v1081_v0  ;;  %951 = vmatprep.mubr.msk.bf16.mxu0 %vm1082_vm0, %v1081_v0  ;;  %v42_v3 = vld [vmem:[%s1388_s0] sm:$0xff]  ;;  %v43_v4 = vld [vmem:[%s1388_s0 + $0x8] sm:$0xff]  ;;  %v1044_v18 = vld [vmem:[%s1391_s6 + $0x18] sm:$0xff]  }
   0x3   :  { %920 = vmatpush3.bf16.msra.mxu1 %v1037_v1  ;;  %v44_v5 = vmax.f32 %v42_v3, 0.0  ;;  %v45_v6 = vmax.f32 %v43_v4, 0.0  ;;  %v1039_v7 = vld [vmem:[%s1389_s4] sm:$0xff]   ;;  %v116_v10 = vld [vmem:[%s1390_s1 + $0x8] sm:$0xff]  ;;  %v1047_v21 = vld [vmem:[%s1391_s6 + $0x30] sm:$0xff]  }
   0x4   :  { %921 = vmatprep.subr.bf16.mxu1 %v1081_v0  ;;  %v115_v8 = vld [vmem:[%s1390_s1] sm:$0xff]  ;;  %v1040_v12 = vld [vmem:[%s1389_s4 + $0x8] sm:$0xff]   ;;  %v118_v14 = vmax.f32 %v116_v10, 0.0  ;;  %v1048_v22 = vld [vmem:[%s1391_s6 + $0x38] sm:$0xff]  }
   0x5   :  { %v46_v9 = vpack.c.bf16 %v45_v6, %v44_v5  ;;  %v1041_v11 = vld [vmem:[%s1391_s6] sm:$0xff]   ;;  %v117_v13 = vmax.f32 %v115_v8, 0.0  ;;  %v1042_v15 = vld [vmem:[%s1391_s6 + $0x8] sm:$0xff]   ;;  %v1051_v25 = vld [vmem:[%s1392_s8 + $0x10] sm:$0xff]  }
   0x6   :  { %936 = vmatpush3.bf16.msra.mxu0 %v1041_v11  ;;  %v1045_v19 = vld [vmem:[%s1391_s6 + $0x20] sm:$0xff]   ;;  %v1046_v20 = vld [vmem:[%s1391_s6 + $0x28] sm:$0xff]   ;;  %v1052_v26 = vld [vmem:[%s1392_s8 + $0x18] sm:$0xff]  }
   0x7   :  { %922 = vmatpush3.bf16.msra.mxu1 %v1038_v2  ;;  %937 = vmatprep.subr.bf16.mxu0 %v1081_v0  ;;  %v119_v17 = vpack.c.bf16 %v118_v14, %v117_v13  ;;  %v1049_v23 = vld [vmem:[%s1392_s8] sm:$0xff]   ;;  %v1050_v24 = vld [vmem:[%s1392_s8 + $0x8] sm:$0xff]   ;;  %v1055_v48 = vld [vmem:[%s1392_s8 + $0x30] sm:$0xff]  }
   0x8   :  { %927 = vmatprep.subr.bf16.mxu1 %v1081_v0  ;;  %v1053_v27 = vld [vmem:[%s1392_s8 + $0x20] sm:$0xff]   ;;  %v1054_v28 = vld [vmem:[%s1392_s8 + $0x28] sm:$0xff]   ;;  %v1056_v49 = vld [vmem:[%s1392_s8 + $0x38] sm:$0xff]  }
   0x9   :  { %v781_v33 = vld [vmem:[%s1393_s3] ss:$0 sm:$0xff]  ;;  %v1058_v51 = vld [vmem:[%s1391_s6 + $0x48] sm:$0xff]   ;;  %v1059_v52 = vld [vmem:[%s1391_s6 + $0x50] sm:$0xff]  }
   0xa   :  { %924 = vmatmul.mubr.msk.bf16.vlgmr.msra.gmra.mrb[0].mxu1 %vm70_vm1, %v46_v9  ;;  %938 = vmatpush3.bf16.msra.mxu0 %v1042_v15  ;;  %v788_v36 = vld [vmem:[%s1394_s5] ss:$0 sm:$0xff]  ;;  %v1060_v53 = vld [vmem:[%s1391_s6 + $0x58] sm:$0xff]   ;;  %v1062_v2 = vld [vmem:[%s1391_s6 + $0x68] sm:$0xff]  }
   0xb   :  { %928 = vmatpush3.bf16.msra.mxu1 %v1039_v7  ;;  %931 = vmatprep.mubr.msk.bf16.mxu1 %vm1082_vm0, %v1081_v0  ;;  %v1057_v50 = vld [vmem:[%s1391_s6 + $0x40] sm:$0xff]   ;;  %v1063_v3 = vld [vmem:[%s1391_s6 + $0x70] sm:$0xff]   ;;  %v1064_v4 = vld [vmem:[%s1391_s6 + $0x78] sm:$0xff]  }
   0xc   :  { %929 = vmatprep.subr.bf16.mxu1 %v1081_v0  ;;  %939 = vmatprep.subr.bf16.mxu0 %v1081_v0  ;;  %v1061_v54 = vld [vmem:[%s1391_s6 + $0x60] sm:$0xff]   ;;  %v1066_v6 = vld [vmem:[%s1392_s8 + $0x48] sm:$0xff]   ;;  %v1067_v7 = vld [vmem:[%s1392_s8 + $0x50] sm:$0xff]  }
   0xd   :  { %v789_v55 = vld [vmem:[%s1395_s7] ss:$0 sm:$0xff]  ;;  %v1068_v8 = vld [vmem:[%s1392_s8 + $0x58] sm:$0xff]   ;;  %v1070_v10 = vld [vmem:[%s1392_s8 + $0x68] sm:$0xff]  }
   0xe   :  { %940 = vmatpush3.bf16.msra.mxu0 %v1043_v16  ;;  %v1065_v5 = vld [vmem:[%s1392_s8 + $0x40] sm:$0xff]  }
   0xf   :  { %930 = vmatpush3.bf16.msra.mxu1 %v1040_v12  ;;  %941 = vmatprep.subr.bf16.mxu0 %v1081_v0  ;;  %v1069_v9 = vld [vmem:[%s1392_s8 + $0x60] sm:$0xff]  }
  0x10   :  { %955 = vmatprep.subr.bf16.mxu1 %v1081_v0  ;;  %v798_v11 = vld [vmem:[%s1396_s9] ss:$0 sm:$0xff] }
  0x12   :  { %932 = vmatmul.mubr.msk.bf16.vlgmr.msra.gmra.mrb[4].mxu1 %vm70_vm1, %v119_v17  ;;  %942 = vmatpush3.bf16.msra.mxu0 %v1044_v18 }
  0x13   :  { %971 = vmatprep.mubr.msk.bf16.mxu1 %vm1082_vm0, %v1081_v0  ;;  %943 = vmatprep.subr.bf16.mxu0 %v1081_v0 }
  0x14   :  { %956 = vmatpush3.bf16.msra.mxu1 %v1049_v23  ;;  %v1071_v23 = vld [vmem:[%s1392_s8 + $0x70] sm:$0xff]  }
  0x15   :  { %957 = vmatprep.subr.bf16.mxu1 %v1081_v0 }
  0x16   :  { %944 = vmatpush3.bf16.msra.mxu0 %v1045_v19 }
  0x17   :  { %945 = vmatprep.subr.bf16.mxu0 %v1081_v0 }
  0x18   :  { %958 = vmatpush3.bf16.msra.mxu1 %v1050_v24  ;;  %v1072_v24 = vld [vmem:[%s1392_s8 + $0x78] sm:$0xff]  }
  0x19   :  { %959 = vmatprep.subr.bf16.mxu1 %v1081_v0 }
  0x1a   :  { %946 = vmatpush3.bf16.msra.mxu0 %v1046_v20 }
  0x1b   :  { %947 = vmatprep.subr.bf16.mxu0 %v1081_v0 }
  0x1c   :  { %960 = vmatpush3.bf16.msra.mxu1 %v1051_v25  ;;  %v1073_v25 = vld [vmem:[%s1397_s10] sm:$0xff]  }
  0x1d   :  { %961 = vmatprep.subr.bf16.mxu1 %v1081_v0 }
  0x1e   :  { %948 = vmatpush3.bf16.msra.mxu0 %v1047_v21 }
  0x1f   :  { %949 = vmatprep.subr.bf16.mxu0 %v1081_v0 }
  0x20   :  { %962 = vmatpush3.bf16.msra.mxu1 %v1052_v26  ;;  %v1074_v26 = vld [vmem:[%s1397_s10 + $0x8] sm:$0xff]  }
  0x21   :  { %963 = vmatprep.subr.bf16.mxu1 %v1081_v0 }
  0x22   :  { %950 = vmatpush3.bf16.msra.mxu0 %v1048_v22 }
  0x23   :  { %975 = vmatprep.subr.bf16.mxu0 %v1081_v0 }
  0x24   :  { %964 = vmatpush3.bf16.msra.mxu1 %v1053_v27  ;;  %v1075_v27 = vld [vmem:[%s1397_s10 + $0x10] sm:$0xff]  }
  0x25   :  { %965 = vmatprep.subr.bf16.mxu1 %v1081_v0 }
  0x28   :  { %966 = vmatpush3.bf16.msra.mxu1 %v1054_v28  ;;  %v1076_v28 = vld [vmem:[%s1397_s10 + $0x18] sm:$0xff]  }
  0x29   :  { %967 = vmatprep.subr.bf16.mxu1 %v1081_v0 }
  0x2c   :  { %968 = vmatpush3.bf16.msra.mxu1 %v1055_v48 }
  0x2d   :  { %969 = vmatprep.subr.bf16.mxu1 %v1081_v0 }
  0x30   :  { %970 = vmatpush3.bf16.msra.mxu1 %v1056_v49 }
  0x31   :  { %995 = vmatprep.subr.bf16.mxu1 %v1081_v0 }
  0xdd   :  { %v108_v29 = vpop.f32.mrb[0].mxu1 }
  0xde   :  { %v925_v30 = vpop.f32.mrb[1].mxu1  ;;  %v109_v34 = vadd.f32 %v781_v33, %v108_v29  ;;  %v1077_v29 = vld [vmem:[%s1397_s10 + $0x20] sm:$0xff]  }
  0xdf   :  { %v111_v31 = vpop.f32.mrb[2].mxu1  ;;  %v824_v30 = vld [vmem:[%s1395_s7 + $0x1] ss:$0 sm:$0xff] }
  0xe0   :  { %v926_v32 = vpop.f32.mrb[3].mxu1  ;;  %v112_v37 = vadd.f32 %v781_v33, %v111_v31 }
  0xe5   :  { %v173_v35 = vpop.f32.mrb[4].mxu1 }
  0xe6   :  { %v180_v38 = vadd.f32 %v173_v35, %v109_v34  ;;  %v933_v39 = vpop.f32.mrb[5].mxu1 }
  0xe7   :  { %v176_v40 = vpop.f32.mrb[6].mxu1 }
  0xe8   :  { %v1250_v41 = vadd.f32 %v788_v36, %v180_v38  ;;  %v181_v42 = vadd.f32 %v176_v40, %v112_v37  ;;  %v934_v43 = vpop.f32.mrb[7].mxu1  ;;  %v1078_v40 = vld [vmem:[%s1397_s10 + $0x28] sm:$0xff]  }
  0xe9   :  { %v850_v43 = vld [vmem:[%s1396_s9 + $0x1] ss:$0 sm:$0xff] }
  0xea   :  { %v1252_v44 = vadd.f32 %v788_v36, %v181_v42  ;;  %v191_v45 = vmax.f32 %v1250_v41, 0.0  ;;  %v1080_v42 = vld [vmem:[%s1397_s10 + $0x38] sm:$0xff]  }
  0xec   :  { %v192_v46 = vmax.f32 %v1252_v44, 0.0 }
  0xee   :  { %v193_v47 = vpack.c.bf16 %v192_v46, %v191_v45 }
  0xf0   :  { %952 = vmatmul.mubr.bf16.vlgmr.msra.gmra.mrb[0].mxu0 %v193_v47 }
  0xf1   :  { %991 = vmatprep.mubr.msk.bf16.mxu0 %vm1082_vm0, %v1081_v0  ;;  %976 = vmatpush3.bf16.msra.mxu0 %v1057_v50 }
  0xf2   :  { %977 = vmatprep.subr.bf16.mxu0 %v1081_v0 }
  0xf5   :  { %978 = vmatpush3.bf16.msra.mxu0 %v1058_v51 }
  0xf6   :  { %979 = vmatprep.subr.bf16.mxu0 %v1081_v0 }
  0xf9   :  { %980 = vmatpush3.bf16.msra.mxu0 %v1059_v52 }
  0xfa   :  { %981 = vmatprep.subr.bf16.mxu0 %v1081_v0 }
  0xfd   :  { %982 = vmatpush3.bf16.msra.mxu0 %v1060_v53 }
  0xfe   :  { %983 = vmatprep.subr.bf16.mxu0 %v1081_v0 }
 0x101   :  { %984 = vmatpush3.bf16.msra.mxu0 %v1061_v54  ;;  %v859_v54 = vld [vmem:[%s1398_s11] ss:$0 sm:$0xff] }
 0x102   :  { %985 = vmatprep.subr.bf16.mxu0 %v1081_v0 }
 0x105   :  { %986 = vmatpush3.bf16.msra.mxu0 %v1062_v2 }
 0x106   :  { %987 = vmatprep.subr.bf16.mxu0 %v1081_v0 }
 0x109   :  { %988 = vmatpush3.bf16.msra.mxu0 %v1063_v3 }
 0x10a   :  { %989 = vmatprep.subr.bf16.mxu0 %v1081_v0 }
 0x10d   :  { %990 = vmatpush3.bf16.msra.mxu0 %v1064_v4 }
 0x10e   :  { %1015 = vmatprep.subr.bf16.mxu0 %v1081_v0 }
 0x1c3   :  { %v299_v56 = vpop.f32.mrb[0].mxu0 }
 0x1c4   :  { %v300_v57 = vadd.f32 %v789_v55, %v299_v56  ;;  %v953_v58 = vpop.f32.mrb[1].mxu0 }
 0x1c5   :  { %v302_v59 = vpop.f32.mrb[2].mxu0 }
 0x1c6   :  { %v303_v60 = vadd.f32 %v789_v55, %v302_v59  ;;  %v954_v61 = vpop.f32.mrb[3].mxu0  ;;  %v306_v62 = vmax.f32 %v300_v57, 0.0 }
 0x1c8   :  { %v307_v63 = vmax.f32 %v303_v60, 0.0 }
 0x1ca   :  { %v308_v1 = vpack.c.bf16 %v307_v63, %v306_v62 }
 0x1cc   :  { %972 = vmatmul.mubr.bf16.vlgmr.msra.gmra.mrb[8].mxu1 %v308_v1 }
 0x1cd   :  { %1011 = vmatprep.mubr.msk.bf16.mxu1 %vm1082_vm0, %v1081_v0  ;;  %996 = vmatpush3.bf16.msra.mxu1 %v1065_v5 }
 0x1ce   :  { %997 = vmatprep.subr.bf16.mxu1 %v1081_v0 }
 0x1d1   :  { %998 = vmatpush3.bf16.msra.mxu1 %v1066_v6 }
 0x1d2   :  { %999 = vmatprep.subr.bf16.mxu1 %v1081_v0 }
 0x1d5   :  { %1000 = vmatpush3.bf16.msra.mxu1 %v1067_v7 }
 0x1d6   :  { %1001 = vmatprep.subr.bf16.mxu1 %v1081_v0 }
 0x1d9   :  { %1002 = vmatpush3.bf16.msra.mxu1 %v1068_v8 }
 0x1da   :  { %1003 = vmatprep.subr.bf16.mxu1 %v1081_v0 }
 0x1dd   :  { %1004 = vmatpush3.bf16.msra.mxu1 %v1069_v9 }
 0x1de   :  { %1005 = vmatprep.subr.bf16.mxu1 %v1081_v0 }
 0x1e1   :  { %1006 = vmatpush3.bf16.msra.mxu1 %v1070_v10 }
 0x1e2   :  { %1007 = vmatprep.subr.bf16.mxu1 %v1081_v0 }
 0x1e5   :  { %1008 = vmatpush3.bf16.msra.mxu1 %v1071_v23 }
 0x1e6   :  { %1009 = vmatprep.subr.bf16.mxu1 %v1081_v0 }
 0x1e9   :  { %1010 = vmatpush3.bf16.msra.mxu1 %v1072_v24 }
 0x29f   :  { %v414_v12 = vpop.f32.mrb[8].mxu1 }
 0x2a0   :  { %v415_v13 = vadd.f32 %v798_v11, %v414_v12  ;;  %v973_v14 = vpop.f32.mrb[9].mxu1 }
 0x2a1   :  { %v417_v15 = vpop.f32.mrb[10].mxu1 }
 0x2a2   :  { %v421_v16 = vadd.f32 %v415_v13, %v1250_v41  ;;  %v418_v17 = vadd.f32 %v798_v11, %v417_v15  ;;  %v974_v18 = vpop.f32.mrb[11].mxu1  ;;  %v1079_v41 = vld [vmem:[%s1397_s10 + $0x30] sm:$0xff]  }
 0x2a4   :  { %v422_v19 = vadd.f32 %v418_v17, %v1252_v44  ;;  %v423_v20 = vmax.f32 %v421_v16, 0.0 }
 0x2a6   :  { %v424_v21 = vmax.f32 %v422_v19, 0.0 }
 0x2a8   :  { %v425_v22 = vpack.c.bf16 %v424_v21, %v423_v20 }
 0x2aa   :  { %992 = vmatmul.mubr.bf16.vlgmr.msra.gmra.mrb[4].mxu0 %v425_v22 }
 0x2ab   :  { %1031 = vmatprep.mubr.msk.bf16.mxu0 %vm1082_vm0, %v1081_v0  ;;  %1016 = vmatpush3.bf16.msra.mxu0 %v1073_v25 }
 0x2ac   :  { %1017 = vmatprep.subr.bf16.mxu0 %v1081_v0 }
 0x2af   :  { %1018 = vmatpush3.bf16.msra.mxu0 %v1074_v26 }
 0x2b0   :  { %1019 = vmatprep.subr.bf16.mxu0 %v1081_v0 }
 0x2b3   :  { %1020 = vmatpush3.bf16.msra.mxu0 %v1075_v27 }
 0x2b4   :  { %1021 = vmatprep.subr.bf16.mxu0 %v1081_v0 }
 0x2b7   :  { %1022 = vmatpush3.bf16.msra.mxu0 %v1076_v28 }
 0x2b8   :  { %1023 = vmatprep.subr.bf16.mxu0 %v1081_v0 }
 0x2bb   :  { %1024 = vmatpush3.bf16.msra.mxu0 %v1077_v29 }
 0x2bc   :  { %1025 = vmatprep.subr.bf16.mxu0 %v1081_v0 }
 0x2bf   :  { %1026 = vmatpush3.bf16.msra.mxu0 %v1078_v40 }
 0x2c0   :  { %1027 = vmatprep.subr.bf16.mxu0 %v1081_v0 }
 0x2c3   :  { %1028 = vmatpush3.bf16.msra.mxu0 %v1079_v41 }
 0x2c4   :  { %1029 = vmatprep.subr.bf16.mxu0 %v1081_v0 }
 0x2c7   :  { %1030 = vmatpush3.bf16.msra.mxu0 %v1080_v42 }
 0x37d   :  { %v533_v31 = vpop.f32.mrb[4].mxu0 }
 0x37e   :  { %v534_v32 = vadd.f32 %v824_v30, %v533_v31  ;;  %v993_v33 = vpop.f32.mrb[5].mxu0 }
 0x37f   :  { %v536_v34 = vpop.f32.mrb[6].mxu0 }
 0x380   :  { %v537_v35 = vadd.f32 %v824_v30, %v536_v34  ;;  %v994_v36 = vpop.f32.mrb[7].mxu0  ;;  %v540_v37 = vmax.f32 %v534_v32, 0.0 }
 0x382   :  { %v541_v38 = vmax.f32 %v537_v35, 0.0 }
 0x384   :  { %v542_v39 = vpack.c.bf16 %v541_v38, %v540_v37 }
 0x386   :  { %1012 = vmatmul.mubr.bf16.vlgmr.msra.gmra.mrb[12].mxu1 %v542_v39 }
 0x459   :  { %v650_v44 = vpop.f32.mrb[12].mxu1 }
 0x45a   :  { %v651_v45 = vadd.f32 %v850_v43, %v650_v44  ;;  %v1013_v46 = vpop.f32.mrb[13].mxu1 }
 0x45b   :  { %v653_v47 = vpop.f32.mrb[14].mxu1 }
 0x45c   :  { %v657_v48 = vadd.f32 %v651_v45, %v421_v16  ;;  %v654_v49 = vadd.f32 %v850_v43, %v653_v47  ;;  %v1014_v50 = vpop.f32.mrb[15].mxu1 }
 0x45e   :  { %v658_v51 = vadd.f32 %v654_v49, %v422_v19  ;;  %v659_v52 = vmax.f32 %v657_v48, 0.0 }
 0x460   :  { %v660_v53 = vmax.f32 %v658_v51, 0.0 }
 0x462   :  { %v661_v0 = vpack.c.bf16 %v660_v53, %v659_v52 }
 0x464   :  { %1032 = vmatmul.mubr.bf16.vlgmr.msra.gmra.mrb[8].mxu0 %v661_v0 }
 0x537   :  { %v767_v55 = vpop.f32.mrb[8].mxu0 }
 0x538   :  { %v768_v56 = vadd.f32 %v859_v54, %v767_v55  ;;  %v1033_v57 = vpop.f32.mrb[9].mxu0 }
 0x539   :  { %v770_v58 = vpop.f32.mrb[10].mxu0 }
 0x53a   :  { %775 = vst.msk [vmem:[%s1399_s12] sm:$0xff] %vm774_vm2, %v768_v56  ;;  %v771_v59 = vadd.f32 %v859_v54, %v770_v58  ;;  %v1034_v60 = vpop.f32.mrb[11].mxu0 }
 0x53c   :  { %776 = vst.msk [vmem:[%s1399_s12 + $0x8] sm:$0xff] %vm774_vm2, %v771_v59 }

</bundles_post_ra>
